<compile_context>
chip_gen: v7x
topology: tpu7x:2x2x1
jax: 0.10.0
libtpu: 0.0.40
codegen_flags: <defaults>
</compile_context>

<pallas_src>
import math

import jax
import jax.numpy as jnp
import numpy as np
from jax.experimental import pallas as pl
from jax.experimental.pallas import tpu as pltpu

# int32-wrapped spatial-hash primes {1, 2654435761, 805459861}
_PRIMES_I32 = (1, -1640531535, 805459861)
# corner c = 4*i + 2*j + k, matching BOX_OFFSETS ordering of the reference impl
_CORNERS = tuple((i, j, k) for i in (0, 1) for j in (0, 1) for k in (0, 1))


def _level_grid_sizes(box_min, box_max, n_levels, base_resolution, finest_resolution):
    """Per-level voxel sizes (n_levels, 3) f32 and their reciprocals (shared with ref)."""
    b = math.exp((math.log(finest_resolution) - math.log(base_resolution)) / (n_levels - 1))
    res = np.floor(base_resolution * (b ** np.arange(n_levels)))              # (L,)
    gs = ((np.asarray(box_max, np.float64) - np.asarray(box_min, np.float64))[None, :]
          / res[:, None]).astype(np.float32)                                  # (L, 3)
    inv_gs = (np.float32(1.0) / gs).astype(np.float32)                        # (L, 3)
    return gs, inv_gs


# ----------------------------- Pallas kernels --------------------------------
def _make_hash_index_kernel(box_min, box_max, log2_hashmap_size, n_levels,
                            level_chunk, table_size):
    mask = (1 << log2_hashmap_size) - 1
    bmin = tuple(float(v) for v in box_min)
    bmax = tuple(float(v) for v in box_max)

    def kernel(x_ref, gs_ref, inv_gs_ref, idx_ref, w_ref):
        # x_ref:      (3, TILE)        points (xyz on sublanes, N on lanes)
        # gs_ref:     (3, L, 1)        per-dim per-level voxel size (VMEM resident)
        # inv_gs_ref: (3, L, 1)        reciprocals
        # idx_ref:    (8, L, TILE)     int32 hashed corner indices incl. level offset
        # w_ref:      (3, L, TILE)     f32 trilinear weights
        tile = x_ref.shape[1]
        for l0 in range(0, n_levels, level_chunk):
            sl = slice(l0, l0 + level_chunk)
            h0 = []                                           # 3 live (chunk,TILE) i32
            for d in range(3):
                xd = x_ref[d:d + 1, :]                        # (1, TILE) raw coord
                xc = jnp.clip(xd, bmin[d], bmax[d])           # clamp to bounding box
                gs_d = gs_ref[d, sl]                          # (chunk, 1)
                inv_d = inv_gs_ref[d, sl]                     # (chunk, 1)
                t = (xc - bmin[d]) * inv_d                    # (chunk, TILE)
                blf = jnp.floor(t)                            # bottom-left corner (float)
                vmin = blf * gs_d + bmin[d]                   # voxel_min_vertex
                w_ref[d, sl] = (xd - vmin) * inv_d            # weight uses raw coord
                h0.append(blf.astype(jnp.int32) * _PRIMES_I32[d])
            # level offset folded AFTER the mask (per review): row = hash + l*T
            lvl = l0 + jax.lax.broadcasted_iota(jnp.int32, (level_chunk, tile), 0)
            off = lvl * table_size                            # (chunk, TILE) i32
            for c, (oi, oj, ok) in enumerate(_CORNERS):
                hx = h0[0] + _PRIMES_I32[0] if oi else h0[0]  # (bli+1)*p == bli*p + p (mod 2^32)
                hy = h0[1] + _PRIMES_I32[1] if oj else h0[1]
                hz = h0[2] + _PRIMES_I32[2] if ok else h0[2]
                idx_ref[c, sl] = ((hx ^ hy ^ hz) & mask) + off

    return kernel


def _make_interp_kernel(n_levels, n_features, level_chunk):
    def kernel(e_ref, w_ref, out_ref):
        # e_ref:   (F, 8, L, TILE)   gathered corner features
        # w_ref:   (3, L, TILE)      trilinear weights
        # out_ref: (F, L, TILE)      interpolated features
        for l0 in range(0, n_levels, level_chunk):
            sl = slice(l0, l0 + level_chunk)
            wx = w_ref[0, sl]
            wy = w_ref[1, sl]
            wz = w_ref[2, sl]
            ux = 1.0 - wx
            uy = 1.0 - wy
            uz = 1.0 - wz
            for f in range(n_features):
                c00 = e_ref[f, 0, sl] * ux + e_ref[f, 4, sl] * wx
                c01 = e_ref[f, 1, sl] * ux + e_ref[f, 5, sl] * wx
                c10 = e_ref[f, 2, sl] * ux + e_ref[f, 6, sl] * wx
                c11 = e_ref[f, 3, sl] * ux + e_ref[f, 7, sl] * wx
                c0 = c00 * uy + c10 * wy
                c1 = c01 * uy + c11 * wy
                out_ref[f, sl] = c0 * uz + c1 * wz

    return kernel


# ------------------------------- wrapper --------------------------------------
def make_hash_embedding_forward(bounding_box, n_levels=16, n_features_per_level=2,
                                log2_hashmap_size=19, base_resolution=16,
                                finest_resolution=512, tile_n=512):
    box_min = np.asarray(bounding_box[0], np.float32)
    box_max = np.asarray(bounding_box[1], np.float32)
    assert box_min.shape == (3,) and box_max.shape == (3,)
    L = n_levels
    F = n_features_per_level
    T = 1 << log2_hashmap_size
    level_chunk = 8 if (L >= 8 and L % 8 == 0) else L   # sublane-sized chunks bound vregs

    gs, inv_gs = _level_grid_sizes(box_min, box_max, L, base_resolution, finest_resolution)
    gs_in = jnp.asarray(gs.T.reshape(3, L, 1))           # (3, L, 1)
    inv_in = jnp.asarray(inv_gs.T.reshape(3, L, 1))      # (3, L, 1)

    hash_kernel = _make_hash_index_kernel(box_min, box_max, log2_hashmap_size,
                                          L, level_chunk, T)
    interp_kernel = _make_interp_kernel(L, F, level_chunk)
    # constant index_map -> block never changes -> DMA'd once, VMEM-resident
    const_spec = pl.BlockSpec((3, L, 1), lambda i: (0, 0, 0))

    @jax.jit
    def forward(x, hash_tables):
        n = x.shape[0]
        n_pad = pl.cdiv(n, tile_n) * tile_n
        grid = (n_pad // tile_n,)
        # transpose in the wrapper so the kernels never lane-slice a 3-wide axis
        x_t = jnp.pad(x.astype(jnp.float32), ((0, n_pad - n), (0, 0))).T     # (3, n_pad)

        idx, wts = pl.pallas_call(
            hash_kernel,
            grid=grid,
            in_specs=[pl.BlockSpec((3, tile_n), lambda i: (0, i)),
                      const_spec, const_spec],
            out_specs=[pl.BlockSpec((8, L, tile_n), lambda i: (0, 0, i)),
                       pl.BlockSpec((3, L, tile_n), lambda i: (0, 0, i))],
            out_shape=[jax.ShapeDtypeStruct((8, L, n_pad), jnp.int32),
                       jax.ShapeDtypeStruct((3, L, n_pad), jnp.float32)],
            compiler_params=pltpu.CompilerParams(dimension_semantics=("parallel",)),
            cost_estimate=pl.CostEstimate(flops=80 * L * n_pad, transcendentals=0,
                                          bytes_accessed=(3 + 11 * L) * 4 * n_pad),
        )(x_t, gs_in, inv_in)

        # TODO(synk): data-dependent gather from a 2^log2_hashmap_size-entry table has
        # no robust Pallas/Mosaic in-kernel equivalent; delegated to XLA's native gather.
        # Single gather on a once-transposed (F, L*T) table writes directly in the
        # lane-dense (F, 8, L, n_pad) layout the interp kernel consumes.
        tab_f = jnp.transpose(hash_tables, (2, 0, 1)).reshape(F, L * T)      # (F, L*T)
        corner_feats = jnp.take(tab_f, idx, axis=1)                          # (F, 8, L, n_pad)

        out = pl.pallas_call(
            interp_kernel,
            grid=grid,
            in_specs=[pl.BlockSpec((F, 8, L, tile_n), lambda i: (0, 0, 0, i)),
                      pl.BlockSpec((3, L, tile_n), lambda i: (0, 0, i))],
            out_specs=pl.BlockSpec((F, L, tile_n), lambda i: (0, 0, i)),
            out_shape=jax.ShapeDtypeStruct((F, L, n_pad), jnp.float32),
            compiler_params=pltpu.CompilerParams(dimension_semantics=("parallel",)),
            cost_estimate=pl.CostEstimate(flops=(14 * F + 3) * L * n_pad, transcendentals=0,
                                          bytes_accessed=(9 * F + 3) * L * 4 * n_pad),
        )(corner_feats, wts)

        # (F, L, n_pad) -> (n, L*F), feature fastest == torch.cat over levels
        return jnp.transpose(out, (2, 1, 0)).reshape(n_pad, L * F)[:n]

    return forward


# --------------------------- pure-JAX reference --------------------------------
def hash_embedding_ref(x, hash_tables, box_min, box_max, n_levels,
                       log2_hashmap_size, base_resolution, finest_resolution):
    mask = (1 << log2_hashmap_size) - 1
    gs_all, inv_all = _level_grid_sizes(box_min, box_max, n_levels,
                                        base_resolution, finest_resolution)
    bmin = jnp.asarray(box_min, jnp.float32)
    bmax = jnp.asarray(box_max, jnp.float32)
    outs = []
    for l in range(n_levels):
        gs = jnp.asarray(gs_all[l])                      # (3,)
        inv = jnp.asarray(inv_all[l])                    # (3,)
        xc = jnp.clip(x, bmin, bmax)
        blf = jnp.floor((xc - bmin) * inv)
        bli = blf.astype(jnp.int32)
        vmin = blf * gs + bmin
        w = (x - vmin) * inv                             # (N, 3), raw x as in the module
        corners = []
        for (oi, oj, ok) in _CORNERS:
            h = (((bli[:, 0] + oi) * _PRIMES_I32[0])
                 ^ ((bli[:, 1] + oj) * _PRIMES_I32[1])
                 ^ ((bli[:, 2] + ok) * _PRIMES_I32[2])) & mask
            corners.append(hash_tables[l][h])            # (N, F)
        wx, wy, wz = w[:, 0:1], w[:, 1:2], w[:, 2:3]
        c00 = corners[0] * (1 - wx) + corners[4] * wx
        c01 = corners[1] * (1 - wx) + corners[5] * wx
        c10 = corners[2] * (1 - wx) + corners[6] * wx
        c11 = corners[3] * (1 - wx) + corners[7] * wx
        c0 = c00 * (1 - wy) + c10 * wy
        c1 = c01 * (1 - wy) + c11 * wy
        outs.append(c0 * (1 - wz) + c1 * wz)
    return jnp.concatenate(outs, axis=-1)


if __name__ == "__main__":
    key = jax.random.PRNGKey(0)
    k_tab, k_x = jax.random.split(key)

    # Small but representative config (module defaults, smaller hash table).
    n_levels = 16
    n_features = 2
    log2_hashmap_size = 16
    base_resolution = 16
    finest_resolution = 512
    box_min = np.array([-1.0, -1.0, -1.0], np.float32)
    box_max = np.array([1.0, 1.0, 1.0], np.float32)
    n_points = 1000            # -> 2 point tiles of 512 (exercises the parallel grid axis)

    T = 1 << log2_hashmap_size
    hash_tables = jax.random.uniform(k_tab, (n_levels, T, n_features), jnp.float32,
                                     minval=-1e-4, maxval=1e-4)
    x = jax.random.uniform(k_x, (n_points, 3), jnp.float32, minval=-0.95, maxval=0.95)

    forward = make_hash_embedding_forward(
        (box_min, box_max), n_levels=n_levels, n_features_per_level=n_features,
        log2_hashmap_size=log2_hashmap_size, base_resolution=base_resolution,
        finest_resolution=finest_resolution, tile_n=512)

    out = jax.block_until_ready(forward(x, hash_tables))
    assert out.shape == (n_points, n_levels * n_features)

    ref = jax.jit(lambda xx, tt: hash_embedding_ref(
        xx, tt, box_min, box_max, n_levels, log2_hashmap_size,
        base_resolution, finest_resolution))(x, hash_tables)
    ref = jax.block_until_ready(ref)

    np.testing.assert_allclose(np.asarray(out), np.asarray(ref), rtol=1e-5, atol=1e-6)
    print("KERNEL_OK")
</pallas_src>

<mosaic_0001>
module attributes {stable_mosaic.version = 11 : i64} {
  func.func private @main(%arg0: i32) attributes {dimension_semantics = [#tpu.dimension_semantics<core_parallel>], iteration_bounds = array<i64: 2>, tpu.core_type = #tpu.core_type<sc_scalar_subcore>, window_params = []} {
    return
  }
}

module attributes {stable_mosaic.version = 11 : i64} {
  func.func private @main(%arg0: i32) attributes {dimension_semantics = [#tpu.dimension_semantics<core_parallel>], iteration_bounds = array<i64: 2>, tpu.core_type = #tpu.core_type<sc_scalar_subcore>, window_params = []} {
    return
  }
}

module attributes {stable_mosaic.version = 11 : i64} {
  func.func @kernel(%arg0: i32, %arg1: memref<3x512xf32, #tpu.memory_space<vmem>>, %arg2: memref<3x16x1xf32, #tpu.memory_space<vmem>>, %arg3: memref<3x16x1xf32, #tpu.memory_space<vmem>>, %arg4: memref<8x16x512xi32, #tpu.memory_space<vmem>>, %arg5: memref<3x16x512xf32, #tpu.memory_space<vmem>>) attributes {dimension_semantics = [#tpu.dimension_semantics<parallel>], iteration_bounds = array<i64: 2>, scalar_prefetch = 0 : i64, scratch_operands = 0 : i64, tpu.core_type = #tpu.core_type<tc>, window_params = [{transform_indices = @transform_0, window_bounds = array<i64: 3, 512>}, {pipeline_mode = #tpu.pipeline_mode<synchronous>, transform_indices = @transform_1, window_bounds = array<i64: 3, 16, 1>}, {pipeline_mode = #tpu.pipeline_mode<synchronous>, transform_indices = @transform_2, window_bounds = array<i64: 3, 16, 1>}, {transform_indices = @transform_3, window_bounds = array<i64: 8, 16, 512>}, {transform_indices = @transform_4, window_bounds = array<i64: 3, 16, 512>}]} {
    %c0 = arith.constant 0 : index
    %c0_0 = arith.constant 0 : index
    %0 = vector.load %arg1[%c0, %c0_0] : memref<3x512xf32, #tpu.memory_space<vmem>>, vector<1x512xf32>
    %cst = arith.constant -1.000000e+00 : f32
    %cst_1 = arith.constant 1.000000e+00 : f32
    %1 = vector.broadcast %cst : f32 to vector<1x512xf32>
    %2 = arith.maximumf %1, %0 : vector<1x512xf32>
    %3 = vector.broadcast %cst_1 : f32 to vector<1x512xf32>
    %4 = arith.minimumf %3, %2 : vector<1x512xf32>
    %c0_2 = arith.constant 0 : index
    %c0_3 = arith.constant 0 : index
    %c0_4 = arith.constant 0 : index
    %5 = vector.load %arg2[%c0_2, %c0_3, %c0_4] : memref<3x16x1xf32, #tpu.memory_space<vmem>>, vector<1x8x1xf32>
    %6 = vector.shape_cast %5 : vector<1x8x1xf32> to vector<8x1xf32>
    %c0_5 = arith.constant 0 : index
    %c0_6 = arith.constant 0 : index
    %c0_7 = arith.constant 0 : index
    %7 = vector.load %arg3[%c0_5, %c0_6, %c0_7] : memref<3x16x1xf32, #tpu.memory_space<vmem>>, vector<1x8x1xf32>
    %8 = vector.shape_cast %7 : vector<1x8x1xf32> to vector<8x1xf32>
    %cst_8 = arith.constant -1.000000e+00 : f32
    %9 = vector.broadcast %cst_8 : f32 to vector<1x512xf32>
    %10 = arith.subf %4, %9 : vector<1x512xf32>
    %11 = vector.broadcast %10 : vector<1x512xf32> to vector<8x512xf32>
    %12 = vector.broadcast %8 : vector<8x1xf32> to vector<8x512xf32>
    %13 = arith.mulf %11, %12 : vector<8x512xf32>
    %14 = math.floor %13 : vector<8x512xf32>
    %15 = vector.broadcast %6 : vector<8x1xf32> to vector<8x512xf32>
    %16 = arith.mulf %14, %15 : vector<8x512xf32>
    %cst_9 = arith.constant -1.000000e+00 : f32
    %17 = vector.broadcast %cst_9 : f32 to vector<8x512xf32>
    %18 = arith.addf %16, %17 : vector<8x512xf32>
    %19 = vector.broadcast %0 : vector<1x512xf32> to vector<8x512xf32>
    %20 = arith.subf %19, %18 : vector<8x512xf32>
    %21 = vector.broadcast %8 : vector<8x1xf32> to vector<8x512xf32>
    %22 = arith.mulf %20, %21 : vector<8x512xf32>
    %c0_10 = arith.constant 0 : index
    %c0_11 = arith.constant 0 : index
    %c0_12 = arith.constant 0 : index
    %23 = vector.load %arg5[%c0_10, %c0_11, %c0_12] : memref<3x16x512xf32, #tpu.memory_space<vmem>>, vector<1x8x512xf32>
    %24 = vector.shape_cast %23 : vector<1x8x512xf32> to vector<8x512xf32>
    %25 = vector.shape_cast %22 : vector<8x512xf32> to vector<1x8x512xf32>
    tpu.vector_store %arg5[%c0_10, %c0_11, %c0_12], %25 {strides = array<i32>} : memref<3x16x512xf32, #tpu.memory_space<vmem>>, vector<1x8x512xf32>,
    %26 = arith.fptosi %14 : vector<8x512xf32> to vector<8x512xi32>
    %c1_i32 = arith.constant 1 : i32
    %27 = vector.broadcast %c1_i32 : i32 to vector<8x512xi32>
    %28 = arith.muli %26, %27 : vector<8x512xi32>
    %c1 = arith.constant 1 : index
    %c0_13 = arith.constant 0 : index
    %29 = vector.load %arg1[%c1, %c0_13] : memref<3x512xf32, #tpu.memory_space<vmem>>, vector<1x512xf32>
    %cst_14 = arith.constant -1.000000e+00 : f32
    %cst_15 = arith.constant 1.000000e+00 : f32
    %30 = vector.broadcast %cst_14 : f32 to vector<1x512xf32>
    %31 = arith.maximumf %30, %29 : vector<1x512xf32>
    %32 = vector.broadcast %cst_15 : f32 to vector<1x512xf32>
    %33 = arith.minimumf %32, %31 : vector<1x512xf32>
    %c1_16 = arith.constant 1 : index
    %c0_17 = arith.constant 0 : index
    %c0_18 = arith.constant 0 : index
    %34 = vector.load %arg2[%c1_16, %c0_17, %c0_18] : memref<3x16x1xf32, #tpu.memory_space<vmem>>, vector<1x8x1xf32>
    %35 = vector.shape_cast %34 : vector<1x8x1xf32> to vector<8x1xf32>
    %c1_19 = arith.constant 1 : index
    %c0_20 = arith.constant 0 : index
    %c0_21 = arith.constant 0 : index
    %36 = vector.load %arg3[%c1_19, %c0_20, %c0_21] : memref<3x16x1xf32, #tpu.memory_space<vmem>>, vector<1x8x1xf32>
    %37 = vector.shape_cast %36 : vector<1x8x1xf32> to vector<8x1xf32>
    %cst_22 = arith.constant -1.000000e+00 : f32
    %38 = vector.broadcast %cst_22 : f32 to vector<1x512xf32>
    %39 = arith.subf %33, %38 : vector<1x512xf32>
    %40 = vector.broadcast %39 : vector<1x512xf32> to vector<8x512xf32>
    %41 = vector.broadcast %37 : vector<8x1xf32> to vector<8x512xf32>
    %42 = arith.mulf %40, %41 : vector<8x512xf32>
    %43 = math.floor %42 : vector<8x512xf32>
    %44 = vector.broadcast %35 : vector<8x1xf32> to vector<8x512xf32>
    %45 = arith.mulf %43, %44 : vector<8x512xf32>
    %cst_23 = arith.constant -1.000000e+00 : f32
    %46 = vector.broadcast %cst_23 : f32 to vector<8x512xf32>
    %47 = arith.addf %45, %46 : vector<8x512xf32>
    %48 = vector.broadcast %29 : vector<1x512xf32> to vector<8x512xf32>
    %49 = arith.subf %48, %47 : vector<8x512xf32>
    %50 = vector.broadcast %37 : vector<8x1xf32> to vector<8x512xf32>
    %51 = arith.mulf %49, %50 : vector<8x512xf32>
    %c1_24 = arith.constant 1 : index
    %c0_25 = arith.constant 0 : index
    %c0_26 = arith.constant 0 : index
    %52 = vector.load %arg5[%c1_24, %c0_25, %c0_26] : memref<3x16x512xf32, #tpu.memory_space<vmem>>, vector<1x8x512xf32>
    %53 = vector.shape_cast %52 : vector<1x8x512xf32> to vector<8x512xf32>
    %54 = vector.shape_cast %51 : vector<8x512xf32> to vector<1x8x512xf32>
    tpu.vector_store %arg5[%c1_24, %c0_25, %c0_26], %54 {strides = array<i32>} : memref<3x16x512xf32, #tpu.memory_space<vmem>>, vector<1x8x512xf32>,
    %55 = arith.fptosi %43 : vector<8x512xf32> to vector<8x512xi32>
    %c-1640531535_i32 = arith.constant -1640531535 : i32
    %56 = vector.broadcast %c-1640531535_i32 : i32 to vector<8x512xi32>
    %57 = arith.muli %55, %56 : vector<8x512xi32>
    %c2 = arith.constant 2 : index
    %c0_27 = arith.constant 0 : index
    %58 = vector.load %arg1[%c2, %c0_27] : memref<3x512xf32, #tpu.memory_space<vmem>>, vector<1x512xf32>
    %cst_28 = arith.constant -1.000000e+00 : f32
    %cst_29 = arith.constant 1.000000e+00 : f32
    %59 = vector.broadcast %cst_28 : f32 to vector<1x512xf32>
    %60 = arith.maximumf %59, %58 : vector<1x512xf32>
    %61 = vector.broadcast %cst_29 : f32 to vector<1x512xf32>
    %62 = arith.minimumf %61, %60 : vector<1x512xf32>
    %c2_30 = arith.constant 2 : index
    %c0_31 = arith.constant 0 : index
    %c0_32 = arith.constant 0 : index
    %63 = vector.load %arg2[%c2_30, %c0_31, %c0_32] : memref<3x16x1xf32, #tpu.memory_space<vmem>>, vector<1x8x1xf32>
    %64 = vector.shape_cast %63 : vector<1x8x1xf32> to vector<8x1xf32>
    %c2_33 = arith.constant 2 : index
    %c0_34 = arith.constant 0 : index
    %c0_35 = arith.constant 0 : index
    %65 = vector.load %arg3[%c2_33, %c0_34, %c0_35] : memref<3x16x1xf32, #tpu.memory_space<vmem>>, vector<1x8x1xf32>
    %66 = vector.shape_cast %65 : vector<1x8x1xf32> to vector<8x1xf32>
    %cst_36 = arith.constant -1.000000e+00 : f32
    %67 = vector.broadcast %cst_36 : f32 to vector<1x512xf32>
    %68 = arith.subf %62, %67 : vector<1x512xf32>
    %69 = vector.broadcast %68 : vector<1x512xf32> to vector<8x512xf32>
    %70 = vector.broadcast %66 : vector<8x1xf32> to vector<8x512xf32>
    %71 = arith.mulf %69, %70 : vector<8x512xf32>
    %72 = math.floor %71 : vector<8x512xf32>
    %73 = vector.broadcast %64 : vector<8x1xf32> to vector<8x512xf32>
    %74 = arith.mulf %72, %73 : vector<8x512xf32>
    %cst_37 = arith.constant -1.000000e+00 : f32
    %75 = vector.broadcast %cst_37 : f32 to vector<8x512xf32>
    %76 = arith.addf %74, %75 : vector<8x512xf32>
    %77 = vector.broadcast %58 : vector<1x512xf32> to vector<8x512xf32>
    %78 = arith.subf %77, %76 : vector<8x512xf32>
    %79 = vector.broadcast %66 : vector<8x1xf32> to vector<8x512xf32>
    %80 = arith.mulf %78, %79 : vector<8x512xf32>
    %c2_38 = arith.constant 2 : index
    %c0_39 = arith.constant 0 : index
    %c0_40 = arith.constant 0 : index
    %81 = vector.load %arg5[%c2_38, %c0_39, %c0_40] : memref<3x16x512xf32, #tpu.memory_space<vmem>>, vector<1x8x512xf32>
    %82 = vector.shape_cast %81 : vector<1x8x512xf32> to vector<8x512xf32>
    %83 = vector.shape_cast %80 : vector<8x512xf32> to vector<1x8x512xf32>
    tpu.vector_store %arg5[%c2_38, %c0_39, %c0_40], %83 {strides = array<i32>} : memref<3x16x512xf32, #tpu.memory_space<vmem>>, vector<1x8x512xf32>,
    %84 = arith.fptosi %72 : vector<8x512xf32> to vector<8x512xi32>
    %c805459861_i32 = arith.constant 805459861 : i32
    %85 = vector.broadcast %c805459861_i32 : i32 to vector<8x512xi32>
    %86 = arith.muli %84, %85 : vector<8x512xi32>
    %87 = tpu.iota {dimensions = array<i32: 0>} : vector<8x512xi32>
    %c0_i32 = arith.constant 0 : i32
    %88 = vector.broadcast %c0_i32 : i32 to vector<8x512xi32>
    %89 = arith.addi %88, %87 : vector<8x512xi32>
    %c65536_i32 = arith.constant 65536 : i32
    %90 = vector.broadcast %c65536_i32 : i32 to vector<8x512xi32>
    %91 = arith.muli %89, %90 : vector<8x512xi32>
    %92 = arith.xori %28, %57 : vector<8x512xi32>
    %93 = arith.xori %92, %86 : vector<8x512xi32>
    %c65535_i32 = arith.constant 65535 : i32
    %94 = vector.broadcast %c65535_i32 : i32 to vector<8x512xi32>
    %95 = arith.andi %93, %94 : vector<8x512xi32>
    %96 = arith.addi %95, %91 : vector<8x512xi32>
    %c0_41 = arith.constant 0 : index
    %c0_42 = arith.constant 0 : index
    %c0_43 = arith.constant 0 : index
    %97 = vector.load %arg4[%c0_41, %c0_42, %c0_43] : memref<8x16x512xi32, #tpu.memory_space<vmem>>, vector<1x8x512xi32>
    %98 = vector.shape_cast %97 : vector<1x8x512xi32> to vector<8x512xi32>
    %99 = vector.shape_cast %96 : vector<8x512xi32> to vector<1x8x512xi32>
    tpu.vector_store %arg4[%c0_41, %c0_42, %c0_43], %99 {strides = array<i32>} : memref<8x16x512xi32, #tpu.memory_space<vmem>>, vector<1x8x512xi32>,
    %c805459861_i32_44 = arith.constant 805459861 : i32
    %100 = vector.broadcast %c805459861_i32_44 : i32 to vector<8x512xi32>
    %101 = arith.addi %86, %100 : vector<8x512xi32>
    %102 = arith.xori %28, %57 : vector<8x512xi32>
    %103 = arith.xori %102, %101 : vector<8x512xi32>
    %c65535_i32_45 = arith.constant 65535 : i32
    %104 = vector.broadcast %c65535_i32_45 : i32 to vector<8x512xi32>
    %105 = arith.andi %103, %104 : vector<8x512xi32>
    %106 = arith.addi %105, %91 : vector<8x512xi32>
    %c1_46 = arith.constant 1 : index
    %c0_47 = arith.constant 0 : index
    %c0_48 = arith.constant 0 : index
    %107 = vector.load %arg4[%c1_46, %c0_47, %c0_48] : memref<8x16x512xi32, #tpu.memory_space<vmem>>, vector<1x8x512xi32>
    %108 = vector.shape_cast %107 : vector<1x8x512xi32> to vector<8x512xi32>
    %109 = vector.shape_cast %106 : vector<8x512xi32> to vector<1x8x512xi32>
    tpu.vector_store %arg4[%c1_46, %c0_47, %c0_48], %109 {strides = array<i32>} : memref<8x16x512xi32, #tpu.memory_space<vmem>>, vector<1x8x512xi32>,
    %c-1640531535_i32_49 = arith.constant -1640531535 : i32
    %110 = vector.broadcast %c-1640531535_i32_49 : i32 to vector<8x512xi32>
    %111 = arith.addi %57, %110 : vector<8x512xi32>
    %112 = arith.xori %28, %111 : vector<8x512xi32>
    %113 = arith.xori %112, %86 : vector<8x512xi32>
    %c65535_i32_50 = arith.constant 65535 : i32
    %114 = vector.broadcast %c65535_i32_50 : i32 to vector<8x512xi32>
    %115 = arith.andi %113, %114 : vector<8x512xi32>
    %116 = arith.addi %115, %91 : vector<8x512xi32>
    %c2_51 = arith.constant 2 : index
    %c0_52 = arith.constant 0 : index
    %c0_53 = arith.constant 0 : index
    %117 = vector.load %arg4[%c2_51, %c0_52, %c0_53] : memref<8x16x512xi32, #tpu.memory_space<vmem>>, vector<1x8x512xi32>
    %118 = vector.shape_cast %117 : vector<1x8x512xi32> to vector<8x512xi32>
    %119 = vector.shape_cast %116 : vector<8x512xi32> to vector<1x8x512xi32>
    tpu.vector_store %arg4[%c2_51, %c0_52, %c0_53], %119 {strides = array<i32>} : memref<8x16x512xi32, #tpu.memory_space<vmem>>, vector<1x8x512xi32>,
    %c-1640531535_i32_54 = arith.constant -1640531535 : i32
    %120 = vector.broadcast %c-1640531535_i32_54 : i32 to vector<8x512xi32>
    %121 = arith.addi %57, %120 : vector<8x512xi32>
    %c805459861_i32_55 = arith.constant 805459861 : i32
    %122 = vector.broadcast %c805459861_i32_55 : i32 to vector<8x512xi32>
    %123 = arith.addi %86, %122 : vector<8x512xi32>
    %124 = arith.xori %28, %121 : vector<8x512xi32>
    %125 = arith.xori %124, %123 : vector<8x512xi32>
    %c65535_i32_56 = arith.constant 65535 : i32
    %126 = vector.broadcast %c65535_i32_56 : i32 to vector<8x512xi32>
    %127 = arith.andi %125, %126 : vector<8x512xi32>
    %128 = arith.addi %127, %91 : vector<8x512xi32>
    %c3 = arith.constant 3 : index
    %c0_57 = arith.constant 0 : index
    %c0_58 = arith.constant 0 : index
    %129 = vector.load %arg4[%c3, %c0_57, %c0_58] : memref<8x16x512xi32, #tpu.memory_space<vmem>>, vector<1x8x512xi32>
    %130 = vector.shape_cast %129 : vector<1x8x512xi32> to vector<8x512xi32>
    %131 = vector.shape_cast %128 : vector<8x512xi32> to vector<1x8x512xi32>
    tpu.vector_store %arg4[%c3, %c0_57, %c0_58], %131 {strides = array<i32>} : memref<8x16x512xi32, #tpu.memory_space<vmem>>, vector<1x8x512xi32>,
    %c1_i32_59 = arith.constant 1 : i32
    %132 = vector.broadcast %c1_i32_59 : i32 to vector<8x512xi32>
    %133 = arith.addi %28, %132 : vector<8x512xi32>
    %134 = arith.xori %133, %57 : vector<8x512xi32>
    %135 = arith.xori %134, %86 : vector<8x512xi32>
    %c65535_i32_60 = arith.constant 65535 : i32
    %136 = vector.broadcast %c65535_i32_60 : i32 to vector<8x512xi32>
    %137 = arith.andi %135, %136 : vector<8x512xi32>
    %138 = arith.addi %137, %91 : vector<8x512xi32>
    %c4 = arith.constant 4 : index
    %c0_61 = arith.constant 0 : index
    %c0_62 = arith.constant 0 : index
    %139 = vector.load %arg4[%c4, %c0_61, %c0_62] : memref<8x16x512xi32, #tpu.memory_space<vmem>>, vector<1x8x512xi32>
    %140 = vector.shape_cast %139 : vector<1x8x512xi32> to vector<8x512xi32>
    %141 = vector.shape_cast %138 : vector<8x512xi32> to vector<1x8x512xi32>
    tpu.vector_store %arg4[%c4, %c0_61, %c0_62], %141 {strides = array<i32>} : memref<8x16x512xi32, #tpu.memory_space<vmem>>, vector<1x8x512xi32>,
    %c1_i32_63 = arith.constant 1 : i32
    %142 = vector.broadcast %c1_i32_63 : i32 to vector<8x512xi32>
    %143 = arith.addi %28, %142 : vector<8x512xi32>
    %c805459861_i32_64 = arith.constant 805459861 : i32
    %144 = vector.broadcast %c805459861_i32_64 : i32 to vector<8x512xi32>
    %145 = arith.addi %86, %144 : vector<8x512xi32>
    %146 = arith.xori %143, %57 : vector<8x512xi32>
    %147 = arith.xori %146, %145 : vector<8x512xi32>
    %c65535_i32_65 = arith.constant 65535 : i32
    %148 = vector.broadcast %c65535_i32_65 : i32 to vector<8x512xi32>
    %149 = arith.andi %147, %148 : vector<8x512xi32>
    %150 = arith.addi %149, %91 : vector<8x512xi32>
    %c5 = arith.constant 5 : index
    %c0_66 = arith.constant 0 : index
    %c0_67 = arith.constant 0 : index
    %151 = vector.load %arg4[%c5, %c0_66, %c0_67] : memref<8x16x512xi32, #tpu.memory_space<vmem>>, vector<1x8x512xi32>
    %152 = vector.shape_cast %151 : vector<1x8x512xi32> to vector<8x512xi32>
    %153 = vector.shape_cast %150 : vector<8x512xi32> to vector<1x8x512xi32>
    tpu.vector_store %arg4[%c5, %c0_66, %c0_67], %153 {strides = array<i32>} : memref<8x16x512xi32, #tpu.memory_space<vmem>>, vector<1x8x512xi32>,
    %c1_i32_68 = arith.constant 1 : i32
    %154 = vector.broadcast %c1_i32_68 : i32 to vector<8x512xi32>
    %155 = arith.addi %28, %154 : vector<8x512xi32>
    %c-1640531535_i32_69 = arith.constant -1640531535 : i32
    %156 = vector.broadcast %c-1640531535_i32_69 : i32 to vector<8x512xi32>
    %157 = arith.addi %57, %156 : vector<8x512xi32>
    %158 = arith.xori %155, %157 : vector<8x512xi32>
    %159 = arith.xori %158, %86 : vector<8x512xi32>
    %c65535_i32_70 = arith.constant 65535 : i32
    %160 = vector.broadcast %c65535_i32_70 : i32 to vector<8x512xi32>
    %161 = arith.andi %159, %160 : vector<8x512xi32>
    %162 = arith.addi %161, %91 : vector<8x512xi32>
    %c6 = arith.constant 6 : index
    %c0_71 = arith.constant 0 : index
    %c0_72 = arith.constant 0 : index
    %163 = vector.load %arg4[%c6, %c0_71, %c0_72] : memref<8x16x512xi32, #tpu.memory_space<vmem>>, vector<1x8x512xi32>
    %164 = vector.shape_cast %163 : vector<1x8x512xi32> to vector<8x512xi32>
    %165 = vector.shape_cast %162 : vector<8x512xi32> to vector<1x8x512xi32>
    tpu.vector_store %arg4[%c6, %c0_71, %c0_72], %165 {strides = array<i32>} : memref<8x16x512xi32, #tpu.memory_space<vmem>>, vector<1x8x512xi32>,
    %c1_i32_73 = arith.constant 1 : i32
    %166 = vector.broadcast %c1_i32_73 : i32 to vector<8x512xi32>
    %167 = arith.addi %28, %166 : vector<8x512xi32>
    %c-1640531535_i32_74 = arith.constant -1640531535 : i32
    %168 = vector.broadcast %c-1640531535_i32_74 : i32 to vector<8x512xi32>
    %169 = arith.addi %57, %168 : vector<8x512xi32>
    %c805459861_i32_75 = arith.constant 805459861 : i32
    %170 = vector.broadcast %c805459861_i32_75 : i32 to vector<8x512xi32>
    %171 = arith.addi %86, %170 : vector<8x512xi32>
    %172 = arith.xori %167, %169 : vector<8x512xi32>
    %173 = arith.xori %172, %171 : vector<8x512xi32>
    %c65535_i32_76 = arith.constant 65535 : i32
    %174 = vector.broadcast %c65535_i32_76 : i32 to vector<8x512xi32>
    %175 = arith.andi %173, %174 : vector<8x512xi32>
    %176 = arith.addi %175, %91 : vector<8x512xi32>
    %c7 = arith.constant 7 : index
    %c0_77 = arith.constant 0 : index
    %c0_78 = arith.constant 0 : index
    %177 = vector.load %arg4[%c7, %c0_77, %c0_78] : memref<8x16x512xi32, #tpu.memory_space<vmem>>, vector<1x8x512xi32>
    %178 = vector.shape_cast %177 : vector<1x8x512xi32> to vector<8x512xi32>
    %179 = vector.shape_cast %176 : vector<8x512xi32> to vector<1x8x512xi32>
    tpu.vector_store %arg4[%c7, %c0_77, %c0_78], %179 {strides = array<i32>} : memref<8x16x512xi32, #tpu.memory_space<vmem>>, vector<1x8x512xi32>,
    %c0_79 = arith.constant 0 : index
    %c0_80 = arith.constant 0 : index
    %180 = vector.load %arg1[%c0_79, %c0_80] : memref<3x512xf32, #tpu.memory_space<vmem>>, vector<1x512xf32>
    %cst_81 = arith.constant -1.000000e+00 : f32
    %cst_82 = arith.constant 1.000000e+00 : f32
    %181 = vector.broadcast %cst_81 : f32 to vector<1x512xf32>
    %182 = arith.maximumf %181, %180 : vector<1x512xf32>
    %183 = vector.broadcast %cst_82 : f32 to vector<1x512xf32>
    %184 = arith.minimumf %183, %182 : vector<1x512xf32>
    %c0_83 = arith.constant 0 : index
    %c8 = arith.constant 8 : index
    %c0_84 = arith.constant 0 : index
    %185 = vector.load %arg2[%c0_83, %c8, %c0_84] : memref<3x16x1xf32, #tpu.memory_space<vmem>>, vector<1x8x1xf32>
    %186 = vector.shape_cast %185 : vector<1x8x1xf32> to vector<8x1xf32>
    %c0_85 = arith.constant 0 : index
    %c8_86 = arith.constant 8 : index
    %c0_87 = arith.constant 0 : index
    %187 = vector.load %arg3[%c0_85, %c8_86, %c0_87] : memref<3x16x1xf32, #tpu.memory_space<vmem>>, vector<1x8x1xf32>
    %188 = vector.shape_cast %187 : vector<1x8x1xf32> to vector<8x1xf32>
    %cst_88 = arith.constant -1.000000e+00 : f32
    %189 = vector.broadcast %cst_88 : f32 to vector<1x512xf32>
    %190 = arith.subf %184, %189 : vector<1x512xf32>
    %191 = vector.broadcast %190 : vector<1x512xf32> to vector<8x512xf32>
    %192 = vector.broadcast %188 : vector<8x1xf32> to vector<8x512xf32>
    %193 = arith.mulf %191, %192 : vector<8x512xf32>
    %194 = math.floor %193 : vector<8x512xf32>
    %195 = vector.broadcast %186 : vector<8x1xf32> to vector<8x512xf32>
    %196 = arith.mulf %194, %195 : vector<8x512xf32>
    %cst_89 = arith.constant -1.000000e+00 : f32
    %197 = vector.broadcast %cst_89 : f32 to vector<8x512xf32>
    %198 = arith.addf %196, %197 : vector<8x512xf32>
    %199 = vector.broadcast %180 : vector<1x512xf32> to vector<8x512xf32>
    %200 = arith.subf %199, %198 : vector<8x512xf32>
    %201 = vector.broadcast %188 : vector<8x1xf32> to vector<8x512xf32>
    %202 = arith.mulf %200, %201 : vector<8x512xf32>
    %c0_90 = arith.constant 0 : index
    %c8_91 = arith.constant 8 : index
    %c0_92 = arith.constant 0 : index
    %203 = vector.load %arg5[%c0_90, %c8_91, %c0_92] : memref<3x16x512xf32, #tpu.memory_space<vmem>>, vector<1x8x512xf32>
    %204 = vector.shape_cast %203 : vector<1x8x512xf32> to vector<8x512xf32>
    %205 = vector.shape_cast %202 : vector<8x512xf32> to vector<1x8x512xf32>
    tpu.vector_store %arg5[%c0_90, %c8_91, %c0_92], %205 {strides = array<i32>} : memref<3x16x512xf32, #tpu.memory_space<vmem>>, vector<1x8x512xf32>,
    %206 = arith.fptosi %194 : vector<8x512xf32> to vector<8x512xi32>
    %c1_i32_93 = arith.constant 1 : i32
    %207 = vector.broadcast %c1_i32_93 : i32 to vector<8x512xi32>
    %208 = arith.muli %206, %207 : vector<8x512xi32>
    %c1_94 = arith.constant 1 : index
    %c0_95 = arith.constant 0 : index
    %209 = vector.load %arg1[%c1_94, %c0_95] : memref<3x512xf32, #tpu.memory_space<vmem>>, vector<1x512xf32>
    %cst_96 = arith.constant -1.000000e+00 : f32
    %cst_97 = arith.constant 1.000000e+00 : f32
    %210 = vector.broadcast %cst_96 : f32 to vector<1x512xf32>
    %211 = arith.maximumf %210, %209 : vector<1x512xf32>
    %212 = vector.broadcast %cst_97 : f32 to vector<1x512xf32>
    %213 = arith.minimumf %212, %211 : vector<1x512xf32>
    %c1_98 = arith.constant 1 : index
    %c8_99 = arith.constant 8 : index
    %c0_100 = arith.constant 0 : index
    %214 = vector.load %arg2[%c1_98, %c8_99, %c0_100] : memref<3x16x1xf32, #tpu.memory_space<vmem>>, vector<1x8x1xf32>
    %215 = vector.shape_cast %214 : vector<1x8x1xf32> to vector<8x1xf32>
    %c1_101 = arith.constant 1 : index
    %c8_102 = arith.constant 8 : index
    %c0_103 = arith.constant 0 : index
    %216 = vector.load %arg3[%c1_101, %c8_102, %c0_103] : memref<3x16x1xf32, #tpu.memory_space<vmem>>, vector<1x8x1xf32>
    %217 = vector.shape_cast %216 : vector<1x8x1xf32> to vector<8x1xf32>
    %cst_104 = arith.constant -1.000000e+00 : f32
    %218 = vector.broadcast %cst_104 : f32 to vector<1x512xf32>
    %219 = arith.subf %213, %218 : vector<1x512xf32>
    %220 = vector.broadcast %219 : vector<1x512xf32> to vector<8x512xf32>
    %221 = vector.broadcast %217 : vector<8x1xf32> to vector<8x512xf32>
    %222 = arith.mulf %220, %221 : vector<8x512xf32>
    %223 = math.floor %222 : vector<8x512xf32>
    %224 = vector.broadcast %215 : vector<8x1xf32> to vector<8x512xf32>
    %225 = arith.mulf %223, %224 : vector<8x512xf32>
    %cst_105 = arith.constant -1.000000e+00 : f32
    %226 = vector.broadcast %cst_105 : f32 to vector<8x512xf32>
    %227 = arith.addf %225, %226 : vector<8x512xf32>
    %228 = vector.broadcast %209 : vector<1x512xf32> to vector<8x512xf32>
    %229 = arith.subf %228, %227 : vector<8x512xf32>
    %230 = vector.broadcast %217 : vector<8x1xf32> to vector<8x512xf32>
    %231 = arith.mulf %229, %230 : vector<8x512xf32>
    %c1_106 = arith.constant 1 : index
    %c8_107 = arith.constant 8 : index
    %c0_108 = arith.constant 0 : index
    %232 = vector.load %arg5[%c1_106, %c8_107, %c0_108] : memref<3x16x512xf32, #tpu.memory_space<vmem>>, vector<1x8x512xf32>
    %233 = vector.shape_cast %232 : vector<1x8x512xf32> to vector<8x512xf32>
    %234 = vector.shape_cast %231 : vector<8x512xf32> to vector<1x8x512xf32>
    tpu.vector_store %arg5[%c1_106, %c8_107, %c0_108], %234 {strides = array<i32>} : memref<3x16x512xf32, #tpu.memory_space<vmem>>, vector<1x8x512xf32>,
    %235 = arith.fptosi %223 : vector<8x512xf32> to vector<8x512xi32>
    %c-1640531535_i32_109 = arith.constant -1640531535 : i32
    %236 = vector.broadcast %c-1640531535_i32_109 : i32 to vector<8x512xi32>
    %237 = arith.muli %235, %236 : vector<8x512xi32>
    %c2_110 = arith.constant 2 : index
    %c0_111 = arith.constant 0 : index
    %238 = vector.load %arg1[%c2_110, %c0_111] : memref<3x512xf32, #tpu.memory_space<vmem>>, vector<1x512xf32>
    %cst_112 = arith.constant -1.000000e+00 : f32
    %cst_113 = arith.constant 1.000000e+00 : f32
    %239 = vector.broadcast %cst_112 : f32 to vector<1x512xf32>
    %240 = arith.maximumf %239, %238 : vector<1x512xf32>
    %241 = vector.broadcast %cst_113 : f32 to vector<1x512xf32>
    %242 = arith.minimumf %241, %240 : vector<1x512xf32>
    %c2_114 = arith.constant 2 : index
    %c8_115 = arith.constant 8 : index
    %c0_116 = arith.constant 0 : index
    %243 = vector.load %arg2[%c2_114, %c8_115, %c0_116] : memref<3x16x1xf32, #tpu.memory_space<vmem>>, vector<1x8x1xf32>
    %244 = vector.shape_cast %243 : vector<1x8x1xf32> to vector<8x1xf32>
    %c2_117 = arith.constant 2 : index
    %c8_118 = arith.constant 8 : index
    %c0_119 = arith.constant 0 : index
    %245 = vector.load %arg3[%c2_117, %c8_118, %c0_119] : memref<3x16x1xf32, #tpu.memory_space<vmem>>, vector<1x8x1xf32>
    %246 = vector.shape_cast %245 : vector<1x8x1xf32> to vector<8x1xf32>
    %cst_120 = arith.constant -1.000000e+00 : f32
    %247 = vector.broadcast %cst_120 : f32 to vector<1x512xf32>
    %248 = arith.subf %242, %247 : vector<1x512xf32>
    %249 = vector.broadcast %248 : vector<1x512xf32> to vector<8x512xf32>
    %250 = vector.broadcast %246 : vector<8x1xf32> to vector<8x512xf32>
    %251 = arith.mulf %249, %250 : vector<8x512xf32>
    %252 = math.floor %251 : vector<8x512xf32>
    %253 = vector.broadcast %244 : vector<8x1xf32> to vector<8x512xf32>
    %254 = arith.mulf %252, %253 : vector<8x512xf32>
    %cst_121 = arith.constant -1.000000e+00 : f32
    %255 = vector.broadcast %cst_121 : f32 to vector<8x512xf32>
    %256 = arith.addf %254, %255 : vector<8x512xf32>
    %257 = vector.broadcast %238 : vector<1x512xf32> to vector<8x512xf32>
    %258 = arith.subf %257, %256 : vector<8x512xf32>
    %259 = vector.broadcast %246 : vector<8x1xf32> to vector<8x512xf32>
    %260 = arith.mulf %258, %259 : vector<8x512xf32>
    %c2_122 = arith.constant 2 : index
    %c8_123 = arith.constant 8 : index
    %c0_124 = arith.constant 0 : index
    %261 = vector.load %arg5[%c2_122, %c8_123, %c0_124] : memref<3x16x512xf32, #tpu.memory_space<vmem>>, vector<1x8x512xf32>
    %262 = vector.shape_cast %261 : vector<1x8x512xf32> to vector<8x512xf32>
    %263 = vector.shape_cast %260 : vector<8x512xf32> to vector<1x8x512xf32>
    tpu.vector_store %arg5[%c2_122, %c8_123, %c0_124], %263 {strides = array<i32>} : memref<3x16x512xf32, #tpu.memory_space<vmem>>, vector<1x8x512xf32>,
    %264 = arith.fptosi %252 : vector<8x512xf32> to vector<8x512xi32>
    %c805459861_i32_125 = arith.constant 805459861 : i32
    %265 = vector.broadcast %c805459861_i32_125 : i32 to vector<8x512xi32>
    %266 = arith.muli %264, %265 : vector<8x512xi32>
    %267 = tpu.iota {dimensions = array<i32: 0>} : vector<8x512xi32>
    %c8_i32 = arith.constant 8 : i32
    %268 = vector.broadcast %c8_i32 : i32 to vector<8x512xi32>
    %269 = arith.addi %268, %267 : vector<8x512xi32>
    %c65536_i32_126 = arith.constant 65536 : i32
    %270 = vector.broadcast %c65536_i32_126 : i32 to vector<8x512xi32>
    %271 = arith.muli %269, %270 : vector<8x512xi32>
    %272 = arith.xori %208, %237 : vector<8x512xi32>
    %273 = arith.xori %272, %266 : vector<8x512xi32>
    %c65535_i32_127 = arith.constant 65535 : i32
    %274 = vector.broadcast %c65535_i32_127 : i32 to vector<8x512xi32>
    %275 = arith.andi %273, %274 : vector<8x512xi32>
    %276 = arith.addi %275, %271 : vector<8x512xi32>
    %c0_128 = arith.constant 0 : index
    %c8_129 = arith.constant 8 : index
    %c0_130 = arith.constant 0 : index
    %277 = vector.load %arg4[%c0_128, %c8_129, %c0_130] : memref<8x16x512xi32, #tpu.memory_space<vmem>>, vector<1x8x512xi32>
    %278 = vector.shape_cast %277 : vector<1x8x512xi32> to vector<8x512xi32>
    %279 = vector.shape_cast %276 : vector<8x512xi32> to vector<1x8x512xi32>
    tpu.vector_store %arg4[%c0_128, %c8_129, %c0_130], %279 {strides = array<i32>} : memref<8x16x512xi32, #tpu.memory_space<vmem>>, vector<1x8x512xi32>,
    %c805459861_i32_131 = arith.constant 805459861 : i32
    %280 = vector.broadcast %c805459861_i32_131 : i32 to vector<8x512xi32>
    %281 = arith.addi %266, %280 : vector<8x512xi32>
    %282 = arith.xori %208, %237 : vector<8x512xi32>
    %283 = arith.xori %282, %281 : vector<8x512xi32>
    %c65535_i32_132 = arith.constant 65535 : i32
    %284 = vector.broadcast %c65535_i32_132 : i32 to vector<8x512xi32>
    %285 = arith.andi %283, %284 : vector<8x512xi32>
    %286 = arith.addi %285, %271 : vector<8x512xi32>
    %c1_133 = arith.constant 1 : index
    %c8_134 = arith.constant 8 : index
    %c0_135 = arith.constant 0 : index
    %287 = vector.load %arg4[%c1_133, %c8_134, %c0_135] : memref<8x16x512xi32, #tpu.memory_space<vmem>>, vector<1x8x512xi32>
    %288 = vector.shape_cast %287 : vector<1x8x512xi32> to vector<8x512xi32>
    %289 = vector.shape_cast %286 : vector<8x512xi32> to vector<1x8x512xi32>
    tpu.vector_store %arg4[%c1_133, %c8_134, %c0_135], %289 {strides = array<i32>} : memref<8x16x512xi32, #tpu.memory_space<vmem>>, vector<1x8x512xi32>,
    %c-1640531535_i32_136 = arith.constant -1640531535 : i32
    %290 = vector.broadcast %c-1640531535_i32_136 : i32 to vector<8x512xi32>
    %291 = arith.addi %237, %290 : vector<8x512xi32>
    %292 = arith.xori %208, %291 : vector<8x512xi32>
    %293 = arith.xori %292, %266 : vector<8x512xi32>
    %c65535_i32_137 = arith.constant 65535 : i32
    %294 = vector.broadcast %c65535_i32_137 : i32 to vector<8x512xi32>
    %295 = arith.andi %293, %294 : vector<8x512xi32>
    %296 = arith.addi %295, %271 : vector<8x512xi32>
    %c2_138 = arith.constant 2 : index
    %c8_139 = arith.constant 8 : index
    %c0_140 = arith.constant 0 : index
    %297 = vector.load %arg4[%c2_138, %c8_139, %c0_140] : memref<8x16x512xi32, #tpu.memory_space<vmem>>, vector<1x8x512xi32>
    %298 = vector.shape_cast %297 : vector<1x8x512xi32> to vector<8x512xi32>
    %299 = vector.shape_cast %296 : vector<8x512xi32> to vector<1x8x512xi32>
    tpu.vector_store %arg4[%c2_138, %c8_139, %c0_140], %299 {strides = array<i32>} : memref<8x16x512xi32, #tpu.memory_space<vmem>>, vector<1x8x512xi32>,
    %c-1640531535_i32_141 = arith.constant -1640531535 : i32
    %300 = vector.broadcast %c-1640531535_i32_141 : i32 to vector<8x512xi32>
    %301 = arith.addi %237, %300 : vector<8x512xi32>
    %c805459861_i32_142 = arith.constant 805459861 : i32
    %302 = vector.broadcast %c805459861_i32_142 : i32 to vector<8x512xi32>
    %303 = arith.addi %266, %302 : vector<8x512xi32>
    %304 = arith.xori %208, %301 : vector<8x512xi32>
    %305 = arith.xori %304, %303 : vector<8x512xi32>
    %c65535_i32_143 = arith.constant 65535 : i32
    %306 = vector.broadcast %c65535_i32_143 : i32 to vector<8x512xi32>
    %307 = arith.andi %305, %306 : vector<8x512xi32>
    %308 = arith.addi %307, %271 : vector<8x512xi32>
    %c3_144 = arith.constant 3 : index
    %c8_145 = arith.constant 8 : index
    %c0_146 = arith.constant 0 : index
    %309 = vector.load %arg4[%c3_144, %c8_145, %c0_146] : memref<8x16x512xi32, #tpu.memory_space<vmem>>, vector<1x8x512xi32>
    %310 = vector.shape_cast %309 : vector<1x8x512xi32> to vector<8x512xi32>
    %311 = vector.shape_cast %308 : vector<8x512xi32> to vector<1x8x512xi32>
    tpu.vector_store %arg4[%c3_144, %c8_145, %c0_146], %311 {strides = array<i32>} : memref<8x16x512xi32, #tpu.memory_space<vmem>>, vector<1x8x512xi32>,
    %c1_i32_147 = arith.constant 1 : i32
    %312 = vector.broadcast %c1_i32_147 : i32 to vector<8x512xi32>
    %313 = arith.addi %208, %312 : vector<8x512xi32>
    %314 = arith.xori %313, %237 : vector<8x512xi32>
    %315 = arith.xori %314, %266 : vector<8x512xi32>
    %c65535_i32_148 = arith.constant 65535 : i32
    %316 = vector.broadcast %c65535_i32_148 : i32 to vector<8x512xi32>
    %317 = arith.andi %315, %316 : vector<8x512xi32>
    %318 = arith.addi %317, %271 : vector<8x512xi32>
    %c4_149 = arith.constant 4 : index
    %c8_150 = arith.constant 8 : index
    %c0_151 = arith.constant 0 : index
    %319 = vector.load %arg4[%c4_149, %c8_150, %c0_151] : memref<8x16x512xi32, #tpu.memory_space<vmem>>, vector<1x8x512xi32>
    %320 = vector.shape_cast %319 : vector<1x8x512xi32> to vector<8x512xi32>
    %321 = vector.shape_cast %318 : vector<8x512xi32> to vector<1x8x512xi32>
    tpu.vector_store %arg4[%c4_149, %c8_150, %c0_151], %321 {strides = array<i32>} : memref<8x16x512xi32, #tpu.memory_space<vmem>>, vector<1x8x512xi32>,
    %c1_i32_152 = arith.constant 1 : i32
    %322 = vector.broadcast %c1_i32_152 : i32 to vector<8x512xi32>
    %323 = arith.addi %208, %322 : vector<8x512xi32>
    %c805459861_i32_153 = arith.constant 805459861 : i32
    %324 = vector.broadcast %c805459861_i32_153 : i32 to vector<8x512xi32>
    %325 = arith.addi %266, %324 : vector<8x512xi32>
    %326 = arith.xori %323, %237 : vector<8x512xi32>
    %327 = arith.xori %326, %325 : vector<8x512xi32>
    %c65535_i32_154 = arith.constant 65535 : i32
    %328 = vector.broadcast %c65535_i32_154 : i32 to vector<8x512xi32>
    %329 = arith.andi %327, %328 : vector<8x512xi32>
    %330 = arith.addi %329, %271 : vector<8x512xi32>
    %c5_155 = arith.constant 5 : index
    %c8_156 = arith.constant 8 : index
    %c0_157 = arith.constant 0 : index
    %331 = vector.load %arg4[%c5_155, %c8_156, %c0_157] : memref<8x16x512xi32, #tpu.memory_space<vmem>>, vector<1x8x512xi32>
    %332 = vector.shape_cast %331 : vector<1x8x512xi32> to vector<8x512xi32>
    %333 = vector.shape_cast %330 : vector<8x512xi32> to vector<1x8x512xi32>
    tpu.vector_store %arg4[%c5_155, %c8_156, %c0_157], %333 {strides = array<i32>} : memref<8x16x512xi32, #tpu.memory_space<vmem>>, vector<1x8x512xi32>,
    %c1_i32_158 = arith.constant 1 : i32
    %334 = vector.broadcast %c1_i32_158 : i32 to vector<8x512xi32>
    %335 = arith.addi %208, %334 : vector<8x512xi32>
    %c-1640531535_i32_159 = arith.constant -1640531535 : i32
    %336 = vector.broadcast %c-1640531535_i32_159 : i32 to vector<8x512xi32>
    %337 = arith.addi %237, %336 : vector<8x512xi32>
    %338 = arith.xori %335, %337 : vector<8x512xi32>
    %339 = arith.xori %338, %266 : vector<8x512xi32>
    %c65535_i32_160 = arith.constant 65535 : i32
    %340 = vector.broadcast %c65535_i32_160 : i32 to vector<8x512xi32>
    %341 = arith.andi %339, %340 : vector<8x512xi32>
    %342 = arith.addi %341, %271 : vector<8x512xi32>
    %c6_161 = arith.constant 6 : index
    %c8_162 = arith.constant 8 : index
    %c0_163 = arith.constant 0 : index
    %343 = vector.load %arg4[%c6_161, %c8_162, %c0_163] : memref<8x16x512xi32, #tpu.memory_space<vmem>>, vector<1x8x512xi32>
    %344 = vector.shape_cast %343 : vector<1x8x512xi32> to vector<8x512xi32>
    %345 = vector.shape_cast %342 : vector<8x512xi32> to vector<1x8x512xi32>
    tpu.vector_store %arg4[%c6_161, %c8_162, %c0_163], %345 {strides = array<i32>} : memref<8x16x512xi32, #tpu.memory_space<vmem>>, vector<1x8x512xi32>,
    %c1_i32_164 = arith.constant 1 : i32
    %346 = vector.broadcast %c1_i32_164 : i32 to vector<8x512xi32>
    %347 = arith.addi %208, %346 : vector<8x512xi32>
    %c-1640531535_i32_165 = arith.constant -1640531535 : i32
    %348 = vector.broadcast %c-1640531535_i32_165 : i32 to vector<8x512xi32>
    %349 = arith.addi %237, %348 : vector<8x512xi32>
    %c805459861_i32_166 = arith.constant 805459861 : i32
    %350 = vector.broadcast %c805459861_i32_166 : i32 to vector<8x512xi32>
    %351 = arith.addi %266, %350 : vector<8x512xi32>
    %352 = arith.xori %347, %349 : vector<8x512xi32>
    %353 = arith.xori %352, %351 : vector<8x512xi32>
    %c65535_i32_167 = arith.constant 65535 : i32
    %354 = vector.broadcast %c65535_i32_167 : i32 to vector<8x512xi32>
    %355 = arith.andi %353, %354 : vector<8x512xi32>
    %356 = arith.addi %355, %271 : vector<8x512xi32>
    %c7_168 = arith.constant 7 : index
    %c8_169 = arith.constant 8 : index
    %c0_170 = arith.constant 0 : index
    %357 = vector.load %arg4[%c7_168, %c8_169, %c0_170] : memref<8x16x512xi32, #tpu.memory_space<vmem>>, vector<1x8x512xi32>
    %358 = vector.shape_cast %357 : vector<1x8x512xi32> to vector<8x512xi32>
    %359 = vector.shape_cast %356 : vector<8x512xi32> to vector<1x8x512xi32>
    tpu.vector_store %arg4[%c7_168, %c8_169, %c0_170], %359 {strides = array<i32>} : memref<8x16x512xi32, #tpu.memory_space<vmem>>, vector<1x8x512xi32>,
    return
  }
  func.func @transform_0(%arg0: i32) -> (i32, i32) {
    %c0_i32 = arith.constant 0 : i32
    %c0_i32_0 = arith.constant 0 : i32
    return %c0_i32, %arg0 : i32, i32
  }
  func.func @transform_1(%arg0: i32) -> (i32, i32, i32) {
    %c0_i32 = arith.constant 0 : i32
    %c0_i32_0 = arith.constant 0 : i32
    %c0_i32_1 = arith.constant 0 : i32
    %c0_i32_2 = arith.constant 0 : i32
    return %c0_i32, %c0_i32_0, %c0_i32_1 : i32, i32, i32
  }
  func.func @transform_2(%arg0: i32) -> (i32, i32, i32) {
    %c0_i32 = arith.constant 0 : i32
    %c0_i32_0 = arith.constant 0 : i32
    %c0_i32_1 = arith.constant 0 : i32
    %c0_i32_2 = arith.constant 0 : i32
    return %c0_i32, %c0_i32_0, %c0_i32_1 : i32, i32, i32
  }
  func.func @transform_3(%arg0: i32) -> (i32, i32, i32) {
    %c0_i32 = arith.constant 0 : i32
    %c0_i32_0 = arith.constant 0 : i32
    %c0_i32_1 = arith.constant 0 : i32
    return %c0_i32, %c0_i32_0, %arg0 : i32, i32, i32
  }
  func.func @transform_4(%arg0: i32) -> (i32, i32, i32) {
    %c0_i32 = arith.constant 0 : i32
    %c0_i32_0 = arith.constant 0 : i32
    %c0_i32_1 = arith.constant 0 : i32
    return %c0_i32, %c0_i32_0, %arg0 : i32, i32, i32
  }
}

module attributes {stable_mosaic.version = 11 : i64} {
  func.func @kernel(%arg0: i32, %arg1: memref<2x8x16x512xf32, #tpu.memory_space<vmem>>, %arg2: memref<3x16x512xf32, #tpu.memory_space<vmem>>, %arg3: memref<2x16x512xf32, #tpu.memory_space<vmem>>) attributes {dimension_semantics = [#tpu.dimension_semantics<parallel>], iteration_bounds = array<i64: 2>, scalar_prefetch = 0 : i64, scratch_operands = 0 : i64, tpu.core_type = #tpu.core_type<tc>, window_params = [{transform_indices = @transform_0, window_bounds = array<i64: 2, 8, 16, 512>}, {transform_indices = @transform_1, window_bounds = array<i64: 3, 16, 512>}, {transform_indices = @transform_2, window_bounds = array<i64: 2, 16, 512>}]} {
    %c0 = arith.constant 0 : index
    %c0_0 = arith.constant 0 : index
    %c0_1 = arith.constant 0 : index
    %0 = vector.load %arg2[%c0, %c0_0, %c0_1] : memref<3x16x512xf32, #tpu.memory_space<vmem>>, vector<1x8x512xf32>
    %1 = vector.shape_cast %0 : vector<1x8x512xf32> to vector<8x512xf32>
    %c1 = arith.constant 1 : index
    %c0_2 = arith.constant 0 : index
    %c0_3 = arith.constant 0 : index
    %2 = vector.load %arg2[%c1, %c0_2, %c0_3] : memref<3x16x512xf32, #tpu.memory_space<vmem>>, vector<1x8x512xf32>
    %3 = vector.shape_cast %2 : vector<1x8x512xf32> to vector<8x512xf32>
    %c2 = arith.constant 2 : index
    %c0_4 = arith.constant 0 : index
    %c0_5 = arith.constant 0 : index
    %4 = vector.load %arg2[%c2, %c0_4, %c0_5] : memref<3x16x512xf32, #tpu.memory_space<vmem>>, vector<1x8x512xf32>
    %5 = vector.shape_cast %4 : vector<1x8x512xf32> to vector<8x512xf32>
    %cst = arith.constant 1.000000e+00 : f32
    %6 = vector.broadcast %cst : f32 to vector<8x512xf32>
    %7 = arith.subf %6, %1 : vector<8x512xf32>
    %cst_6 = arith.constant 1.000000e+00 : f32
    %8 = vector.broadcast %cst_6 : f32 to vector<8x512xf32>
    %9 = arith.subf %8, %3 : vector<8x512xf32>
    %cst_7 = arith.constant 1.000000e+00 : f32
    %10 = vector.broadcast %cst_7 : f32 to vector<8x512xf32>
    %11 = arith.subf %10, %5 : vector<8x512xf32>
    %c0_8 = arith.constant 0 : index
    %c0_9 = arith.constant 0 : index
    %c0_10 = arith.constant 0 : index
    %c0_11 = arith.constant 0 : index
    %12 = vector.load %arg1[%c0_8, %c0_9, %c0_10, %c0_11] : memref<2x8x16x512xf32, #tpu.memory_space<vmem>>, vector<1x1x8x512xf32>
    %13 = vector.shape_cast %12 : vector<1x1x8x512xf32> to vector<8x512xf32>
    %14 = arith.mulf %13, %7 : vector<8x512xf32>
    %c0_12 = arith.constant 0 : index
    %c4 = arith.constant 4 : index
    %c0_13 = arith.constant 0 : index
    %c0_14 = arith.constant 0 : index
    %15 = vector.load %arg1[%c0_12, %c4, %c0_13, %c0_14] : memref<2x8x16x512xf32, #tpu.memory_space<vmem>>, vector<1x1x8x512xf32>
    %16 = vector.shape_cast %15 : vector<1x1x8x512xf32> to vector<8x512xf32>
    %17 = arith.mulf %16, %1 : vector<8x512xf32>
    %18 = arith.addf %14, %17 : vector<8x512xf32>
    %c0_15 = arith.constant 0 : index
    %c1_16 = arith.constant 1 : index
    %c0_17 = arith.constant 0 : index
    %c0_18 = arith.constant 0 : index
    %19 = vector.load %arg1[%c0_15, %c1_16, %c0_17, %c0_18] : memref<2x8x16x512xf32, #tpu.memory_space<vmem>>, vector<1x1x8x512xf32>
    %20 = vector.shape_cast %19 : vector<1x1x8x512xf32> to vector<8x512xf32>
    %21 = arith.mulf %20, %7 : vector<8x512xf32>
    %c0_19 = arith.constant 0 : index
    %c5 = arith.constant 5 : index
    %c0_20 = arith.constant 0 : index
    %c0_21 = arith.constant 0 : index
    %22 = vector.load %arg1[%c0_19, %c5, %c0_20, %c0_21] : memref<2x8x16x512xf32, #tpu.memory_space<vmem>>, vector<1x1x8x512xf32>
    %23 = vector.shape_cast %22 : vector<1x1x8x512xf32> to vector<8x512xf32>
    %24 = arith.mulf %23, %1 : vector<8x512xf32>
    %25 = arith.addf %21, %24 : vector<8x512xf32>
    %c0_22 = arith.constant 0 : index
    %c2_23 = arith.constant 2 : index
    %c0_24 = arith.constant 0 : index
    %c0_25 = arith.constant 0 : index
    %26 = vector.load %arg1[%c0_22, %c2_23, %c0_24, %c0_25] : memref<2x8x16x512xf32, #tpu.memory_space<vmem>>, vector<1x1x8x512xf32>
    %27 = vector.shape_cast %26 : vector<1x1x8x512xf32> to vector<8x512xf32>
    %28 = arith.mulf %27, %7 : vector<8x512xf32>
    %c0_26 = arith.constant 0 : index
    %c6 = arith.constant 6 : index
    %c0_27 = arith.constant 0 : index
    %c0_28 = arith.constant 0 : index
    %29 = vector.load %arg1[%c0_26, %c6, %c0_27, %c0_28] : memref<2x8x16x512xf32, #tpu.memory_space<vmem>>, vector<1x1x8x512xf32>
    %30 = vector.shape_cast %29 : vector<1x1x8x512xf32> to vector<8x512xf32>
    %31 = arith.mulf %30, %1 : vector<8x512xf32>
    %32 = arith.addf %28, %31 : vector<8x512xf32>
    %c0_29 = arith.constant 0 : index
    %c3 = arith.constant 3 : index
    %c0_30 = arith.constant 0 : index
    %c0_31 = arith.constant 0 : index
    %33 = vector.load %arg1[%c0_29, %c3, %c0_30, %c0_31] : memref<2x8x16x512xf32, #tpu.memory_space<vmem>>, vector<1x1x8x512xf32>
    %34 = vector.shape_cast %33 : vector<1x1x8x512xf32> to vector<8x512xf32>
    %35 = arith.mulf %34, %7 : vector<8x512xf32>
    %c0_32 = arith.constant 0 : index
    %c7 = arith.constant 7 : index
    %c0_33 = arith.constant 0 : index
    %c0_34 = arith.constant 0 : index
    %36 = vector.load %arg1[%c0_32, %c7, %c0_33, %c0_34] : memref<2x8x16x512xf32, #tpu.memory_space<vmem>>, vector<1x1x8x512xf32>
    %37 = vector.shape_cast %36 : vector<1x1x8x512xf32> to vector<8x512xf32>
    %38 = arith.mulf %37, %1 : vector<8x512xf32>
    %39 = arith.addf %35, %38 : vector<8x512xf32>
    %40 = arith.mulf %18, %9 : vector<8x512xf32>
    %41 = arith.mulf %32, %3 : vector<8x512xf32>
    %42 = arith.addf %40, %41 : vector<8x512xf32>
    %43 = arith.mulf %25, %9 : vector<8x512xf32>
    %44 = arith.mulf %39, %3 : vector<8x512xf32>
    %45 = arith.addf %43, %44 : vector<8x512xf32>
    %46 = arith.mulf %42, %11 : vector<8x512xf32>
    %47 = arith.mulf %45, %5 : vector<8x512xf32>
    %48 = arith.addf %46, %47 : vector<8x512xf32>
    %c0_35 = arith.constant 0 : index
    %c0_36 = arith.constant 0 : index
    %c0_37 = arith.constant 0 : index
    %49 = vector.load %arg3[%c0_35, %c0_36, %c0_37] : memref<2x16x512xf32, #tpu.memory_space<vmem>>, vector<1x8x512xf32>
    %50 = vector.shape_cast %49 : vector<1x8x512xf32> to vector<8x512xf32>
    %51 = vector.shape_cast %48 : vector<8x512xf32> to vector<1x8x512xf32>
    tpu.vector_store %arg3[%c0_35, %c0_36, %c0_37], %51 {strides = array<i32>} : memref<2x16x512xf32, #tpu.memory_space<vmem>>, vector<1x8x512xf32>,
    %c1_38 = arith.constant 1 : index
    %c0_39 = arith.constant 0 : index
    %c0_40 = arith.constant 0 : index
    %c0_41 = arith.constant 0 : index
    %52 = vector.load %arg1[%c1_38, %c0_39, %c0_40, %c0_41] : memref<2x8x16x512xf32, #tpu.memory_space<vmem>>, vector<1x1x8x512xf32>
    %53 = vector.shape_cast %52 : vector<1x1x8x512xf32> to vector<8x512xf32>
    %54 = arith.mulf %53, %7 : vector<8x512xf32>
    %c1_42 = arith.constant 1 : index
    %c4_43 = arith.constant 4 : index
    %c0_44 = arith.constant 0 : index
    %c0_45 = arith.constant 0 : index
    %55 = vector.load %arg1[%c1_42, %c4_43, %c0_44, %c0_45] : memref<2x8x16x512xf32, #tpu.memory_space<vmem>>, vector<1x1x8x512xf32>
    %56 = vector.shape_cast %55 : vector<1x1x8x512xf32> to vector<8x512xf32>
    %57 = arith.mulf %56, %1 : vector<8x512xf32>
    %58 = arith.addf %54, %57 : vector<8x512xf32>
    %c1_46 = arith.constant 1 : index
    %c1_47 = arith.constant 1 : index
    %c0_48 = arith.constant 0 : index
    %c0_49 = arith.constant 0 : index
    %59 = vector.load %arg1[%c1_46, %c1_47, %c0_48, %c0_49] : memref<2x8x16x512xf32, #tpu.memory_space<vmem>>, vector<1x1x8x512xf32>
    %60 = vector.shape_cast %59 : vector<1x1x8x512xf32> to vector<8x512xf32>
    %61 = arith.mulf %60, %7 : vector<8x512xf32>
    %c1_50 = arith.constant 1 : index
    %c5_51 = arith.constant 5 : index
    %c0_52 = arith.constant 0 : index
    %c0_53 = arith.constant 0 : index
    %62 = vector.load %arg1[%c1_50, %c5_51, %c0_52, %c0_53] : memref<2x8x16x512xf32, #tpu.memory_space<vmem>>, vector<1x1x8x512xf32>
    %63 = vector.shape_cast %62 : vector<1x1x8x512xf32> to vector<8x512xf32>
    %64 = arith.mulf %63, %1 : vector<8x512xf32>
    %65 = arith.addf %61, %64 : vector<8x512xf32>
    %c1_54 = arith.constant 1 : index
    %c2_55 = arith.constant 2 : index
    %c0_56 = arith.constant 0 : index
    %c0_57 = arith.constant 0 : index
    %66 = vector.load %arg1[%c1_54, %c2_55, %c0_56, %c0_57] : memref<2x8x16x512xf32, #tpu.memory_space<vmem>>, vector<1x1x8x512xf32>
    %67 = vector.shape_cast %66 : vector<1x1x8x512xf32> to vector<8x512xf32>
    %68 = arith.mulf %67, %7 : vector<8x512xf32>
    %c1_58 = arith.constant 1 : index
    %c6_59 = arith.constant 6 : index
    %c0_60 = arith.constant 0 : index
    %c0_61 = arith.constant 0 : index
    %69 = vector.load %arg1[%c1_58, %c6_59, %c0_60, %c0_61] : memref<2x8x16x512xf32, #tpu.memory_space<vmem>>, vector<1x1x8x512xf32>
    %70 = vector.shape_cast %69 : vector<1x1x8x512xf32> to vector<8x512xf32>
    %71 = arith.mulf %70, %1 : vector<8x512xf32>
    %72 = arith.addf %68, %71 : vector<8x512xf32>
    %c1_62 = arith.constant 1 : index
    %c3_63 = arith.constant 3 : index
    %c0_64 = arith.constant 0 : index
    %c0_65 = arith.constant 0 : index
    %73 = vector.load %arg1[%c1_62, %c3_63, %c0_64, %c0_65] : memref<2x8x16x512xf32, #tpu.memory_space<vmem>>, vector<1x1x8x512xf32>
    %74 = vector.shape_cast %73 : vector<1x1x8x512xf32> to vector<8x512xf32>
    %75 = arith.mulf %74, %7 : vector<8x512xf32>
    %c1_66 = arith.constant 1 : index
    %c7_67 = arith.constant 7 : index
    %c0_68 = arith.constant 0 : index
    %c0_69 = arith.constant 0 : index
    %76 = vector.load %arg1[%c1_66, %c7_67, %c0_68, %c0_69] : memref<2x8x16x512xf32, #tpu.memory_space<vmem>>, vector<1x1x8x512xf32>
    %77 = vector.shape_cast %76 : vector<1x1x8x512xf32> to vector<8x512xf32>
    %78 = arith.mulf %77, %1 : vector<8x512xf32>
    %79 = arith.addf %75, %78 : vector<8x512xf32>
    %80 = arith.mulf %58, %9 : vector<8x512xf32>
    %81 = arith.mulf %72, %3 : vector<8x512xf32>
    %82 = arith.addf %80, %81 : vector<8x512xf32>
    %83 = arith.mulf %65, %9 : vector<8x512xf32>
    %84 = arith.mulf %79, %3 : vector<8x512xf32>
    %85 = arith.addf %83, %84 : vector<8x512xf32>
    %86 = arith.mulf %82, %11 : vector<8x512xf32>
    %87 = arith.mulf %85, %5 : vector<8x512xf32>
    %88 = arith.addf %86, %87 : vector<8x512xf32>
    %c1_70 = arith.constant 1 : index
    %c0_71 = arith.constant 0 : index
    %c0_72 = arith.constant 0 : index
    %89 = vector.load %arg3[%c1_70, %c0_71, %c0_72] : memref<2x16x512xf32, #tpu.memory_space<vmem>>, vector<1x8x512xf32>
    %90 = vector.shape_cast %89 : vector<1x8x512xf32> to vector<8x512xf32>
    %91 = vector.shape_cast %88 : vector<8x512xf32> to vector<1x8x512xf32>
    tpu.vector_store %arg3[%c1_70, %c0_71, %c0_72], %91 {strides = array<i32>} : memref<2x16x512xf32, #tpu.memory_space<vmem>>, vector<1x8x512xf32>,
    %c0_73 = arith.constant 0 : index
    %c8 = arith.constant 8 : index
    %c0_74 = arith.constant 0 : index
    %92 = vector.load %arg2[%c0_73, %c8, %c0_74] : memref<3x16x512xf32, #tpu.memory_space<vmem>>, vector<1x8x512xf32>
    %93 = vector.shape_cast %92 : vector<1x8x512xf32> to vector<8x512xf32>
    %c1_75 = arith.constant 1 : index
    %c8_76 = arith.constant 8 : index
    %c0_77 = arith.constant 0 : index
    %94 = vector.load %arg2[%c1_75, %c8_76, %c0_77] : memref<3x16x512xf32, #tpu.memory_space<vmem>>, vector<1x8x512xf32>
    %95 = vector.shape_cast %94 : vector<1x8x512xf32> to vector<8x512xf32>
    %c2_78 = arith.constant 2 : index
    %c8_79 = arith.constant 8 : index
    %c0_80 = arith.constant 0 : index
    %96 = vector.load %arg2[%c2_78, %c8_79, %c0_80] : memref<3x16x512xf32, #tpu.memory_space<vmem>>, vector<1x8x512xf32>
    %97 = vector.shape_cast %96 : vector<1x8x512xf32> to vector<8x512xf32>
    %cst_81 = arith.constant 1.000000e+00 : f32
    %98 = vector.broadcast %cst_81 : f32 to vector<8x512xf32>
    %99 = arith.subf %98, %93 : vector<8x512xf32>
    %cst_82 = arith.constant 1.000000e+00 : f32
    %100 = vector.broadcast %cst_82 : f32 to vector<8x512xf32>
    %101 = arith.subf %100, %95 : vector<8x512xf32>
    %cst_83 = arith.constant 1.000000e+00 : f32
    %102 = vector.broadcast %cst_83 : f32 to vector<8x512xf32>
    %103 = arith.subf %102, %97 : vector<8x512xf32>
    %c0_84 = arith.constant 0 : index
    %c0_85 = arith.constant 0 : index
    %c8_86 = arith.constant 8 : index
    %c0_87 = arith.constant 0 : index
    %104 = vector.load %arg1[%c0_84, %c0_85, %c8_86, %c0_87] : memref<2x8x16x512xf32, #tpu.memory_space<vmem>>, vector<1x1x8x512xf32>
    %105 = vector.shape_cast %104 : vector<1x1x8x512xf32> to vector<8x512xf32>
    %106 = arith.mulf %105, %99 : vector<8x512xf32>
    %c0_88 = arith.constant 0 : index
    %c4_89 = arith.constant 4 : index
    %c8_90 = arith.constant 8 : index
    %c0_91 = arith.constant 0 : index
    %107 = vector.load %arg1[%c0_88, %c4_89, %c8_90, %c0_91] : memref<2x8x16x512xf32, #tpu.memory_space<vmem>>, vector<1x1x8x512xf32>
    %108 = vector.shape_cast %107 : vector<1x1x8x512xf32> to vector<8x512xf32>
    %109 = arith.mulf %108, %93 : vector<8x512xf32>
    %110 = arith.addf %106, %109 : vector<8x512xf32>
    %c0_92 = arith.constant 0 : index
    %c1_93 = arith.constant 1 : index
    %c8_94 = arith.constant 8 : index
    %c0_95 = arith.constant 0 : index
    %111 = vector.load %arg1[%c0_92, %c1_93, %c8_94, %c0_95] : memref<2x8x16x512xf32, #tpu.memory_space<vmem>>, vector<1x1x8x512xf32>
    %112 = vector.shape_cast %111 : vector<1x1x8x512xf32> to vector<8x512xf32>
    %113 = arith.mulf %112, %99 : vector<8x512xf32>
    %c0_96 = arith.constant 0 : index
    %c5_97 = arith.constant 5 : index
    %c8_98 = arith.constant 8 : index
    %c0_99 = arith.constant 0 : index
    %114 = vector.load %arg1[%c0_96, %c5_97, %c8_98, %c0_99] : memref<2x8x16x512xf32, #tpu.memory_space<vmem>>, vector<1x1x8x512xf32>
    %115 = vector.shape_cast %114 : vector<1x1x8x512xf32> to vector<8x512xf32>
    %116 = arith.mulf %115, %93 : vector<8x512xf32>
    %117 = arith.addf %113, %116 : vector<8x512xf32>
    %c0_100 = arith.constant 0 : index
    %c2_101 = arith.constant 2 : index
    %c8_102 = arith.constant 8 : index
    %c0_103 = arith.constant 0 : index
    %118 = vector.load %arg1[%c0_100, %c2_101, %c8_102, %c0_103] : memref<2x8x16x512xf32, #tpu.memory_space<vmem>>, vector<1x1x8x512xf32>
    %119 = vector.shape_cast %118 : vector<1x1x8x512xf32> to vector<8x512xf32>
    %120 = arith.mulf %119, %99 : vector<8x512xf32>
    %c0_104 = arith.constant 0 : index
    %c6_105 = arith.constant 6 : index
    %c8_106 = arith.constant 8 : index
    %c0_107 = arith.constant 0 : index
    %121 = vector.load %arg1[%c0_104, %c6_105, %c8_106, %c0_107] : memref<2x8x16x512xf32, #tpu.memory_space<vmem>>, vector<1x1x8x512xf32>
    %122 = vector.shape_cast %121 : vector<1x1x8x512xf32> to vector<8x512xf32>
    %123 = arith.mulf %122, %93 : vector<8x512xf32>
    %124 = arith.addf %120, %123 : vector<8x512xf32>
    %c0_108 = arith.constant 0 : index
    %c3_109 = arith.constant 3 : index
    %c8_110 = arith.constant 8 : index
    %c0_111 = arith.constant 0 : index
    %125 = vector.load %arg1[%c0_108, %c3_109, %c8_110, %c0_111] : memref<2x8x16x512xf32, #tpu.memory_space<vmem>>, vector<1x1x8x512xf32>
    %126 = vector.shape_cast %125 : vector<1x1x8x512xf32> to vector<8x512xf32>
    %127 = arith.mulf %126, %99 : vector<8x512xf32>
    %c0_112 = arith.constant 0 : index
    %c7_113 = arith.constant 7 : index
    %c8_114 = arith.constant 8 : index
    %c0_115 = arith.constant 0 : index
    %128 = vector.load %arg1[%c0_112, %c7_113, %c8_114, %c0_115] : memref<2x8x16x512xf32, #tpu.memory_space<vmem>>, vector<1x1x8x512xf32>
    %129 = vector.shape_cast %128 : vector<1x1x8x512xf32> to vector<8x512xf32>
    %130 = arith.mulf %129, %93 : vector<8x512xf32>
    %131 = arith.addf %127, %130 : vector<8x512xf32>
    %132 = arith.mulf %110, %101 : vector<8x512xf32>
    %133 = arith.mulf %124, %95 : vector<8x512xf32>
    %134 = arith.addf %132, %133 : vector<8x512xf32>
    %135 = arith.mulf %117, %101 : vector<8x512xf32>
    %136 = arith.mulf %131, %95 : vector<8x512xf32>
    %137 = arith.addf %135, %136 : vector<8x512xf32>
    %138 = arith.mulf %134, %103 : vector<8x512xf32>
    %139 = arith.mulf %137, %97 : vector<8x512xf32>
    %140 = arith.addf %138, %139 : vector<8x512xf32>
    %c0_116 = arith.constant 0 : index
    %c8_117 = arith.constant 8 : index
    %c0_118 = arith.constant 0 : index
    %141 = vector.load %arg3[%c0_116, %c8_117, %c0_118] : memref<2x16x512xf32, #tpu.memory_space<vmem>>, vector<1x8x512xf32>
    %142 = vector.shape_cast %141 : vector<1x8x512xf32> to vector<8x512xf32>
    %143 = vector.shape_cast %140 : vector<8x512xf32> to vector<1x8x512xf32>
    tpu.vector_store %arg3[%c0_116, %c8_117, %c0_118], %143 {strides = array<i32>} : memref<2x16x512xf32, #tpu.memory_space<vmem>>, vector<1x8x512xf32>,
    %c1_119 = arith.constant 1 : index
    %c0_120 = arith.constant 0 : index
    %c8_121 = arith.constant 8 : index
    %c0_122 = arith.constant 0 : index
    %144 = vector.load %arg1[%c1_119, %c0_120, %c8_121, %c0_122] : memref<2x8x16x512xf32, #tpu.memory_space<vmem>>, vector<1x1x8x512xf32>
    %145 = vector.shape_cast %144 : vector<1x1x8x512xf32> to vector<8x512xf32>
    %146 = arith.mulf %145, %99 : vector<8x512xf32>
    %c1_123 = arith.constant 1 : index
    %c4_124 = arith.constant 4 : index
    %c8_125 = arith.constant 8 : index
    %c0_126 = arith.constant 0 : index
    %147 = vector.load %arg1[%c1_123, %c4_124, %c8_125, %c0_126] : memref<2x8x16x512xf32, #tpu.memory_space<vmem>>, vector<1x1x8x512xf32>
    %148 = vector.shape_cast %147 : vector<1x1x8x512xf32> to vector<8x512xf32>
    %149 = arith.mulf %148, %93 : vector<8x512xf32>
    %150 = arith.addf %146, %149 : vector<8x512xf32>
    %c1_127 = arith.constant 1 : index
    %c1_128 = arith.constant 1 : index
    %c8_129 = arith.constant 8 : index
    %c0_130 = arith.constant 0 : index
    %151 = vector.load %arg1[%c1_127, %c1_128, %c8_129, %c0_130] : memref<2x8x16x512xf32, #tpu.memory_space<vmem>>, vector<1x1x8x512xf32>
    %152 = vector.shape_cast %151 : vector<1x1x8x512xf32> to vector<8x512xf32>
    %153 = arith.mulf %152, %99 : vector<8x512xf32>
    %c1_131 = arith.constant 1 : index
    %c5_132 = arith.constant 5 : index
    %c8_133 = arith.constant 8 : index
    %c0_134 = arith.constant 0 : index
    %154 = vector.load %arg1[%c1_131, %c5_132, %c8_133, %c0_134] : memref<2x8x16x512xf32, #tpu.memory_space<vmem>>, vector<1x1x8x512xf32>
    %155 = vector.shape_cast %154 : vector<1x1x8x512xf32> to vector<8x512xf32>
    %156 = arith.mulf %155, %93 : vector<8x512xf32>
    %157 = arith.addf %153, %156 : vector<8x512xf32>
    %c1_135 = arith.constant 1 : index
    %c2_136 = arith.constant 2 : index
    %c8_137 = arith.constant 8 : index
    %c0_138 = arith.constant 0 : index
    %158 = vector.load %arg1[%c1_135, %c2_136, %c8_137, %c0_138] : memref<2x8x16x512xf32, #tpu.memory_space<vmem>>, vector<1x1x8x512xf32>
    %159 = vector.shape_cast %158 : vector<1x1x8x512xf32> to vector<8x512xf32>
    %160 = arith.mulf %159, %99 : vector<8x512xf32>
    %c1_139 = arith.constant 1 : index
    %c6_140 = arith.constant 6 : index
    %c8_141 = arith.constant 8 : index
    %c0_142 = arith.constant 0 : index
    %161 = vector.load %arg1[%c1_139, %c6_140, %c8_141, %c0_142] : memref<2x8x16x512xf32, #tpu.memory_space<vmem>>, vector<1x1x8x512xf32>
    %162 = vector.shape_cast %161 : vector<1x1x8x512xf32> to vector<8x512xf32>
    %163 = arith.mulf %162, %93 : vector<8x512xf32>
    %164 = arith.addf %160, %163 : vector<8x512xf32>
    %c1_143 = arith.constant 1 : index
    %c3_144 = arith.constant 3 : index
    %c8_145 = arith.constant 8 : index
    %c0_146 = arith.constant 0 : index
    %165 = vector.load %arg1[%c1_143, %c3_144, %c8_145, %c0_146] : memref<2x8x16x512xf32, #tpu.memory_space<vmem>>, vector<1x1x8x512xf32>
    %166 = vector.shape_cast %165 : vector<1x1x8x512xf32> to vector<8x512xf32>
    %167 = arith.mulf %166, %99 : vector<8x512xf32>
    %c1_147 = arith.constant 1 : index
    %c7_148 = arith.constant 7 : index
    %c8_149 = arith.constant 8 : index
    %c0_150 = arith.constant 0 : index
    %168 = vector.load %arg1[%c1_147, %c7_148, %c8_149, %c0_150] : memref<2x8x16x512xf32, #tpu.memory_space<vmem>>, vector<1x1x8x512xf32>
    %169 = vector.shape_cast %168 : vector<1x1x8x512xf32> to vector<8x512xf32>
    %170 = arith.mulf %169, %93 : vector<8x512xf32>
    %171 = arith.addf %167, %170 : vector<8x512xf32>
    %172 = arith.mulf %150, %101 : vector<8x512xf32>
    %173 = arith.mulf %164, %95 : vector<8x512xf32>
    %174 = arith.addf %172, %173 : vector<8x512xf32>
    %175 = arith.mulf %157, %101 : vector<8x512xf32>
    %176 = arith.mulf %171, %95 : vector<8x512xf32>
    %177 = arith.addf %175, %176 : vector<8x512xf32>
    %178 = arith.mulf %174, %103 : vector<8x512xf32>
    %179 = arith.mulf %177, %97 : vector<8x512xf32>
    %180 = arith.addf %178, %179 : vector<8x512xf32>
    %c1_151 = arith.constant 1 : index
    %c8_152 = arith.constant 8 : index
    %c0_153 = arith.constant 0 : index
    %181 = vector.load %arg3[%c1_151, %c8_152, %c0_153] : memref<2x16x512xf32, #tpu.memory_space<vmem>>, vector<1x8x512xf32>
    %182 = vector.shape_cast %181 : vector<1x8x512xf32> to vector<8x512xf32>
    %183 = vector.shape_cast %180 : vector<8x512xf32> to vector<1x8x512xf32>
    tpu.vector_store %arg3[%c1_151, %c8_152, %c0_153], %183 {strides = array<i32>} : memref<2x16x512xf32, #tpu.memory_space<vmem>>, vector<1x8x512xf32>,
    return
  }
  func.func @transform_0(%arg0: i32) -> (i32, i32, i32, i32) {
    %c0_i32 = arith.constant 0 : i32
    %c0_i32_0 = arith.constant 0 : i32
    %c0_i32_1 = arith.constant 0 : i32
    %c0_i32_2 = arith.constant 0 : i32
    return %c0_i32, %c0_i32_0, %c0_i32_1, %arg0 : i32, i32, i32, i32
  }
  func.func @transform_1(%arg0: i32) -> (i32, i32, i32) {
    %c0_i32 = arith.constant 0 : i32
    %c0_i32_0 = arith.constant 0 : i32
    %c0_i32_1 = arith.constant 0 : i32
    return %c0_i32, %c0_i32_0, %arg0 : i32, i32, i32
  }
  func.func @transform_2(%arg0: i32) -> (i32, i32, i32) {
    %c0_i32 = arith.constant 0 : i32
    %c0_i32_0 = arith.constant 0 : i32
    %c0_i32_1 = arith.constant 0 : i32
    return %c0_i32, %c0_i32_0, %arg0 : i32, i32, i32
  }
}

</mosaic_0001>

<bundles_post_ra>
// kernel: forward.2
= control target key start
LH: loop header
LB: loop body
LE: loop exit
PB: predicated region body
PF: predicated region fallthrough
CT: control target
= control target key end

     0   :  { %10 = vsyncpa [#allocation3], 0  ;;  %s2867_s0 = inlined_call_operand.vmem [shape: f32[3,1024], index: 0, kind: input, shape index: {}]   ;;  %s2868_s1 = inlined_call_operand.hbm [shape: f32[3,16,1], index: 1, kind: input, shape index: {}]   ;;  %s2869_s2 = inlined_call_operand.hbm [shape: f32[3,16,1], index: 2, kind: input, shape index: {}]   ;;  %s2870_s3 = inlined_call_operand.vmem [shape: s32[8,16,1024], index: 3, kind: output, shape index: {0}]   ;;  %s2871_s4 = inlined_call_operand.vmem [shape: f32[3,16,1024], index: 4, kind: output, shape index: {1}]  }
   0x1   :  { %11 = vsyncpa [#allocation5], 0  ;;  %s1773_s15 = smov 0   ;;  %s1775_s16 = smov 0  }
   0x2   :  { %s1777_s17 = smov 0  }
   0x3 LB: > { %s1786_s18 = sadd.s32 4294967295, %s1741_s17   ;;  %s1788_s19 = sadd.s32 1, %s1741_s17   ;;  %s1741_s17 = sphi %s1777_s17, %s2924_s17   ;;  %s1737_s16 = sphi %s1775_s16, %s2923_s16   ;;  %s1733_s15 = sphi %s1773_s15, %s2922_s15  }
   0x4   : > { %s89_s20 = ssub.s32 %s1741_s17, %s1788_s19  ;;  %s92_s21 = sadd.s32 1, %s1737_s16 }
   0x5   : > { %p90_p0 = scmp.eq.s32.totalorder %s89_s20, 0  ;;  %p102_p1 = scmp.ne.s32.totalorder %s1737_s16, %s1733_s15 }
   0x6   : > { %p103_p2 = scmp.eq.s32.totalorder %s1786_s18, 1  ;;  %p1449_p3 = scmp.ge.s32.totalorder %s1741_s17, 1 }
   0x7   : > { %s1796_s22 = scalar_select %p90_p0, %s1737_s16, %s92_s21  }
   0x8   : > { %p1798_p4 = por %p103_p2, %p102_p1  ;;  %p142_p5 = scmp.lt.s32.totalorder %s1741_s17, 3 }
   0x9   : > { %p2872_p6 = scmp.eq.s32.totalorder %s1786_s18, 0  ;;  %s1743_s25 = smov [#allocation2]  }
   0xa   : > { %s2874_s23 = scalar_select %p1798_p4, 1, 0 }
   0xb   : > { %p1803_p7 = pnand %p1449_p3, %p142_p5  ;;  %s154_s26 = sshll.u32 %s1743_s25, 4  ;;  %s155_s26 = int_to_ptr.vmem [resolvable:$true] %s154_s26 }
   0xc   : > { %s1744_s28 = smov [#allocation4]   ;;  %s1655_s6 = scalar_lea.hbm %s2868_s1, 768 }
   0xd   : > { %s2875_s24 = scalar_select %p1803_p7, 1, 0 }
   0xe   : > { %p1613_p8 = pneg %p1803_p7  ;;  %s167_s29 = sshll.u32 %s1744_s28, 4  ;;  %s1815_s29 = int_to_ptr.vmem [resolvable:$true] %s167_s29 }
   0xf   : > { %p1656_p10 = scmp.ne.s32.totalorder %s2868_s1, %s1655_s6  ;;  %p1662_p0 = scmp.lt.u32.totalorder %s1655_s6, %s2868_s1 }
  0x10   : > { %p1811_p9 = pnand %p2872_p6, %p1613_p8 }
  0x12   : > { %p1657_p11 = pneg %p1811_p9 }
  0x14   : > { %p1658_p12 = pnand %p1657_p11, %p1656_p10 }
  0x16   : > { %p1659_p13 = pneg %p1658_p12 }
  0x18   : > { %p1664_p1 = pnand %p1662_p0, %p1659_p13 }
  0x1a   : > { %1667 = shalt.err (!%p1664_p1)
}
  0x1b   : > { %s1668_s11 = scalar_lea.vmem %s155_s26, 768  ;;  %p1676_p8 = scmp.lt.s32.totalorder %s155_s26, %s155_s26 }
  0x1c   : > { %p1669_p2 = scmp.ne.s32.totalorder %s155_s26, %s1668_s11  ;;  %p1677_p6 = scmp.lt.s32.totalorder %s1668_s11, %s1668_s11 }
  0x1e   : > { %p1671_p3 = pnand %p1669_p2, %p1657_p11  ;;  %p1678_p4 = por %p1677_p6, %p1676_p8 }
  0x20   : > { %p1672_p5 = pneg %p1671_p3 }
  0x22   : > { %p1679_p7 = pnand %p1678_p4, %p1672_p5 }
  0x24   : > { %1682 = shalt.err (!%p1679_p7)
}
  0x25   : > { %s1745_s12 = smov 128   ;;  %s1746_s13 = smov 8  }
  0x26   : > { %1616 = dma.hbm_to_vmem [thread:$0]  (!%p1811_p9), %s2868_s1, 768, %s155_s26, [#allocation3], %s1745_s12, %s1745_s12, %s1746_s13  }
  0x27   : > { %s1683_s25 = scalar_lea.hbm %s2869_s2, 768 }
  0x28   : > { %p1684_p10 = scmp.ne.s32.totalorder %s2869_s2, %s1683_s25  ;;  %p1690_p7 = scmp.lt.u32.totalorder %s1683_s25, %s2869_s2 }
  0x2a   : > { %p1686_p4 = pnand %p1684_p10, %p1657_p11 }
  0x2c   : > { %p1687_p6 = pneg %p1686_p4 }
  0x2e   : > { %p1692_p12 = pnand %p1690_p7, %p1687_p6 }
  0x30   : > { %1695 = shalt.err (!%p1692_p12)
}
  0x31   : > { %s1696_s26 = scalar_lea.vmem %s1815_s29, 768  ;;  %p1704_p2 = scmp.lt.s32.totalorder %s1815_s29, %s1815_s29 }
  0x32   : > { %p1697_p13 = scmp.ne.s32.totalorder %s1815_s29, %s1696_s26  ;;  %p1705_p3 = scmp.lt.s32.totalorder %s1696_s26, %s1696_s26 }
  0x34   : > { %p1699_p0 = pnand %p1697_p13, %p1657_p11  ;;  %p1706_p5 = por %p1705_p3, %p1704_p2 }
  0x36   : > { %p1700_p1 = pneg %p1699_p0 }
  0x38   : > { %p1707_p8 = pnand %p1706_p5, %p1700_p1 }
  0x3a   : > { %1710 = shalt.err (!%p1707_p8)
}
  0x3b   : > { %1619 = dma.hbm_to_vmem [thread:$0]  (!%p1811_p9), %s2869_s2, 768, %s1815_s29, [#allocation5], %s1745_s12, %s1745_s12, %s1746_s13  }
  0x3c   : > { %p2877_p10 = scmp.ne.s32.totalorder %s2875_s24, 0 }
  0x3d   : > { %p2878_p4 = scmp.eq.s32.totalorder (!%p2877_p10), %s1786_s18, 0 }
  0x3e   : > { %192 = sbr.rel (%p2877_p10) target bundleno = 378 (0x17a), region = 32 }
  0x45   : > { %1724 = dma.done.wait (%p2878_p4), [#allocation3], 768   ;;  %p2879_p11 = pmov %p2878_p4 }
  0x46   : > { %p2880_p6 = pmov %p2878_p4 }
  0x47   : > { %1726 = vsyncadd (%p2879_p11), [#allocation3], 4294966528 }
  0x48   : > { %1728 = dma.done.wait (%p2880_p6), [#allocation5], 768   ;;  %p2881_p7 = pmov %p2878_p4 }
  0x49   : > { %v1747_v0 = vmov 0   ;;  %v330_v1 = vld [vmem:[#allocation4 + $0x10] sm:$0xff]  ;;  %v237_v2 = vld [vmem:[#allocation4] sm:$0xff]  ;;  %v779_v3 = vld [vmem:[#allocation4 + $0x18] sm:$0xff]  ;;  %s1457_s24 = sshll.u32 %s1786_s18, 2  ;;  %v240_v13 = vlaneseq  ;;  %s216_s11 = sand.u32 1, %s1733_s15  }
  0x4a   : > { %1730 = vsyncadd (%p2881_p7), [#allocation5], 4294966528  ;;  %1654 = vset.pattern.permute.xlu1 %v1747_v0  ;;  %1653 = vset.pattern.permute.xlu0 %v1747_v0  ;;  %v428_v4 = vld [vmem:[#allocation4 + $0x20] sm:$0xff]  ;;  %v689_v5 = vld [vmem:[#allocation4 + $0x8] sm:$0xff]  ;;  %p226_p9 = scmp.lt.s32.totalorder %s1457_s24, 7  ;;  %s1556_s12 = smul.u32 192, %s216_s11 }
  0x4b   : > { %355 = vperm.xlu0 %1653, %v330_v1   ;;  %262 = vperm.xlu1 %1654, %v237_v2   ;;  %v873_v6 = vld [vmem:[#allocation4 + $0x28] sm:$0xff]  ;;  %v328_v7 = vld [vmem:[#allocation2 + $0x10] sm:$0xff]  ;;  %v236_v8 = vld [vmem:[#allocation2] sm:$0xff]  ;;  %v241_v16 = vshrl.u32 %v240_v13, 7  ;;  %s1456_s14 = sshll.u32 %s216_s11, 9  ;;  %p2920_p12 = scmp.ne.s32.totalorder %s2874_s23, 0 }
  0x4c   : > { %v688_v9 = vld [vmem:[#allocation2 + $0x8] sm:$0xff]  ;;  %v426_v10 = vld [vmem:[#allocation2 + $0x20] sm:$0xff]  ;;  %v778_v12 = vld [vmem:[#allocation2 + $0x18] sm:$0xff]  ;;  %s2926_s24 = smov (!%p226_p9, %s1457_s24), 7  ;;  %s2109_s13 = scalar_lea.vmem [#allocation7], %s1556_s12 }
  0x4d   : > { %v872_v11 = vld [vmem:[#allocation2 + $0x28] sm:$0xff]  ;;  %s1458_s27 = sshll.u32 %s2926_s24, 2  ;;  %v1888_v21 = vsub.s32 0, %v241_v16  ;;  %v1890_v22 = vsub.s32 1, %v241_v16  ;;  %v1894_v24 = vsub.s32 2, %v241_v16  ;;  %v1896_v25 = vsub.s32 3, %v241_v16 }
  0x4e   : > { %s229_s10 = scalar_lea.vmem %s2867_s0, %s1458_s27  ;;  %v963_v32 = vadd.s32 8, %v241_v16  ;;  %v1925_v42 = vmul.u32 65536, %v241_v16  ;;  %s2314_s15 = scalar_lea.vmem [#allocation6], %s1456_s14 }
  0x4f   : > { %804 = vperm.xlu0 %1653, %v779_v3   ;;  %453 = vperm.xlu1 %1654, %v428_v4   ;;  %v1878_v14 = vld [vmem:[%s229_s10 + $0x1] ss:$4 sm:$0xf]  ;;  %v1880_v15 = vld [vmem:[%s229_s10] ss:$4 sm:$0xf] }
  0x50   : > { %v1462_v17 = vclamps-f32 %v1878_v14, 1.0  ;;  %v1459_v18 = vclamps-f32 %v1880_v15, 1.0  ;;  %v1884_v19 = vld [vmem:[%s229_s10 + $0x2] ss:$4 sm:$0xf]  ;;  %v1932_v46 = vmul.u32 65536, %v963_v32 }
  0x51   : > { %v1886_v20 = vld [vmem:[%s229_s10] ss:$4 sm:$0xf]  ;;  %v1469_v26 = vclamps-f32 %v1884_v19, 1.0  ;;  %s1554_s17 = sshll.u32 (%p2920_p12), %s1786_s18, 5 }
  0x52   : > { %v1892_v23 = vadd.f32 1.0, %v1462_v17  ;;  %v1899_v27 = vadd.f32 1.0, %v1459_v18  ;;  %v1503_v28 = vclamps-f32 %v1886_v20, 1.0  ;;  %v1902_v29 = vld [vmem:[%s229_s10 + $0x2] ss:$4 sm:$0xf]  ;;  %s2674_s25 = scalar_lea.vmem (%p2920_p12), %s2870_s3, %s1554_s17 }
  0x53   : > { %714 = vperm.xlu0 %1653, %v689_v5   ;;  %898 = vperm.xlu1 %1654, %v873_v6   ;;  %v1908_v33 = vld [vmem:[%s229_s10 + $0x1] ss:$4 sm:$0xf]  ;;  %v1922_v40 = vadd.f32 1.0, %v1469_v26  ;;  %v1513_v41 = vclamps-f32 %v1902_v29, 1.0 }
  0x54   : > { %v336_v34 = vrot.slane %v1892_v23, %v1888_v21  ;;  %v340_v35 = vrot.slane %v1892_v23, %v1890_v22  ;;  %v344_v38 = vrot.slane %v1892_v23, %v1894_v24  ;;  %v348_v39 = vrot.slane %v1892_v23, %v1896_v25 }
  0x55   : > { %v243_v43 = vrot.slane %v1899_v27, %v1888_v21  ;;  %v1929_v44 = vadd.f32 1.0, %v1503_v28  ;;  %v1506_v45 = vclamps-f32 %v1908_v33, 1.0  ;;  %v247_v47 = vrot.slane %v1899_v27, %v1890_v22 }
  0x56   : > { %v251_v48 = vrot.slane %v1899_v27, %v1894_v24  ;;  %v255_v49 = vrot.slane %v1899_v27, %v1896_v25  ;;  %v1954_v57 = vadd.f32 1.0, %v1513_v41 }
  0x57   : > { %368 = vperm.xlu1 %1654, %v328_v7   ;;  %275 = vperm.xlu0 %1653, %v236_v8   ;;  %v695_v58 = vrot.slane %v1929_v44, %v1888_v21  ;;  %v1962_v61 = vadd.f32 1.0, %v1506_v45 }
  0x5b   : > { %727 = vperm.xlu1 %1654, %v688_v9   ;;  %466 = vperm.xlu0 %1653, %v426_v10  }
  0x5f   : > { %911 = vperm.xlu1 %1654, %v872_v11   ;;  %817 = vperm.xlu0 %1653, %v778_v12  }
  0xca   : > { %v1996_v16 = vpop.permute.xlu0 %355  ;;  %v1998_v17 = vpop.permute.xlu1 %262 }
  0xcb   : > { %v358_v28 = vmul.f32 %v1996_v16, %v336_v34  ;;  %v359_v32 = vmul.f32 %v1996_v16, %v340_v35  ;;  %v360_v41 = vmul.f32 %v1996_v16, %v344_v38  ;;  %v361_v45 = vmul.f32 %v1996_v16, %v348_v39 }
  0xcc   : > { %v265_v13 = vmul.f32 %v1998_v17, %v243_v43  ;;  %v266_v18 = vmul.f32 %v1998_v17, %v247_v47  ;;  %v267_v23 = vmul.f32 %v1998_v17, %v251_v48  ;;  %v268_v12 = vmul.f32 %v1998_v17, %v255_v49 }
  0xcd   : > { %v362_v26 = vfloor.f32 %v358_v28  ;;  %v363_v11 = vfloor.f32 %v359_v32  ;;  %v364_v10 = vfloor.f32 %v360_v41  ;;  %v365_v27 = vfloor.f32 %v361_v45 }
  0xce   : > { %v2016_v7 = vpop.permute.xlu0 %804  ;;  %v2018_v34 = vpop.permute.xlu1 %453  ;;  %v269_v35 = vfloor.f32 %v265_v13  ;;  %v270_v38 = vfloor.f32 %v266_v18  ;;  %v271_v6 = vfloor.f32 %v267_v23  ;;  %v272_v39 = vfloor.f32 %v268_v12 }
  0xcf   : > { %v1565_v5 = vtrunc.f32 %v362_v26  ;;  %v1567_v43 = vtrunc.f32 %v363_v11  ;;  %v1569_v4 = vtrunc.f32 %v364_v10  ;;  %v1571_v47 = vtrunc.f32 %v365_v27 }
  0xd0   : > { %v1557_v9 = vtrunc.f32 %v269_v35  ;;  %v1559_v48 = vtrunc.f32 %v270_v38  ;;  %v1561_v8 = vtrunc.f32 %v271_v6  ;;  %v1563_v49 = vtrunc.f32 %v272_v39 }
  0xd1   : > { %v1566_v28 = vcvt.f32.s32 %v1565_v5  ;;  %v1568_v32 = vcvt.f32.s32 %v1567_v43  ;;  %v1570_v41 = vcvt.f32.s32 %v1569_v4  ;;  %v1572_v45 = vcvt.f32.s32 %v1571_v47 }
  0xd2   : > { %v2020_v3 = vpop.permute.xlu0 %714  ;;  %v2022_v2 = vpop.permute.xlu1 %898  ;;  %v2024_v13 = vcvt.f32.s32 %v1557_v9  ;;  %v2026_v12 = vcvt.f32.s32 %v1559_v48  ;;  %v2044_v48 = vcvt.f32.s32 %v1561_v8 }
  0xd3   : > { %v2032_v1 = vmul.u32 2654435761, %v1566_v28  ;;  %v2034_v5 = vmul.u32 2654435761, %v1568_v32  ;;  %v2052_v32 = vcvt.f32.s32 %v1563_v49  ;;  %v2073_v49 = vmul.f32 %v2020_v3, %v695_v58 }
  0xd4   : > { %v2040_v9 = vmul.u32 2654435761, %v1570_v41  ;;  %v2042_v47 = vmul.u32 2654435761, %v1572_v45  ;;  %v2055_v4 = vadd.s32 1, %v2024_v13  ;;  %v2058_v41 = vadd.s32 1, %v2026_v12 }
  0xd5   : > { %v2050_v28 = vadd.s32 2654435761, %v2032_v1  ;;  %v2061_v45 = vadd.s32 2654435761, %v2034_v5  ;;  %v2882_v58 = vrot.slane %v1878_v14, %v1888_v21 }
  0xd6   : > { %v2064_v8 = vadd.s32 2654435761, %v2040_v9  ;;  %v2067_v18 = vadd.s32 2654435761, %v2042_v47  ;;  %v369_v43 = vpop.permute.xlu1 %368  ;;  %v276_v23 = vpop.permute.xlu0 %275 }
  0xd7   : > { %v371_v0 = vmul.f32 %v369_v43, %v362_v26  ;;  %v372_v60 = vmul.f32 %v369_v43, %v363_v11  ;;  %v373_v56 = vmul.f32 %v369_v43, %v364_v10  ;;  %v374_v55 = vmul.f32 %v369_v43, %v365_v27 }
  0xd8   : > { %v278_v54 = vmul.f32 %v276_v23, %v269_v35  ;;  %v279_v63 = vmul.f32 %v276_v23, %v270_v38  ;;  %v280_v62 = vmul.f32 %v276_v23, %v271_v6  ;;  %v281_v59 = vmul.f32 %v276_v23, %v272_v39 }
  0xd9   : > { %v375_v53 = vadd.f32 -1.0, %v371_v0  ;;  %v376_v52 = vadd.f32 -1.0, %v372_v60  ;;  %v377_v51 = vadd.f32 -1.0, %v373_v56  ;;  %v378_v50 = vadd.f32 -1.0, %v374_v55 }
  0xda   : > { %v282_v37 = vadd.f32 -1.0, %v278_v54  ;;  %v283_v36 = vadd.f32 -1.0, %v279_v63  ;;  %v284_v31 = vadd.f32 -1.0, %v280_v62  ;;  %v285_v30 = vadd.f32 -1.0, %v281_v59 }
  0xdb   : > { %v400_v11 = vsub.f32 %v2882_v58, %v375_v53  ;;  %v2883_v10 = vrot.slane %v1878_v14, %v1890_v22  ;;  %v2884_v6 = vrot.slane %v1878_v14, %v1894_v24  ;;  %v2885_v56 = vrot.slane %v1878_v14, %v1896_v25 }
  0xdc   : > { %v2886_v54 = vrot.slane %v1880_v15, %v1888_v21  ;;  %v2887_v60 = vrot.slane %v1880_v15, %v1890_v22  ;;  %v2888_v62 = vrot.slane %v1880_v15, %v1894_v24  ;;  %v2889_v63 = vrot.slane %v1880_v15, %v1896_v25 }
  0xdd   : > { %v401_v26 = vsub.f32 %v2883_v10, %v376_v52  ;;  %v402_v27 = vsub.f32 %v2884_v6, %v377_v51  ;;  %v403_v55 = vsub.f32 %v2885_v56, %v378_v50  ;;  %v404_v0 = vmul.f32 %v400_v11, %v1996_v16 }
  0xde   : > { %v307_v59 = vsub.f32 %v2886_v54, %v282_v37  ;;  %v308_v53 = vsub.f32 %v2887_v60, %v283_v36  ;;  %v309_v52 = vsub.f32 %v2888_v62, %v284_v31  ;;  %v310_v51 = vsub.f32 %v2889_v63, %v285_v30 }
  0xdf   : > { %v405_v14 = vmul.f32 %v401_v26, %v1996_v16  ;;  %v406_v50 = vmul.f32 %v402_v27, %v1996_v16  ;;  %v407_v37 = vmul.f32 %v403_v55, %v1996_v16  ;;  %1464 = vst [vmem:[%s2109_s13 + $0x40] sm:$0xff] %v404_v0  ;;  %v2117_v15 = vxor.u32 %v2024_v13, %v2032_v1 }
  0xe0   : > { %v311_v35 = vmul.f32 %v307_v59, %v1998_v17  ;;  %v312_v36 = vmul.f32 %v308_v53, %v1998_v17  ;;  %v313_v38 = vmul.f32 %v309_v52, %v1998_v17  ;;  %v314_v31 = vmul.f32 %v310_v51, %v1998_v17  ;;  %v728_v53 = vpop.permute.xlu1 %727 }
  0xe1   : > { %1465 = vst [vmem:[%s2109_s13 + $0x48] sm:$0xff] %v405_v14  ;;  %1466 = vst [vmem:[%s2109_s13 + $0x50] sm:$0xff] %v406_v50  ;;  %v2121_v30 = vxor.u32 %v2026_v12, %v2034_v5  ;;  %v2125_v16 = vxor.u32 %v2044_v48, %v2040_v9  ;;  %v2890_v17 = vrot.slane %v1929_v44, %v1890_v22  ;;  %v607_v58 = vadd.s32 1, %v2044_v48 }
  0xe2   : > { %1467 = vst [vmem:[%s2109_s13 + $0x58] sm:$0xff] %v407_v37  ;;  %315 = vst [vmem:[%s2109_s13] sm:$0xff] %v311_v35  ;;  %v2137_v23 = vxor.u32 %v2052_v32, %v2042_v47  ;;  %v2141_v43 = vxor.u32 %v2024_v13, %v2050_v28  ;;  %v608_v11 = vadd.s32 1, %v2052_v32  ;;  %v2147_v10 = vxor.u32 %v2026_v12, %v2061_v45 }
  0xe3   : > { %v718_v39 = vmul.f32 %v2020_v3, %v2890_v17  ;;  %316 = vst [vmem:[%s2109_s13 + $0x8] sm:$0xff] %v312_v36  ;;  %317 = vst [vmem:[%s2109_s13 + $0x10] sm:$0xff] %v313_v38  ;;  %v2151_v26 = vxor.u32 %v2044_v48, %v2064_v8  ;;  %v2891_v6 = vrot.slane %v1929_v44, %v1894_v24  ;;  %v721_v59 = vfloor.f32 %v2073_v49 }
  0xe4   : > { %318 = vst [vmem:[%s2109_s13 + $0x18] sm:$0xff] %v314_v31  ;;  %v2892_v13 = vrot.slane %v1929_v44, %v1896_v25  ;;  %v2163_v55 = vxor.u32 %v2052_v32, %v2067_v18  ;;  %v2167_v12 = vxor.u32 %v2055_v4, %v2032_v1  ;;  %v2171_v48 = vxor.u32 %v2058_v41, %v2034_v5 }
  0xe5   : > { %v719_v27 = vmul.f32 %v2020_v3, %v2891_v6  ;;  %v2175_v54 = vxor.u32 %v2055_v4, %v2050_v28  ;;  %v2179_v44 = vxor.u32 %v2058_v41, %v2061_v45  ;;  %v722_v32 = vfloor.f32 %v718_v39 }
  0xe6   : > { %v720_v56 = vmul.f32 %v2020_v3, %v2892_v13  ;;  %v2183_v1 = vxor.u32 %v607_v58, %v2040_v9  ;;  %v2186_v62 = vxor.u32 %v608_v11, %v2042_v47  ;;  %v2189_v5 = vxor.u32 %v607_v58, %v2064_v8 }
  0xe7   : > { %v723_v60 = vfloor.f32 %v719_v27  ;;  %v2192_v28 = vxor.u32 %v608_v11, %v2067_v18  ;;  %v1581_v41 = vtrunc.f32 %v721_v59  ;;  %v1583_v45 = vtrunc.f32 %v722_v32 }
  0xe8   : > { %v724_v4 = vfloor.f32 %v720_v56  ;;  %v730_v49 = vmul.f32 %v728_v53, %v721_v59  ;;  %v731_v63 = vmul.f32 %v728_v53, %v722_v32  ;;  %v2893_v9 = vrot.slane %v1922_v40, %v1888_v21 }
  0xe9   : > { %v1585_v52 = vtrunc.f32 %v723_v60  ;;  %v732_v51 = vmul.f32 %v728_v53, %v723_v60  ;;  %v2894_v8 = vrot.slane %v1922_v40, %v1890_v22  ;;  %v2895_v18 = vrot.slane %v1922_v40, %v1894_v24 }
  0xea   : > { %v733_v0 = vmul.f32 %v728_v53, %v724_v4  ;;  %v456_v47 = vmul.f32 %v2018_v34, %v2893_v9  ;;  %v2896_v37 = vrot.slane %v1922_v40, %v1896_v25  ;;  %v734_v36 = vadd.f32 -1.0, %v730_v49  ;;  %v467_v49 = vpop.permute.xlu0 %466 }
  0xeb   : > { %v457_v14 = vmul.f32 %v2018_v34, %v2894_v8  ;;  %v458_v50 = vmul.f32 %v2018_v34, %v2895_v18  ;;  %v735_v38 = vadd.f32 -1.0, %v731_v63  ;;  %v736_v31 = vadd.f32 -1.0, %v732_v51 }
  0xec   : > { %v459_v35 = vmul.f32 %v2018_v34, %v2896_v37  ;;  %v737_v17 = vadd.f32 -1.0, %v733_v0  ;;  %v2210_v39 = vcvt.f32.s32 %v1581_v41  ;;  %v2212_v58 = vcvt.f32.s32 %v1583_v45 }
  0xed   : > { %v2214_v11 = vcvt.f32.s32 %v1585_v52  ;;  %v2216_v6 = vtrunc.f32 %v724_v4  ;;  %v2897_v27 = vrot.slane %v1886_v20, %v1888_v21  ;;  %v2898_v40 = vrot.slane %v1886_v20, %v1890_v22 }
  0xee   : > { %v2899_v59 = vrot.slane %v1886_v20, %v1894_v24  ;;  %v2900_v60 = vrot.slane %v1886_v20, %v1896_v25  ;;  %v460_v4 = vfloor.f32 %v456_v47  ;;  %v461_v41 = vfloor.f32 %v457_v14 }
  0xef   : > { %v759_v13 = vsub.f32 %v2897_v27, %v734_v36  ;;  %v760_v56 = vsub.f32 %v2898_v40, %v735_v38  ;;  %v462_v45 = vfloor.f32 %v458_v50  ;;  %v463_v52 = vfloor.f32 %v459_v35 }
  0xf0   : > { %v761_v32 = vsub.f32 %v2899_v59, %v736_v31  ;;  %v762_v53 = vsub.f32 %v2900_v60, %v737_v17  ;;  %v1573_v8 = vtrunc.f32 %v460_v4  ;;  %v1575_v18 = vtrunc.f32 %v461_v41 }
  0xf1   : > { %v763_v63 = vmul.f32 %v759_v13, %v2020_v3  ;;  %v764_v51 = vmul.f32 %v760_v56, %v2020_v3  ;;  %v1577_v20 = vtrunc.f32 %v462_v45  ;;  %v1579_v37 = vtrunc.f32 %v463_v52 }
  0xf2   : > { %v765_v0 = vmul.f32 %v761_v32, %v2020_v3  ;;  %v766_v9 = vmul.f32 %v762_v53, %v2020_v3  ;;  %v469_v47 = vmul.f32 %v467_v49, %v460_v4  ;;  %v470_v14 = vmul.f32 %v467_v49, %v461_v41 }
  0xf3   : > { %767 = vst [vmem:[%s2109_s13 + $0x20] sm:$0xff] %v763_v63  ;;  %768 = vst [vmem:[%s2109_s13 + $0x28] sm:$0xff] %v764_v51  ;;  %v471_v50 = vmul.f32 %v467_v49, %v462_v45  ;;  %v472_v35 = vmul.f32 %v467_v49, %v463_v52  ;;  %v1574_v36 = vcvt.f32.s32 %v1573_v8  ;;  %v1576_v38 = vcvt.f32.s32 %v1575_v18 }
  0xf4   : > { %769 = vst [vmem:[%s2109_s13 + $0x30] sm:$0xff] %v765_v0  ;;  %770 = vst [vmem:[%s2109_s13 + $0x38] sm:$0xff] %v766_v9  ;;  %v1578_v31 = vcvt.f32.s32 %v1577_v20  ;;  %v1580_v17 = vcvt.f32.s32 %v1579_v37  ;;  %v473_v27 = vadd.f32 -1.0, %v469_v47  ;;  %v474_v13 = vadd.f32 -1.0, %v470_v14 }
  0xf5   : > { %v475_v40 = vadd.f32 -1.0, %v471_v50  ;;  %v476_v3 = vadd.f32 -1.0, %v472_v35  ;;  %v2238_v56 = vmul.u32 805459861, %v1574_v36  ;;  %v2240_v59 = vmul.u32 805459861, %v1576_v38 }
  0xf6   : > { %v2901_v32 = vrot.slane %v1954_v57, %v1888_v21  ;;  %v2902_v53 = vrot.slane %v1954_v57, %v1890_v22  ;;  %v2254_v41 = vmul.u32 805459861, %v1578_v31  ;;  %v2256_v45 = vmul.u32 805459861, %v1580_v17 }
  0xf7   : > { %v2903_v52 = vrot.slane %v1884_v19, %v1888_v21  ;;  %v2904_v63 = vrot.slane %v1884_v19, %v1890_v22  ;;  %v2265_v0 = vadd.s32 805459861, %v2238_v56  ;;  %v2268_v9 = vadd.s32 805459861, %v2240_v59 }
  0xf8   : > { %v2246_v60 = vmul.f32 %v2022_v2, %v2901_v32  ;;  %v2252_v4 = vmul.f32 %v2022_v2, %v2902_v53  ;;  %v2905_v8 = vrot.slane %v1884_v19, %v1894_v24  ;;  %v2906_v20 = vrot.slane %v1884_v19, %v1896_v25 }
  0xf9   : > { %v498_v49 = vsub.f32 %v2903_v52, %v473_v27  ;;  %v499_v51 = vsub.f32 %v2904_v63, %v474_v13  ;;  %v2277_v47 = vadd.s32 805459861, %v2254_v41  ;;  %v2280_v14 = vadd.s32 805459861, %v2256_v45 }
  0xfa   : > { %v500_v18 = vsub.f32 %v2905_v8, %v475_v40  ;;  %v501_v37 = vsub.f32 %v2906_v20, %v476_v3  ;;  %v526_v19 = vxor.u32 %v2117_v15, %v2238_v56  ;;  %v527_v31 = vxor.u32 %v2121_v30, %v2240_v59 }
  0xfb   : > { %v502_v50 = vmul.f32 %v498_v49, %v2018_v34  ;;  %v503_v35 = vmul.f32 %v499_v51, %v2018_v34  ;;  %v528_v17 = vxor.u32 %v2125_v16, %v2254_v41  ;;  %v529_v27 = vxor.u32 %v2137_v23, %v2256_v45 }
  0xfc   : > { %v504_v36 = vmul.f32 %v500_v18, %v2018_v34  ;;  %v505_v38 = vmul.f32 %v501_v37, %v2018_v34  ;;  %v546_v13 = vxor.u32 %v2265_v0, %v2117_v15  ;;  %v547_v34 = vxor.u32 %v2268_v9, %v2121_v30 }
  0xfd   : > { %1471 = vst [vmem:[%s2109_s13 + $0x80] sm:$0xff] %v502_v50  ;;  %1472 = vst [vmem:[%s2109_s13 + $0x88] sm:$0xff] %v503_v35  ;;  %v530_v40 = vand.u32 65535, %v526_v19  ;;  %v531_v3 = vand.u32 65535, %v527_v31  ;;  %v548_v32 = vxor.u32 %v2277_v47, %v2125_v16  ;;  %v549_v53 = vxor.u32 %v2280_v14, %v2137_v23 }
  0xfe   : > { %1473 = vst [vmem:[%s2109_s13 + $0x90] sm:$0xff] %v504_v36  ;;  %1474 = vst [vmem:[%s2109_s13 + $0x98] sm:$0xff] %v505_v38  ;;  %v532_v52 = vand.u32 65535, %v528_v17  ;;  %v533_v49 = vand.u32 65535, %v529_v27  ;;  %v550_v63 = vand.u32 65535, %v546_v13  ;;  %v551_v51 = vand.u32 65535, %v547_v34 }
  0xff   : > { %v534_v8 = vadd.s32 %v530_v40, %v1925_v42  ;;  %v535_v15 = vadd.s32 %v531_v3, %v1925_v42  ;;  %v552_v18 = vand.u32 65535, %v548_v32  ;;  %v553_v30 = vand.u32 65535, %v549_v53 }
 0x100   : > { %v536_v20 = vadd.s32 %v532_v52, %v1925_v42  ;;  %v537_v37 = vadd.s32 %v533_v49, %v1925_v42  ;;  %v554_v50 = vadd.s32 %v550_v63, %v1925_v42  ;;  %v555_v16 = vadd.s32 %v551_v51, %v1925_v42 }
 0x101   : > { %538 = vst [vmem:[%s2314_s15] sm:$0xff] %v534_v8  ;;  %539 = vst [vmem:[%s2314_s15 + $0x8] sm:$0xff] %v535_v15  ;;  %v556_v23 = vadd.s32 %v552_v18, %v1925_v42  ;;  %v557_v35 = vadd.s32 %v553_v30, %v1925_v42  ;;  %v571_v36 = vxor.u32 %v2141_v43, %v2238_v56 }
 0x102   : > { %v572_v38 = vxor.u32 %v2147_v10, %v2240_v59  ;;  %540 = vst [vmem:[%s2314_s15 + $0x10] sm:$0xff] %v536_v20  ;;  %541 = vst [vmem:[%s2314_s15 + $0x18] sm:$0xff] %v537_v37  ;;  %v573_v19 = vxor.u32 %v2151_v26, %v2254_v41  ;;  %v574_v31 = vxor.u32 %v2163_v55, %v2256_v45 }
 0x103   : > { %1475 = vst [vmem:[%s2314_s15 + $0x40] sm:$0xff] %v554_v50  ;;  %1476 = vst [vmem:[%s2314_s15 + $0x48] sm:$0xff] %v555_v16  ;;  %v588_v17 = vxor.u32 %v2141_v43, %v2265_v0  ;;  %v589_v27 = vxor.u32 %v2147_v10, %v2268_v9  ;;  %v575_v13 = vand.u32 65535, %v571_v36  ;;  %v590_v40 = vxor.u32 %v2151_v26, %v2277_v47 }
 0x104   : > { %1477 = vst [vmem:[%s2314_s15 + $0x50] sm:$0xff] %v556_v23  ;;  %1478 = vst [vmem:[%s2314_s15 + $0x58] sm:$0xff] %v557_v35  ;;  %v576_v34 = vand.u32 65535, %v572_v38  ;;  %v591_v3 = vxor.u32 %v2163_v55, %v2280_v14  ;;  %v577_v32 = vand.u32 65535, %v573_v19  ;;  %v578_v53 = vand.u32 65535, %v574_v31 }
 0x105   : > { %v592_v52 = vand.u32 65535, %v588_v17  ;;  %v593_v43 = vand.u32 65535, %v589_v27  ;;  %v579_v10 = vadd.s32 %v575_v13, %v1925_v42  ;;  %v594_v63 = vand.u32 65535, %v590_v40 }
 0x106   : > { %v580_v49 = vadd.s32 %v576_v34, %v1925_v42  ;;  %v595_v51 = vand.u32 65535, %v591_v3  ;;  %v581_v8 = vadd.s32 %v577_v32, %v1925_v42  ;;  %v582_v26 = vadd.s32 %v578_v53, %v1925_v42 }
 0x107   : > { %v596_v55 = vadd.s32 %v592_v52, %v1925_v42  ;;  %v597_v15 = vadd.s32 %v593_v43, %v1925_v42  ;;  %1479 = vst [vmem:[%s2314_s15 + $0x80] sm:$0xff] %v579_v10  ;;  %v598_v18 = vadd.s32 %v594_v63, %v1925_v42  ;;  %v613_v20 = vxor.u32 %v2167_v12, %v2238_v56 }
 0x108   : > { %1480 = vst [vmem:[%s2314_s15 + $0x88] sm:$0xff] %v580_v49  ;;  %v599_v30 = vadd.s32 %v595_v51, %v1925_v42  ;;  %v614_v37 = vxor.u32 %v2171_v48, %v2240_v59  ;;  %1481 = vst [vmem:[%s2314_s15 + $0x90] sm:$0xff] %v581_v8  ;;  %v615_v50 = vxor.u32 %v2183_v1, %v2254_v41 }
 0x109   : > { %1482 = vst [vmem:[%s2314_s15 + $0x98] sm:$0xff] %v582_v26  ;;  %1483 = vst [vmem:[%s2314_s15 + $0xc0] sm:$0xff] %v596_v55  ;;  %v616_v16 = vxor.u32 %v2186_v62, %v2256_v45  ;;  %v630_v23 = vxor.u32 %v2167_v12, %v2265_v0  ;;  %v631_v35 = vxor.u32 %v2171_v48, %v2268_v9  ;;  %v617_v36 = vand.u32 65535, %v613_v20 }
 0x10a   : > { %1484 = vst [vmem:[%s2314_s15 + $0xc8] sm:$0xff] %v597_v15  ;;  %1485 = vst [vmem:[%s2314_s15 + $0xd0] sm:$0xff] %v598_v18  ;;  %v618_v38 = vand.u32 65535, %v614_v37  ;;  %v632_v19 = vxor.u32 %v2183_v1, %v2277_v47  ;;  %v633_v31 = vxor.u32 %v2186_v62, %v2280_v14  ;;  %v619_v17 = vand.u32 65535, %v615_v50 }
 0x10b   : > { %1486 = vst [vmem:[%s2314_s15 + $0xd8] sm:$0xff] %v599_v30  ;;  %v620_v27 = vand.u32 65535, %v616_v16  ;;  %v634_v13 = vand.u32 65535, %v630_v23  ;;  %v635_v12 = vand.u32 65535, %v631_v35  ;;  %v621_v48 = vadd.s32 %v617_v36, %v1925_v42  ;;  %v912_v36 = vpop.permute.xlu1 %911 }
 0x10c   : > { %v622_v34 = vadd.s32 %v618_v38, %v1925_v42  ;;  %v636_v40 = vand.u32 65535, %v632_v19  ;;  %v637_v3 = vand.u32 65535, %v633_v31  ;;  %v623_v32 = vadd.s32 %v619_v17, %v1925_v42 }
 0x10d   : > { %v624_v1 = vadd.s32 %v620_v27, %v1925_v42  ;;  %v638_v62 = vadd.s32 %v634_v13, %v1925_v42  ;;  %v639_v53 = vadd.s32 %v635_v12, %v1925_v42  ;;  %1487 = vst [vmem:[%s2314_s15 + $0x100] sm:$0xff] %v621_v48  ;;  %v651_v10 = vxor.u32 %v2175_v54, %v2238_v56 }
 0x10e   : > { %1488 = vst [vmem:[%s2314_s15 + $0x108] sm:$0xff] %v622_v34  ;;  %v640_v52 = vadd.s32 %v636_v40, %v1925_v42  ;;  %v641_v43 = vadd.s32 %v637_v3, %v1925_v42  ;;  %v652_v49 = vxor.u32 %v2179_v44, %v2240_v59  ;;  %1489 = vst [vmem:[%s2314_s15 + $0x110] sm:$0xff] %v623_v32  ;;  %v2425_v38 = vcvt.f32.s32 %v2216_v6 }
 0x10f   : > { %1490 = vst [vmem:[%s2314_s15 + $0x118] sm:$0xff] %v624_v1  ;;  %1491 = vst [vmem:[%s2314_s15 + $0x140] sm:$0xff] %v638_v62  ;;  %v653_v63 = vxor.u32 %v2189_v5, %v2254_v41  ;;  %v654_v51 = vxor.u32 %v2192_v28, %v2256_v45  ;;  %v668_v8 = vxor.u32 %v2175_v54, %v2265_v0  ;;  %v655_v56 = vand.u32 65535, %v651_v10 }
 0x110   : > { %1492 = vst [vmem:[%s2314_s15 + $0x148] sm:$0xff] %v639_v53  ;;  %v669_v26 = vxor.u32 %v2179_v44, %v2268_v9  ;;  %1493 = vst [vmem:[%s2314_s15 + $0x150] sm:$0xff] %v640_v52  ;;  %v656_v59 = vand.u32 65535, %v652_v49  ;;  %v670_v55 = vxor.u32 %v2189_v5, %v2277_v47  ;;  %v671_v41 = vxor.u32 %v2192_v28, %v2280_v14 }
 0x111   : > { %1494 = vst [vmem:[%s2314_s15 + $0x158] sm:$0xff] %v641_v43  ;;  %v657_v15 = vand.u32 65535, %v653_v63  ;;  %v658_v45 = vand.u32 65535, %v654_v51  ;;  %v672_v18 = vand.u32 65535, %v668_v8  ;;  %v659_v54 = vadd.s32 %v655_v56, %v1925_v42 }
 0x112   : > { %v673_v30 = vand.u32 65535, %v669_v26  ;;  %v660_v44 = vadd.s32 %v656_v59, %v1925_v42  ;;  %v674_v0 = vand.u32 65535, %v670_v55  ;;  %v675_v9 = vand.u32 65535, %v671_v41 }
 0x113   : > { %v661_v20 = vadd.s32 %v657_v15, %v1925_v42  ;;  %v662_v5 = vadd.s32 %v658_v45, %v1925_v42  ;;  %v676_v28 = vadd.s32 %v672_v18, %v1925_v42  ;;  %1495 = vst [vmem:[%s2314_s15 + $0x180] sm:$0xff] %v659_v54  ;;  %v2907_v50 = vrot.slane %v1954_v57, %v1894_v24 }
 0x114   : > { %v677_v47 = vadd.s32 %v673_v30, %v1925_v42  ;;  %1496 = vst [vmem:[%s2314_s15 + $0x188] sm:$0xff] %v660_v44  ;;  %v678_v14 = vadd.s32 %v674_v0, %v1925_v42  ;;  %v679_v37 = vadd.s32 %v675_v9, %v1925_v42  ;;  %v2908_v23 = vrot.slane %v1954_v57, %v1896_v25 }
 0x115   : > { %v903_v16 = vmul.f32 %v2022_v2, %v2907_v50  ;;  %v2428_v19 = vadd.s32 1, %v2210_v39  ;;  %1497 = vst [vmem:[%s2314_s15 + $0x190] sm:$0xff] %v661_v20  ;;  %1498 = vst [vmem:[%s2314_s15 + $0x198] sm:$0xff] %v662_v5  ;;  %v905_v42 = vfloor.f32 %v2246_v60  ;;  %v906_v31 = vfloor.f32 %v2252_v4 }
 0x116   : > { %v904_v35 = vmul.f32 %v2022_v2, %v2908_v23  ;;  %1499 = vst [vmem:[%s2314_s15 + $0x1c0] sm:$0xff] %v676_v28  ;;  %1500 = vst [vmem:[%s2314_s15 + $0x1c8] sm:$0xff] %v677_v47  ;;  %v2909_v27 = vrot.slane %v1962_v61, %v1888_v21  ;;  %v2910_v13 = vrot.slane %v1962_v61, %v1890_v22  ;;  %v2471_v20 = vadd.s32 1, %v2212_v58 }
 0x117   : > { %1501 = vst [vmem:[%s2314_s15 + $0x1d0] sm:$0xff] %v678_v14  ;;  %1502 = vst [vmem:[%s2314_s15 + $0x1d8] sm:$0xff] %v679_v37  ;;  %v907_v57 = vfloor.f32 %v903_v16  ;;  %v1597_v48 = vtrunc.f32 %v905_v42  ;;  %v1599_v34 = vtrunc.f32 %v906_v31  ;;  %v914_v40 = vmul.f32 %v912_v36, %v905_v42 }
 0x118   : > { %v908_v17 = vfloor.f32 %v904_v35  ;;  %v807_v6 = vmul.f32 %v2016_v7, %v2909_v27  ;;  %v808_v12 = vmul.f32 %v2016_v7, %v2910_v13  ;;  %v915_v60 = vmul.f32 %v912_v36, %v906_v31 }
 0x119   : > { %v1601_v3 = vtrunc.f32 %v907_v57  ;;  %v916_v32 = vmul.f32 %v912_v36, %v907_v57  ;;  %v1598_v62 = vcvt.f32.s32 %v1597_v48  ;;  %v1600_v53 = vcvt.f32.s32 %v1599_v34 }
 0x11a   : > { %v1603_v4 = vtrunc.f32 %v908_v17  ;;  %v917_v1 = vmul.f32 %v912_v36, %v908_v17  ;;  %v918_v52 = vadd.f32 -1.0, %v914_v40  ;;  %v919_v43 = vadd.f32 -1.0, %v915_v60  ;;  %v818_v36 = vpop.permute.xlu0 %817 }
 0x11b   : > { %v1602_v10 = vcvt.f32.s32 %v1601_v3  ;;  %v920_v49 = vadd.f32 -1.0, %v916_v32  ;;  %v2911_v51 = vrot.slane %v1962_v61, %v1894_v24  ;;  %v2912_v56 = vrot.slane %v1902_v29, %v1888_v21 }
 0x11c   : > { %v921_v63 = vadd.f32 -1.0, %v917_v1  ;;  %v1604_v26 = vcvt.f32.s32 %v1603_v4  ;;  %v2913_v55 = vrot.slane %v1902_v29, %v1890_v22  ;;  %v2914_v15 = vrot.slane %v1962_v61, %v1896_v25 }
 0x11d   : > { %v809_v8 = vmul.f32 %v2016_v7, %v2911_v51  ;;  %v943_v59 = vsub.f32 %v2912_v56, %v918_v52  ;;  %v2460_v18 = vmul.u32 805459861, %v1598_v62  ;;  %v2462_v30 = vmul.u32 805459861, %v1600_v53 }
 0x11e   : > { %v944_v41 = vsub.f32 %v2913_v55, %v919_v43  ;;  %v810_v45 = vmul.f32 %v2016_v7, %v2914_v15  ;;  %v2915_v54 = vrot.slane %v1902_v29, %v1894_v24  ;;  %v2916_v0 = vrot.slane %v1902_v29, %v1896_v25 }
 0x11f   : > { %v2474_v5 = vadd.s32 1, %v2214_v11  ;;  %v947_v61 = vmul.f32 %v943_v59, %v2022_v2  ;;  %v2479_v47 = vadd.s32 1, %v2425_v38  ;;  %v2481_v14 = vmul.u32 805459861, %v1602_v10 }
 0x120   : > { %v945_v44 = vsub.f32 %v2915_v54, %v920_v49  ;;  %v946_v9 = vsub.f32 %v2916_v0, %v921_v63  ;;  %v948_v28 = vmul.f32 %v944_v41, %v2022_v2  ;;  %v811_v50 = vfloor.f32 %v807_v6 }
 0x121   : > { %1515 = vst [vmem:[%s2109_s13 + $0xa0] sm:$0xff] %v947_v61  ;;  %v812_v16 = vfloor.f32 %v808_v12  ;;  %v813_v23 = vfloor.f32 %v809_v8  ;;  %v814_v35 = vfloor.f32 %v810_v45  ;;  %v2487_v42 = vmul.u32 805459861, %v1604_v26 }
 0x122   : > { %v949_v29 = vmul.f32 %v945_v44, %v2022_v2  ;;  %v950_v37 = vmul.f32 %v946_v9, %v2022_v2  ;;  %1516 = vst [vmem:[%s2109_s13 + $0xa8] sm:$0xff] %v948_v28  ;;  %v2490_v31 = vadd.s32 805459861, %v2460_v18  ;;  %v2493_v57 = vadd.s32 805459861, %v2462_v30 }
 0x123   : > { %v844_v2 = vrot.slane %v1908_v33, %v1896_v25  ;;  %v1589_v17 = vtrunc.f32 %v811_v50  ;;  %v1591_v27 = vtrunc.f32 %v812_v16  ;;  %v1593_v6 = vtrunc.f32 %v813_v23 }
 0x124   : > { %1517 = vst [vmem:[%s2109_s13 + $0xb0] sm:$0xff] %v949_v29  ;;  %1518 = vst [vmem:[%s2109_s13 + $0xb8] sm:$0xff] %v950_v37  ;;  %v1595_v13 = vtrunc.f32 %v814_v35  ;;  %v820_v12 = vmul.f32 %v818_v36, %v811_v50  ;;  %v821_v48 = vmul.f32 %v818_v36, %v812_v16  ;;  %v822_v34 = vmul.f32 %v818_v36, %v813_v23 }
 0x125   : > { %v823_v40 = vmul.f32 %v818_v36, %v814_v35  ;;  %v1590_v60 = vcvt.f32.s32 %v1589_v17  ;;  %v1592_v3 = vcvt.f32.s32 %v1591_v27  ;;  %v1594_v4 = vcvt.f32.s32 %v1593_v6 }
 0x126   : > { %v1596_v32 = vcvt.f32.s32 %v1595_v13  ;;  %v2500_v1 = vadd.s32 805459861, %v2481_v14  ;;  %v2503_v62 = vadd.s32 805459861, %v2487_v42  ;;  %v824_v53 = vadd.f32 -1.0, %v820_v12 }
 0x127   : > { %v825_v52 = vadd.f32 -1.0, %v821_v48  ;;  %v865_v43 = vmul.u32 2654435761, %v1590_v60  ;;  %v866_v10 = vmul.u32 2654435761, %v1592_v3  ;;  %v2505_v49 = vadd.f32 -1.0, %v822_v34 }
 0x128   : > { %v2507_v63 = vadd.f32 -1.0, %v823_v40  ;;  %v867_v51 = vmul.u32 2654435761, %v1594_v4  ;;  %v868_v8 = vmul.u32 2654435761, %v1596_v32  ;;  %v2917_v26 = vrot.slane %v1908_v33, %v1888_v21 }
 0x129   : > { %v2918_v59 = vrot.slane %v1908_v33, %v1890_v22  ;;  %v965_v41 = vxor.u32 %v2210_v39, %v865_v43  ;;  %v966_v15 = vxor.u32 %v2212_v58, %v866_v10  ;;  %v2521_v45 = vadd.s32 2654435761, %v865_v43 }
 0x12a   : > { %v2512_v56 = vsub.f32 %v2917_v26, %v824_v53  ;;  %v2523_v54 = vadd.s32 2654435761, %v866_v10  ;;  %v967_v44 = vxor.u32 %v2214_v11, %v867_v51  ;;  %v968_v0 = vxor.u32 %v2425_v38, %v868_v8 }
 0x12b   : > { %v2517_v55 = vsub.f32 %v2918_v59, %v825_v52  ;;  %v2527_v21 = vadd.s32 2654435761, %v867_v51  ;;  %v2529_v9 = vadd.s32 2654435761, %v868_v8  ;;  %v969_v22 = vxor.u32 %v965_v41, %v2460_v18 }
 0x12c   : > { %v970_v61 = vxor.u32 %v966_v15, %v2462_v30  ;;  %v989_v28 = vxor.u32 %v2490_v31, %v965_v41  ;;  %v990_v29 = vxor.u32 %v2493_v57, %v966_v15  ;;  %v971_v37 = vxor.u32 %v967_v44, %v2481_v14 }
 0x12d   : > { %v972_v50 = vxor.u32 %v968_v0, %v2487_v42  ;;  %v991_v16 = vxor.u32 %v2500_v1, %v967_v44  ;;  %v992_v23 = vxor.u32 %v2503_v62, %v968_v0  ;;  %v973_v35 = vand.u32 65535, %v969_v22 }
 0x12e   : > { %v974_v36 = vand.u32 65535, %v970_v61  ;;  %v993_v17 = vand.u32 65535, %v989_v28  ;;  %v994_v27 = vand.u32 65535, %v990_v29  ;;  %v975_v6 = vand.u32 65535, %v971_v37 }
 0x12f   : > { %v976_v13 = vand.u32 65535, %v972_v50  ;;  %v995_v12 = vand.u32 65535, %v991_v16  ;;  %v996_v48 = vand.u32 65535, %v992_v23  ;;  %v977_v34 = vadd.s32 %v973_v35, %v1932_v46 }
 0x130   : > { %v978_v40 = vadd.s32 %v974_v36, %v1932_v46  ;;  %v997_v60 = vadd.s32 %v993_v17, %v1932_v46  ;;  %v998_v3 = vadd.s32 %v994_v27, %v1932_v46  ;;  %v979_v4 = vadd.s32 %v975_v6, %v1932_v46 }
 0x131   : > { %v980_v32 = vadd.s32 %v976_v13, %v1932_v46  ;;  %v999_v53 = vadd.s32 %v995_v12, %v1932_v46  ;;  %v1000_v52 = vadd.s32 %v996_v48, %v1932_v46  ;;  %981 = vst [vmem:[%s2314_s15 + $0x20] sm:$0xff] %v977_v34  ;;  %v1009_v26 = vxor.u32 %v2210_v39, %v2521_v45 }
 0x132   : > { %982 = vst [vmem:[%s2314_s15 + $0x28] sm:$0xff] %v978_v40  ;;  %1519 = vst [vmem:[%s2314_s15 + $0x60] sm:$0xff] %v997_v60  ;;  %v1010_v59 = vxor.u32 %v2212_v58, %v2523_v54  ;;  %v1011_v41 = vxor.u32 %v2214_v11, %v2527_v21  ;;  %v1012_v15 = vxor.u32 %v2425_v38, %v2529_v9 }
 0x133   : > { %1520 = vst [vmem:[%s2314_s15 + $0x68] sm:$0xff] %v998_v3  ;;  %983 = vst [vmem:[%s2314_s15 + $0x30] sm:$0xff] %v979_v4  ;;  %v1049_v44 = vxor.u32 %v2428_v19, %v865_v43  ;;  %v1050_v0 = vxor.u32 %v2471_v20, %v866_v10  ;;  %v1051_v22 = vxor.u32 %v2474_v5, %v867_v51 }
 0x134   : > { %984 = vst [vmem:[%s2314_s15 + $0x38] sm:$0xff] %v980_v32  ;;  %1521 = vst [vmem:[%s2314_s15 + $0x70] sm:$0xff] %v999_v53  ;;  %v1052_v39 = vxor.u32 %v2479_v47, %v868_v8  ;;  %v1013_v58 = vxor.u32 %v1009_v26, %v2460_v18  ;;  %v1014_v61 = vxor.u32 %v1010_v59, %v2462_v30 }
 0x135   : > { %1522 = vst [vmem:[%s2314_s15 + $0x78] sm:$0xff] %v1000_v52  ;;  %v1015_v11 = vxor.u32 %v1011_v41, %v2481_v14  ;;  %v1016_v38 = vxor.u32 %v1012_v15, %v2487_v42  ;;  %v1029_v28 = vxor.u32 %v1009_v26, %v2490_v31  ;;  %v1030_v29 = vxor.u32 %v1010_v59, %v2493_v57 }
 0x136   : > { %v1031_v43 = vxor.u32 %v1011_v41, %v2500_v1  ;;  %v1032_v10 = vxor.u32 %v1012_v15, %v2503_v62  ;;  %v1017_v37 = vand.u32 65535, %v1013_v58  ;;  %v1018_v51 = vand.u32 65535, %v1014_v61 }
 0x137   : > { %v1019_v8 = vand.u32 65535, %v1015_v11  ;;  %v1020_v50 = vand.u32 65535, %v1016_v38  ;;  %v1033_v16 = vand.u32 65535, %v1029_v28  ;;  %v1034_v23 = vand.u32 65535, %v1030_v29 }
 0x138   : > { %v1035_v35 = vand.u32 65535, %v1031_v43  ;;  %v1036_v36 = vand.u32 65535, %v1032_v10  ;;  %v1021_v17 = vadd.s32 %v1017_v37, %v1932_v46  ;;  %v1022_v27 = vadd.s32 %v1018_v51, %v1932_v46 }
 0x139   : > { %v1023_v6 = vadd.s32 %v1019_v8, %v1932_v46  ;;  %v1024_v13 = vadd.s32 %v1020_v50, %v1932_v46  ;;  %v1037_v12 = vadd.s32 %v1033_v16, %v1932_v46  ;;  %v1038_v48 = vadd.s32 %v1034_v23, %v1932_v46 }
 0x13a   : > { %v1039_v34 = vadd.s32 %v1035_v35, %v1932_v46  ;;  %v1040_v40 = vadd.s32 %v1036_v36, %v1932_v46  ;;  %1523 = vst [vmem:[%s2314_s15 + $0xa0] sm:$0xff] %v1021_v17  ;;  %1524 = vst [vmem:[%s2314_s15 + $0xa8] sm:$0xff] %v1022_v27  ;;  %v1053_v60 = vxor.u32 %v1049_v44, %v2460_v18 }
 0x13b   : > { %1525 = vst [vmem:[%s2314_s15 + $0xb0] sm:$0xff] %v1023_v6  ;;  %1526 = vst [vmem:[%s2314_s15 + $0xb8] sm:$0xff] %v1024_v13  ;;  %v1054_v3 = vxor.u32 %v1050_v0, %v2462_v30  ;;  %v1055_v4 = vxor.u32 %v1051_v22, %v2481_v14  ;;  %v1056_v32 = vxor.u32 %v1052_v39, %v2487_v42 }
 0x13c   : > { %1527 = vst [vmem:[%s2314_s15 + $0xe0] sm:$0xff] %v1037_v12  ;;  %1528 = vst [vmem:[%s2314_s15 + $0xe8] sm:$0xff] %v1038_v48  ;;  %v1069_v53 = vxor.u32 %v1049_v44, %v2490_v31  ;;  %v1070_v52 = vxor.u32 %v1050_v0, %v2493_v57  ;;  %v1071_v26 = vxor.u32 %v1051_v22, %v2500_v1  ;;  %v1057_v41 = vand.u32 65535, %v1053_v60  ;;  %v1151_v48 = vld [vmem:[%s2314_s15 + $0x10] sm:$0xff] (%p2920_p12)  ;;  %v1157_v60 = vld [vmem:[%s2314_s15 + $0x28] sm:$0xff] (%p2920_p12) }
 0x13d   : > { %1529 = vst [vmem:[%s2314_s15 + $0xf0] sm:$0xff] %v1039_v34  ;;  %1530 = vst [vmem:[%s2314_s15 + $0xf8] sm:$0xff] %v1040_v40  ;;  %v1072_v59 = vxor.u32 %v1052_v39, %v2503_v62  ;;  %v1058_v15 = vand.u32 65535, %v1054_v3  ;;  %v1059_v58 = vand.u32 65535, %v1055_v4  ;;  %v1060_v61 = vand.u32 65535, %v1056_v32  ;;  %v1153_v34 = vld [vmem:[%s2314_s15 + $0x18] sm:$0xff] (%p2920_p12) }
 0x13e   : > { %v1073_v11 = vand.u32 65535, %v1069_v53  ;;  %v1074_v38 = vand.u32 65535, %v1070_v52  ;;  %v1075_v28 = vand.u32 65535, %v1071_v26  ;;  %v1061_v44 = vadd.s32 %v1057_v41, %v1932_v46  ;;  %v1155_v40 = vld [vmem:[%s2314_s15 + $0x20] sm:$0xff] (%p2920_p12)  ;;  %1152 = vst [vmem:[%s2674_s25 + $0x10] sm:$0xff] (%p2920_p12), %v1151_v48  ;;  %1154 = vst [vmem:[%s2674_s25 + $0x18] sm:$0xff] (%p2920_p12), %v1153_v34 }
 0x13f   : > { %v1076_v29 = vand.u32 65535, %v1072_v59  ;;  %v1062_v0 = vadd.s32 %v1058_v15, %v1932_v46  ;;  %v1063_v22 = vadd.s32 %v1059_v58, %v1932_v46  ;;  %v1064_v39 = vadd.s32 %v1060_v61, %v1932_v46  ;;  %1156 = vst [vmem:[%s2674_s25 + $0x40] sm:$0xff] (%p2920_p12), %v1155_v40  ;;  %1158 = vst [vmem:[%s2674_s25 + $0x48] sm:$0xff] (%p2920_p12), %v1157_v60  ;;  %v1159_v3 = vld [vmem:[%s2314_s15 + $0x30] sm:$0xff] (%p2920_p12)  ;;  %v1161_v4 = vld [vmem:[%s2314_s15 + $0x38] sm:$0xff] (%p2920_p12) }
 0x140   : > { %v1077_v43 = vadd.s32 %v1073_v11, %v1932_v46  ;;  %v1078_v10 = vadd.s32 %v1074_v38, %v1932_v46  ;;  %v1079_v37 = vadd.s32 %v1075_v28, %v1932_v46  ;;  %1531 = vst [vmem:[%s2314_s15 + $0x120] sm:$0xff] %v1061_v44  ;;  %v1085_v8 = vxor.u32 %v2428_v19, %v2521_v45  ;;  %v1163_v32 = vld [vmem:[%s2314_s15 + $0x40] sm:$0xff] (%p2920_p12)  ;;  %v1165_v53 = vld [vmem:[%s2314_s15 + $0x48] sm:$0xff] (%p2920_p12)  ;;  %v1167_v52 = vld [vmem:[%s2314_s15 + $0x50] sm:$0xff] (%p2920_p12) }
 0x141   : > { %v1080_v51 = vadd.s32 %v1076_v29, %v1932_v46  ;;  %1532 = vst [vmem:[%s2314_s15 + $0x128] sm:$0xff] %v1062_v0  ;;  %1533 = vst [vmem:[%s2314_s15 + $0x130] sm:$0xff] %v1063_v22  ;;  %v1086_v50 = vxor.u32 %v2471_v20, %v2523_v54  ;;  %v1087_v16 = vxor.u32 %v2474_v5, %v2527_v21  ;;  %v1169_v26 = vld [vmem:[%s2314_s15 + $0x58] sm:$0xff] (%p2920_p12)  ;;  %v1171_v59 = vld [vmem:[%s2314_s15 + $0x60] sm:$0xff] (%p2920_p12) }
 0x142   : > { %1534 = vst [vmem:[%s2314_s15 + $0x138] sm:$0xff] %v1064_v39  ;;  %v1088_v23 = vxor.u32 %v2479_v47, %v2529_v9  ;;  %1535 = vst [vmem:[%s2314_s15 + $0x160] sm:$0xff] %v1077_v43  ;;  %v2919_v35 = vrot.slane %v1908_v33, %v1894_v24  ;;  %v852_v20 = vsub.f32 %v844_v2, %v2507_v63  ;;  %v1173_v41 = vld [vmem:[%s2314_s15 + $0x68] sm:$0xff] (%p2920_p12)  ;;  %v1175_v15 = vld [vmem:[%s2314_s15 + $0x70] sm:$0xff] (%p2920_p12) }
 0x143   : > { %1536 = vst [vmem:[%s2314_s15 + $0x168] sm:$0xff] %v1078_v10  ;;  %1537 = vst [vmem:[%s2314_s15 + $0x170] sm:$0xff] %v1079_v37  ;;  %v853_v5 = vmul.f32 %v2512_v56, %v2016_v7  ;;  %v854_v47 = vmul.f32 %v2517_v55, %v2016_v7  ;;  %v1089_v45 = vxor.u32 %v1085_v8, %v2460_v18  ;;  %v1177_v58 = vld [vmem:[%s2314_s15 + $0x78] sm:$0xff] (%p2920_p12)  ;;  %v1179_v61 = vld [vmem:[%s2314_s15 + $0x80] sm:$0xff] (%p2920_p12) }
 0x144   : > { %1538 = vst [vmem:[%s2314_s15 + $0x178] sm:$0xff] %v1080_v51  ;;  %v851_v19 = vsub.f32 %v2919_v35, %v2505_v49  ;;  %v1090_v54 = vxor.u32 %v1086_v50, %v2462_v30  ;;  %v1091_v21 = vxor.u32 %v1087_v16, %v2481_v14  ;;  %v1092_v24 = vxor.u32 %v1088_v23, %v2487_v42  ;;  %v1181_v11 = vld [vmem:[%s2314_s15 + $0x88] sm:$0xff] (%p2920_p12)  ;;  %v1183_v38 = vld [vmem:[%s2314_s15 + $0x90] sm:$0xff] (%p2920_p12)  ;;  %v1185_v28 = vld [vmem:[%s2314_s15 + $0x98] sm:$0xff] (%p2920_p12) }
 0x145   : > { %v1105_v49 = vxor.u32 %v1085_v8, %v2490_v31  ;;  %v1106_v9 = vxor.u32 %v1086_v50, %v2493_v57  ;;  %v1107_v25 = vxor.u32 %v1087_v16, %v2500_v1  ;;  %v1108_v33 = vxor.u32 %v1088_v23, %v2503_v62  ;;  %1508 = vst [vmem:[%s2109_s13 + $0x60] sm:$0xff] %v853_v5  ;;  %v1187_v29 = vld [vmem:[%s2314_s15 + $0xa0] sm:$0xff] (%p2920_p12)  ;;  %v1189_v44 = vld [vmem:[%s2314_s15 + $0xa8] sm:$0xff] (%p2920_p12)  ;;  %v1191_v0 = vld [vmem:[%s2314_s15 + $0xb0] sm:$0xff] (%p2920_p12) }
 0x146   : > { %1509 = vst [vmem:[%s2109_s13 + $0x68] sm:$0xff] %v854_v47  ;;  %v1093_v2 = vand.u32 65535, %v1089_v45  ;;  %v1094_v63 = vand.u32 65535, %v1090_v54  ;;  %v1095_v18 = vand.u32 65535, %v1091_v21  ;;  %v1096_v30 = vand.u32 65535, %v1092_v24  ;;  %1160 = vst [vmem:[%s2674_s25 + $0x50] sm:$0xff] (%p2920_p12), %v1159_v3 }
 0x147   : > { %v1109_v14 = vand.u32 65535, %v1105_v49  ;;  %v1110_v42 = vand.u32 65535, %v1106_v9  ;;  %v1111_v56 = vand.u32 65535, %v1107_v25  ;;  %v1112_v31 = vand.u32 65535, %v1108_v33  ;;  %1162 = vst [vmem:[%s2674_s25 + $0x58] sm:$0xff] (%p2920_p12), %v1161_v4  ;;  %1164 = vst [vmem:[%s2674_s25 + $0x80] sm:$0xff] (%p2920_p12), %v1163_v32 }
 0x148   : > { %v1097_v57 = vadd.s32 %v1093_v2, %v1932_v46  ;;  %v1098_v1 = vadd.s32 %v1094_v63, %v1932_v46  ;;  %v1099_v62 = vadd.s32 %v1095_v18, %v1932_v46  ;;  %v1100_v55 = vadd.s32 %v1096_v30, %v1932_v46  ;;  %1131 = sbr.rel (!%p2920_p12) target bundleno = 363 (0x16b), region = 44  ;;  %1166 = vst [vmem:[%s2674_s25 + $0x88] sm:$0xff] (%p2920_p12), %v1165_v53  ;;  %v1193_v22 = vld [vmem:[%s2314_s15 + $0xb8] sm:$0xff] (%p2920_p12)  ;;  %v1195_v39 = vld [vmem:[%s2314_s15 + $0xc0] sm:$0xff] (%p2920_p12)  ;;  %v1197_v43 = vld [vmem:[%s2314_s15 + $0xc8] sm:$0xff] (%p2920_p12) }
 0x149   : > { %v1113_v36 = vadd.s32 %v1109_v14, %v1932_v46  ;;  %v1114_v17 = vadd.s32 %v1110_v42, %v1932_v46  ;;  %v1115_v27 = vadd.s32 %v1111_v56, %v1932_v46  ;;  %v1116_v6 = vadd.s32 %v1112_v31, %v1932_v46  ;;  %v1147_v46 = vld [vmem:[%s2314_s15] sm:$0xff] (%p2920_p12)  ;;  %1168 = vst [vmem:[%s2674_s25 + $0x90] sm:$0xff] (%p2920_p12), %v1167_v52  ;;  %v1199_v10 = vld [vmem:[%s2314_s15 + $0xd0] sm:$0xff] (%p2920_p12)  ;;  %v1201_v37 = vld [vmem:[%s2314_s15 + $0xd8] sm:$0xff] (%p2920_p12) }
 0x14a   : > { %1539 = vst [vmem:[%s2314_s15 + $0x1a0] sm:$0xff] %v1097_v57  ;;  %1540 = vst [vmem:[%s2314_s15 + $0x1a8] sm:$0xff] %v1098_v1  ;;  %v855_v13 = vmul.f32 %v851_v19, %v2016_v7  ;;  %v856_v12 = vmul.f32 %v852_v20, %v2016_v7  ;;  %v1149_v7 = vld [vmem:[%s2314_s15 + $0x8] sm:$0xff] (%p2920_p12)  ;;  %v1203_v51 = vld [vmem:[%s2314_s15 + $0xe0] sm:$0xff] (%p2920_p12) }
 0x14b   : > { %1541 = vst [vmem:[%s2314_s15 + $0x1b0] sm:$0xff] %v1099_v62  ;;  %1542 = vst [vmem:[%s2314_s15 + $0x1b8] sm:$0xff] %v1100_v55  ;;  %v1205_v8 = vld [vmem:[%s2314_s15 + $0xe8] sm:$0xff] (%p2920_p12)  ;;  %v1207_v50 = vld [vmem:[%s2314_s15 + $0xf0] sm:$0xff] (%p2920_p12) }
 0x14c   : > { %1543 = vst [vmem:[%s2314_s15 + $0x1e0] sm:$0xff] %v1113_v36  ;;  %1544 = vst [vmem:[%s2314_s15 + $0x1e8] sm:$0xff] %v1114_v17  ;;  %v1209_v16 = vld [vmem:[%s2314_s15 + $0xf8] sm:$0xff] (%p2920_p12)  ;;  %v1211_v23 = vld [vmem:[%s2314_s15 + $0x100] sm:$0xff] (%p2920_p12) }
 0x14d   : > { %1545 = vst [vmem:[%s2314_s15 + $0x1f0] sm:$0xff] %v1115_v27  ;;  %1546 = vst [vmem:[%s2314_s15 + $0x1f8] sm:$0xff] %v1116_v6  ;;  %v1213_v35 = vld [vmem:[%s2314_s15 + $0x108] sm:$0xff] (%p2920_p12)  ;;  %v1215_v19 = vld [vmem:[%s2314_s15 + $0x110] sm:$0xff] (%p2920_p12) }
 0x14e   : > { %1510 = vst [vmem:[%s2109_s13 + $0x70] sm:$0xff] %v855_v13  ;;  %1511 = vst [vmem:[%s2109_s13 + $0x78] sm:$0xff] %v856_v12  ;;  %v1217_v20 = vld [vmem:[%s2314_s15 + $0x118] sm:$0xff] (%p2920_p12)  ;;  %v1219_v5 = vld [vmem:[%s2314_s15 + $0x120] sm:$0xff] (%p2920_p12) }
 0x14f   : > { %1148 = vst [vmem:[%s2674_s25] sm:$0xff] %v1147_v46  ;;  %1150 = vst [vmem:[%s2674_s25 + $0x8] sm:$0xff] %v1149_v7  ;;  %v1221_v47 = vld [vmem:[%s2314_s15 + $0x128] sm:$0xff]  ;;  %v1223_v45 = vld [vmem:[%s2314_s15 + $0x130] sm:$0xff] }
 0x150   : > { %1170 = vst [vmem:[%s2674_s25 + $0x98] sm:$0xff] %v1169_v26  ;;  %1172 = vst [vmem:[%s2674_s25 + $0xc0] sm:$0xff] %v1171_v59  ;;  %v1225_v54 = vld [vmem:[%s2314_s15 + $0x138] sm:$0xff]  ;;  %v1227_v21 = vld [vmem:[%s2314_s15 + $0x140] sm:$0xff] }
 0x151   : > { %1174 = vst [vmem:[%s2674_s25 + $0xc8] sm:$0xff] %v1173_v41  ;;  %1176 = vst [vmem:[%s2674_s25 + $0xd0] sm:$0xff] %v1175_v15  ;;  %v1229_v24 = vld [vmem:[%s2314_s15 + $0x148] sm:$0xff]  ;;  %v1231_v49 = vld [vmem:[%s2314_s15 + $0x150] sm:$0xff] }
 0x152   : > { %1178 = vst [vmem:[%s2674_s25 + $0xd8] sm:$0xff] %v1177_v58  ;;  %1180 = vst [vmem:[%s2674_s25 + $0x100] sm:$0xff] %v1179_v61  ;;  %v1233_v9 = vld [vmem:[%s2314_s15 + $0x158] sm:$0xff]  ;;  %v1235_v25 = vld [vmem:[%s2314_s15 + $0x160] sm:$0xff] }
 0x153   : > { %1182 = vst [vmem:[%s2674_s25 + $0x108] sm:$0xff] %v1181_v11  ;;  %1184 = vst [vmem:[%s2674_s25 + $0x110] sm:$0xff] %v1183_v38  ;;  %v1237_v33 = vld [vmem:[%s2314_s15 + $0x168] sm:$0xff]  ;;  %v1239_v2 = vld [vmem:[%s2314_s15 + $0x170] sm:$0xff] }
 0x154   : > { %1186 = vst [vmem:[%s2674_s25 + $0x118] sm:$0xff] %v1185_v28  ;;  %1188 = vst [vmem:[%s2674_s25 + $0x140] sm:$0xff] %v1187_v29  ;;  %v1241_v63 = vld [vmem:[%s2314_s15 + $0x178] sm:$0xff]  ;;  %v1243_v18 = vld [vmem:[%s2314_s15 + $0x180] sm:$0xff] }
 0x155   : > { %1190 = vst [vmem:[%s2674_s25 + $0x148] sm:$0xff] %v1189_v44  ;;  %1192 = vst [vmem:[%s2674_s25 + $0x150] sm:$0xff] %v1191_v0  ;;  %v1245_v30 = vld [vmem:[%s2314_s15 + $0x188] sm:$0xff]  ;;  %v1247_v14 = vld [vmem:[%s2314_s15 + $0x190] sm:$0xff] }
 0x156   : > { %1194 = vst [vmem:[%s2674_s25 + $0x158] sm:$0xff] %v1193_v22  ;;  %1196 = vst [vmem:[%s2674_s25 + $0x180] sm:$0xff] %v1195_v39  ;;  %v1249_v42 = vld [vmem:[%s2314_s15 + $0x198] sm:$0xff]  ;;  %v1251_v56 = vld [vmem:[%s2314_s15 + $0x1a0] sm:$0xff] }
 0x157   : > { %1198 = vst [vmem:[%s2674_s25 + $0x188] sm:$0xff] %v1197_v43  ;;  %1200 = vst [vmem:[%s2674_s25 + $0x190] sm:$0xff] %v1199_v10  ;;  %v1253_v31 = vld [vmem:[%s2314_s15 + $0x1a8] sm:$0xff]  ;;  %v1255_v57 = vld [vmem:[%s2314_s15 + $0x1b0] sm:$0xff] }
 0x158   : > { %1202 = vst [vmem:[%s2674_s25 + $0x198] sm:$0xff] %v1201_v37  ;;  %1204 = vst [vmem:[%s2674_s25 + $0x1c0] sm:$0xff] %v1203_v51  ;;  %v1257_v1 = vld [vmem:[%s2314_s15 + $0x1b8] sm:$0xff]  ;;  %v1259_v62 = vld [vmem:[%s2314_s15 + $0x1c0] sm:$0xff] }
 0x159   : > { %1206 = vst [vmem:[%s2674_s25 + $0x1c8] sm:$0xff] %v1205_v8  ;;  %1208 = vst [vmem:[%s2674_s25 + $0x1d0] sm:$0xff] %v1207_v50  ;;  %v1261_v55 = vld [vmem:[%s2314_s15 + $0x1c8] sm:$0xff]  ;;  %v1263_v36 = vld [vmem:[%s2314_s15 + $0x1d0] sm:$0xff] }
 0x15a   : > { %1210 = vst [vmem:[%s2674_s25 + $0x1d8] sm:$0xff] %v1209_v16  ;;  %1212 = vst [vmem:[%s2674_s25 + $0x200] sm:$0xff] %v1211_v23  ;;  %v1265_v17 = vld [vmem:[%s2314_s15 + $0x1d8] sm:$0xff]  ;;  %v1267_v27 = vld [vmem:[%s2314_s15 + $0x1e0] sm:$0xff] }
 0x15b   : > { %1214 = vst [vmem:[%s2674_s25 + $0x208] sm:$0xff] %v1213_v35  ;;  %1216 = vst [vmem:[%s2674_s25 + $0x210] sm:$0xff] %v1215_v19  ;;  %v1269_v6 = vld [vmem:[%s2314_s15 + $0x1e8] sm:$0xff]  ;;  %v1271_v13 = vld [vmem:[%s2314_s15 + $0x1f0] sm:$0xff] }
 0x15c   : > { %1218 = vst [vmem:[%s2674_s25 + $0x218] sm:$0xff] %v1217_v20  ;;  %1220 = vst [vmem:[%s2674_s25 + $0x240] sm:$0xff] %v1219_v5  ;;  %v1273_v12 = vld [vmem:[%s2314_s15 + $0x1f8] sm:$0xff] }
 0x15d   : > { %1222 = vst [vmem:[%s2674_s25 + $0x248] sm:$0xff] %v1221_v47  ;;  %1224 = vst [vmem:[%s2674_s25 + $0x250] sm:$0xff] %v1223_v45 }
 0x15e   : > { %1226 = vst [vmem:[%s2674_s25 + $0x258] sm:$0xff] %v1225_v54  ;;  %1228 = vst [vmem:[%s2674_s25 + $0x280] sm:$0xff] %v1227_v21 }
 0x15f   : > { %1230 = vst [vmem:[%s2674_s25 + $0x288] sm:$0xff] %v1229_v24  ;;  %1232 = vst [vmem:[%s2674_s25 + $0x290] sm:$0xff] %v1231_v49 }
 0x160   : > { %1234 = vst [vmem:[%s2674_s25 + $0x298] sm:$0xff] %v1233_v9  ;;  %1236 = vst [vmem:[%s2674_s25 + $0x2c0] sm:$0xff] %v1235_v25 }
 0x161   : > { %1238 = vst [vmem:[%s2674_s25 + $0x2c8] sm:$0xff] %v1237_v33  ;;  %1240 = vst [vmem:[%s2674_s25 + $0x2d0] sm:$0xff] %v1239_v2 }
 0x162   : > { %1242 = vst [vmem:[%s2674_s25 + $0x2d8] sm:$0xff] %v1241_v63  ;;  %1244 = vst [vmem:[%s2674_s25 + $0x300] sm:$0xff] %v1243_v18 }
 0x163   : > { %1246 = vst [vmem:[%s2674_s25 + $0x308] sm:$0xff] %v1245_v30  ;;  %1248 = vst [vmem:[%s2674_s25 + $0x310] sm:$0xff] %v1247_v14 }
 0x164   : > { %1250 = vst [vmem:[%s2674_s25 + $0x318] sm:$0xff] %v1249_v42  ;;  %1252 = vst [vmem:[%s2674_s25 + $0x340] sm:$0xff] %v1251_v56 }
 0x165   : > { %1254 = vst [vmem:[%s2674_s25 + $0x348] sm:$0xff] %v1253_v31  ;;  %1256 = vst [vmem:[%s2674_s25 + $0x350] sm:$0xff] %v1255_v57 }
 0x166   : > { %1258 = vst [vmem:[%s2674_s25 + $0x358] sm:$0xff] %v1257_v1  ;;  %1260 = vst [vmem:[%s2674_s25 + $0x380] sm:$0xff] %v1259_v62 }
 0x167   : > { %1262 = vst [vmem:[%s2674_s25 + $0x388] sm:$0xff] %v1261_v55  ;;  %1264 = vst [vmem:[%s2674_s25 + $0x390] sm:$0xff] %v1263_v36 }
 0x168   : > { %1266 = vst [vmem:[%s2674_s25 + $0x398] sm:$0xff] %v1265_v17  ;;  %1268 = vst [vmem:[%s2674_s25 + $0x3c0] sm:$0xff] %v1267_v27 }
 0x169   : > { %1270 = vst [vmem:[%s2674_s25 + $0x3c8] sm:$0xff] %v1269_v6  ;;  %1272 = vst [vmem:[%s2674_s25 + $0x3d0] sm:$0xff] %v1271_v13 }
 0x16a   : > { %1274 = vst [vmem:[%s2674_s25 + $0x3d8] sm:$0xff] %v1273_v12 }
 0x16b PF: > { %p2921_p13 = scmp.ne.s32.totalorder %s2874_s23, 0 }
 0x16c   : > { %s1555_s28 = sshll.u32 (%p2921_p13), %s1786_s18, 5  ;;  %v1296_v46 = vld [vmem:[%s2109_s13] sm:$0xff] (%p2921_p13)  ;;  %v1298_v7 = vld [vmem:[%s2109_s13 + $0x8] sm:$0xff] (%p2921_p13)  ;;  %v1300_v48 = vld [vmem:[%s2109_s13 + $0x10] sm:$0xff] (%p2921_p13) }
 0x16d   : > { %1280 = sbr.rel (!%p2921_p13) target bundleno = 378 (0x17a), region = 67  ;;  %s2810_s6 = scalar_lea.vmem (%p2921_p13), %s2871_s4, %s1555_s28  ;;  %v1302_v34 = vld [vmem:[%s2109_s13 + $0x18] sm:$0xff] (%p2921_p13)  ;;  %v1304_v40 = vld [vmem:[%s2109_s13 + $0x20] sm:$0xff] (%p2921_p13)  ;;  %v1306_v60 = vld [vmem:[%s2109_s13 + $0x28] sm:$0xff] (%p2921_p13) }
 0x16e   : > { %1297 = vst [vmem:[%s2810_s6] sm:$0xff] (%p2921_p13), %v1296_v46  ;;  %1299 = vst [vmem:[%s2810_s6 + $0x8] sm:$0xff] (%p2921_p13), %v1298_v7  ;;  %v1308_v3 = vld [vmem:[%s2109_s13 + $0x30] sm:$0xff] (%p2921_p13)  ;;  %v1310_v4 = vld [vmem:[%s2109_s13 + $0x38] sm:$0xff] (%p2921_p13) }
 0x16f   : > { %1301 = vst [vmem:[%s2810_s6 + $0x10] sm:$0xff] (%p2921_p13), %v1300_v48  ;;  %1303 = vst [vmem:[%s2810_s6 + $0x18] sm:$0xff] (%p2921_p13), %v1302_v34  ;;  %v1312_v32 = vld [vmem:[%s2109_s13 + $0x40] sm:$0xff] (%p2921_p13)  ;;  %v1314_v53 = vld [vmem:[%s2109_s13 + $0x48] sm:$0xff] (%p2921_p13) }
 0x170   : > { %1305 = vst [vmem:[%s2810_s6 + $0x40] sm:$0xff] (%p2921_p13), %v1304_v40  ;;  %1307 = vst [vmem:[%s2810_s6 + $0x48] sm:$0xff] (%p2921_p13), %v1306_v60  ;;  %v1316_v52 = vld [vmem:[%s2109_s13 + $0x50] sm:$0xff] (%p2921_p13)  ;;  %v1318_v26 = vld [vmem:[%s2109_s13 + $0x58] sm:$0xff] (%p2921_p13) }
 0x171   : > { %1309 = vst [vmem:[%s2810_s6 + $0x50] sm:$0xff] (%p2921_p13), %v1308_v3  ;;  %1311 = vst [vmem:[%s2810_s6 + $0x58] sm:$0xff] (%p2921_p13), %v1310_v4  ;;  %v1320_v59 = vld [vmem:[%s2109_s13 + $0x60] sm:$0xff] (%p2921_p13)  ;;  %v1322_v41 = vld [vmem:[%s2109_s13 + $0x68] sm:$0xff] (%p2921_p13) }
 0x172   : > { %1313 = vst [vmem:[%s2810_s6 + $0x80] sm:$0xff] (%p2921_p13), %v1312_v32  ;;  %1315 = vst [vmem:[%s2810_s6 + $0x88] sm:$0xff] (%p2921_p13), %v1314_v53  ;;  %v1324_v15 = vld [vmem:[%s2109_s13 + $0x70] sm:$0xff] (%p2921_p13)  ;;  %v1326_v58 = vld [vmem:[%s2109_s13 + $0x78] sm:$0xff] (%p2921_p13) }
 0x173   : > { %1317 = vst [vmem:[%s2810_s6 + $0x90] sm:$0xff] (%p2921_p13), %v1316_v52  ;;  %1319 = vst [vmem:[%s2810_s6 + $0x98] sm:$0xff] (%p2921_p13), %v1318_v26  ;;  %v1328_v61 = vld [vmem:[%s2109_s13 + $0x80] sm:$0xff] (%p2921_p13)  ;;  %v1330_v11 = vld [vmem:[%s2109_s13 + $0x88] sm:$0xff] (%p2921_p13) }
 0x174   : > { %1321 = vst [vmem:[%s2810_s6 + $0xc0] sm:$0xff] %v1320_v59  ;;  %1323 = vst [vmem:[%s2810_s6 + $0xc8] sm:$0xff] %v1322_v41  ;;  %v1332_v38 = vld [vmem:[%s2109_s13 + $0x90] sm:$0xff]  ;;  %v1334_v28 = vld [vmem:[%s2109_s13 + $0x98] sm:$0xff] }
 0x175   : > { %1325 = vst [vmem:[%s2810_s6 + $0xd0] sm:$0xff] %v1324_v15  ;;  %1327 = vst [vmem:[%s2810_s6 + $0xd8] sm:$0xff] %v1326_v58  ;;  %v1336_v29 = vld [vmem:[%s2109_s13 + $0xa0] sm:$0xff]  ;;  %v1338_v44 = vld [vmem:[%s2109_s13 + $0xa8] sm:$0xff] }
 0x176   : > { %1329 = vst [vmem:[%s2810_s6 + $0x100] sm:$0xff] %v1328_v61  ;;  %1331 = vst [vmem:[%s2810_s6 + $0x108] sm:$0xff] %v1330_v11  ;;  %v1340_v0 = vld [vmem:[%s2109_s13 + $0xb0] sm:$0xff]  ;;  %v1342_v22 = vld [vmem:[%s2109_s13 + $0xb8] sm:$0xff] }
 0x177   : > { %1333 = vst [vmem:[%s2810_s6 + $0x110] sm:$0xff] %v1332_v38  ;;  %1335 = vst [vmem:[%s2810_s6 + $0x118] sm:$0xff] %v1334_v28 }
 0x178   : > { %1337 = vst [vmem:[%s2810_s6 + $0x140] sm:$0xff] %v1336_v29  ;;  %1339 = vst [vmem:[%s2810_s6 + $0x148] sm:$0xff] %v1338_v44 }
 0x179   : > { %1341 = vst [vmem:[%s2810_s6 + $0x150] sm:$0xff] %v1340_v0  ;;  %1343 = vst [vmem:[%s2810_s6 + $0x158] sm:$0xff] %v1342_v22 }
 0x17a PF: > { %p14_p0 = scmp.ge.s32.totalorder %s1788_s19, 4   ;;  %s2922_s15 = smov %s1737_s16 }
 0x17b   : > { %s2923_s16 = smov %s1796_s22  ;;  %s2924_s17 = smov %s1788_s19 }
 0x17c   :  { %16 = sbr.rel (!%p14_p0) target bundleno = 3 (0x3), region = 144 }
 0x183   :  { %1366 = vsyncpa [#allocation3], 1 }
 0x184   :  { %1368 = vsyncpa [#allocation3 + $0x1], 1 }
 0x185   :  { %1369 = vsyncpa [#allocation5], 1 }

// kernel: forward.3
= control target key start
LH: loop header
LB: loop body
LE: loop exit
PB: predicated region body
PF: predicated region fallthrough
CT: control target
= control target key end

     0   :  { %s1407_s9 = smov 0   ;;  %s1409_s10 = smov 0   ;;  %s2333_s0 = inlined_call_operand.vmem [shape: f32[2,8,16,1024], index: 0, kind: input, shape index: {}]   ;;  %s2334_s1 = inlined_call_operand.vmem [shape: f32[3,16,1024], index: 1, kind: input, shape index: {}]   ;;  %s2335_s2 = inlined_call_operand.vmem [shape: f32[2,16,1024], index: 2, kind: output, shape index: {}]  }
   0x1   :  { %s1411_s11 = smov 0  }
   0x2 LB: > { %s1178_s12 = sadd.s32 4294967295, %s1390_s11   ;;  %s1424_s13 = sadd.s32 1, %s1390_s11   ;;  %s1390_s11 = sphi %s1411_s11, %s2340_s11   ;;  %s1386_s10 = sphi %s1409_s10, %s2339_s10   ;;  %s1382_s9 = sphi %s1407_s9, %s2338_s9  }
   0x3   : > { %s16_s14 = ssub.s32 %s1390_s11, %s1424_s13  ;;  %s19_s15 = sadd.s32 1, %s1386_s10 }
   0x4   : > { %p17_p0 = scmp.eq.s32.totalorder %s16_s14, 0  ;;  %p26_p1 = scmp.ne.s32.totalorder %s1386_s10, %s1382_s9 }
   0x5   : > { %p27_p2 = scmp.eq.s32.totalorder %s1390_s11, 0  ;;  %p82_p3 = scmp.eq.s32.totalorder %s1178_s12, 1 }
   0x6   : > { %s1435_s16 = scalar_select %p17_p0, %s1386_s10, %s19_s15  }
   0x7   : > { %p1437_p4 = por %p27_p2, %p26_p1  ;;  %p1441_p5 = por %p82_p3, %p26_p1 }
   0x8   : > { %p1181_p6 = scmp.ge.s32.totalorder %s1390_s11, 2 }
   0xa   : > { %104 = sbr.rel (%p1181_p6) target bundleno = 102 (0x66), region = 16 }
  0x11   : > { %107 = sbr.rel (!%p1437_p4) target bundleno = 85 (0x55), region = 20  ;;  %s109_s19 = sand.u32 (%p1437_p4), 1, %s1386_s10  }
  0x12   : > { %s1339_s20 = sshll.u32 (%p1437_p4), %s1390_s11, 5  ;;  %s1182_s21 = sshll.u32 (%p1437_p4), %s109_s19, 10 }
  0x13   : > { %s1453_s24 = scalar_lea.vmem (%p1437_p4), %s2333_s0, %s1339_s20  ;;  %s1458_s25 = scalar_lea.vmem (%p1437_p4), [#allocation2], %s1182_s21 }
  0x14   : > { %v127_v0 = vld [vmem:[%s1453_s24] sm:$0xff] (%p1437_p4)  ;;  %v129_v1 = vld [vmem:[%s1453_s24 + $0x8] sm:$0xff] (%p1437_p4)  ;;  %v131_v2 = vld [vmem:[%s1453_s24 + $0x10] sm:$0xff] (%p1437_p4) }
  0x15   : > { %128 = vst [vmem:[%s1458_s25] sm:$0xff] (%p1437_p4), %v127_v0  ;;  %130 = vst [vmem:[%s1458_s25 + $0x8] sm:$0xff] (%p1437_p4), %v129_v1  ;;  %v133_v3 = vld [vmem:[%s1453_s24 + $0x18] sm:$0xff] (%p1437_p4)  ;;  %v135_v4 = vld [vmem:[%s1453_s24 + $0x40] sm:$0xff] (%p1437_p4) }
  0x16   : > { %132 = vst [vmem:[%s1458_s25 + $0x10] sm:$0xff] (%p1437_p4), %v131_v2  ;;  %v137_v5 = vld [vmem:[%s1453_s24 + $0x48] sm:$0xff] (%p1437_p4)  ;;  %134 = vst [vmem:[%s1458_s25 + $0x18] sm:$0xff] (%p1437_p4), %v133_v3  ;;  %v139_v6 = vld [vmem:[%s1453_s24 + $0x50] sm:$0xff] (%p1437_p4) }
  0x17   : > { %136 = vst [vmem:[%s1458_s25 + $0x20] sm:$0xff] (%p1437_p4), %v135_v4  ;;  %138 = vst [vmem:[%s1458_s25 + $0x28] sm:$0xff] (%p1437_p4), %v137_v5  ;;  %v141_v7 = vld [vmem:[%s1453_s24 + $0x58] sm:$0xff] (%p1437_p4)  ;;  %v143_v8 = vld [vmem:[%s1453_s24 + $0x80] sm:$0xff] (%p1437_p4) }
  0x18   : > { %140 = vst [vmem:[%s1458_s25 + $0x30] sm:$0xff] %v139_v6  ;;  %142 = vst [vmem:[%s1458_s25 + $0x38] sm:$0xff] %v141_v7  ;;  %v145_v9 = vld [vmem:[%s1453_s24 + $0x88] sm:$0xff]  ;;  %v147_v10 = vld [vmem:[%s1453_s24 + $0x90] sm:$0xff] }
  0x19   : > { %144 = vst [vmem:[%s1458_s25 + $0x40] sm:$0xff] %v143_v8  ;;  %v149_v11 = vld [vmem:[%s1453_s24 + $0x98] sm:$0xff]  ;;  %146 = vst [vmem:[%s1458_s25 + $0x48] sm:$0xff] %v145_v9  ;;  %v151_v12 = vld [vmem:[%s1453_s24 + $0xc0] sm:$0xff] }
  0x1a   : > { %148 = vst [vmem:[%s1458_s25 + $0x50] sm:$0xff] %v147_v10  ;;  %150 = vst [vmem:[%s1458_s25 + $0x58] sm:$0xff] %v149_v11  ;;  %v153_v13 = vld [vmem:[%s1453_s24 + $0xc8] sm:$0xff]  ;;  %v155_v14 = vld [vmem:[%s1453_s24 + $0xd0] sm:$0xff] }
  0x1b   : > { %152 = vst [vmem:[%s1458_s25 + $0x60] sm:$0xff] %v151_v12  ;;  %154 = vst [vmem:[%s1458_s25 + $0x68] sm:$0xff] %v153_v13  ;;  %v157_v15 = vld [vmem:[%s1453_s24 + $0xd8] sm:$0xff]  ;;  %v159_v16 = vld [vmem:[%s1453_s24 + $0x100] sm:$0xff] }
  0x1c   : > { %156 = vst [vmem:[%s1458_s25 + $0x70] sm:$0xff] %v155_v14  ;;  %v161_v17 = vld [vmem:[%s1453_s24 + $0x108] sm:$0xff]  ;;  %158 = vst [vmem:[%s1458_s25 + $0x78] sm:$0xff] %v157_v15  ;;  %v163_v18 = vld [vmem:[%s1453_s24 + $0x110] sm:$0xff] }
  0x1d   : > { %160 = vst [vmem:[%s1458_s25 + $0x80] sm:$0xff] %v159_v16  ;;  %162 = vst [vmem:[%s1458_s25 + $0x88] sm:$0xff] %v161_v17  ;;  %v165_v19 = vld [vmem:[%s1453_s24 + $0x118] sm:$0xff]  ;;  %v167_v20 = vld [vmem:[%s1453_s24 + $0x140] sm:$0xff] }
  0x1e   : > { %164 = vst [vmem:[%s1458_s25 + $0x90] sm:$0xff] %v163_v18  ;;  %166 = vst [vmem:[%s1458_s25 + $0x98] sm:$0xff] %v165_v19  ;;  %v169_v21 = vld [vmem:[%s1453_s24 + $0x148] sm:$0xff]  ;;  %v171_v22 = vld [vmem:[%s1453_s24 + $0x150] sm:$0xff] }
  0x1f   : > { %168 = vst [vmem:[%s1458_s25 + $0xa0] sm:$0xff] %v167_v20  ;;  %v173_v23 = vld [vmem:[%s1453_s24 + $0x158] sm:$0xff]  ;;  %170 = vst [vmem:[%s1458_s25 + $0xa8] sm:$0xff] %v169_v21  ;;  %v175_v24 = vld [vmem:[%s1453_s24 + $0x180] sm:$0xff] }
  0x20   : > { %172 = vst [vmem:[%s1458_s25 + $0xb0] sm:$0xff] %v171_v22  ;;  %174 = vst [vmem:[%s1458_s25 + $0xb8] sm:$0xff] %v173_v23  ;;  %v177_v25 = vld [vmem:[%s1453_s24 + $0x188] sm:$0xff]  ;;  %v179_v26 = vld [vmem:[%s1453_s24 + $0x190] sm:$0xff] }
  0x21   : > { %176 = vst [vmem:[%s1458_s25 + $0xc0] sm:$0xff] %v175_v24  ;;  %178 = vst [vmem:[%s1458_s25 + $0xc8] sm:$0xff] %v177_v25  ;;  %v181_v27 = vld [vmem:[%s1453_s24 + $0x198] sm:$0xff]  ;;  %v183_v28 = vld [vmem:[%s1453_s24 + $0x1c0] sm:$0xff] }
  0x22   : > { %180 = vst [vmem:[%s1458_s25 + $0xd0] sm:$0xff] %v179_v26  ;;  %v185_v29 = vld [vmem:[%s1453_s24 + $0x1c8] sm:$0xff]  ;;  %182 = vst [vmem:[%s1458_s25 + $0xd8] sm:$0xff] %v181_v27  ;;  %v187_v30 = vld [vmem:[%s1453_s24 + $0x1d0] sm:$0xff] }
  0x23   : > { %184 = vst [vmem:[%s1458_s25 + $0xe0] sm:$0xff] %v183_v28  ;;  %186 = vst [vmem:[%s1458_s25 + $0xe8] sm:$0xff] %v185_v29  ;;  %v189_v31 = vld [vmem:[%s1453_s24 + $0x1d8] sm:$0xff]  ;;  %v191_v32 = vld [vmem:[%s1453_s24 + $0x200] sm:$0xff] }
  0x24   : > { %188 = vst [vmem:[%s1458_s25 + $0xf0] sm:$0xff] %v187_v30  ;;  %190 = vst [vmem:[%s1458_s25 + $0xf8] sm:$0xff] %v189_v31  ;;  %v193_v33 = vld [vmem:[%s1453_s24 + $0x208] sm:$0xff]  ;;  %v195_v34 = vld [vmem:[%s1453_s24 + $0x210] sm:$0xff] }
  0x25   : > { %192 = vst [vmem:[%s1458_s25 + $0x100] sm:$0xff] %v191_v32  ;;  %v197_v35 = vld [vmem:[%s1453_s24 + $0x218] sm:$0xff]  ;;  %194 = vst [vmem:[%s1458_s25 + $0x108] sm:$0xff] %v193_v33  ;;  %v199_v36 = vld [vmem:[%s1453_s24 + $0x240] sm:$0xff] }
  0x26   : > { %196 = vst [vmem:[%s1458_s25 + $0x110] sm:$0xff] %v195_v34  ;;  %198 = vst [vmem:[%s1458_s25 + $0x118] sm:$0xff] %v197_v35  ;;  %v201_v37 = vld [vmem:[%s1453_s24 + $0x248] sm:$0xff]  ;;  %v203_v38 = vld [vmem:[%s1453_s24 + $0x250] sm:$0xff] }
  0x27   : > { %200 = vst [vmem:[%s1458_s25 + $0x120] sm:$0xff] %v199_v36  ;;  %202 = vst [vmem:[%s1458_s25 + $0x128] sm:$0xff] %v201_v37  ;;  %v205_v39 = vld [vmem:[%s1453_s24 + $0x258] sm:$0xff]  ;;  %v207_v40 = vld [vmem:[%s1453_s24 + $0x280] sm:$0xff] }
  0x28   : > { %204 = vst [vmem:[%s1458_s25 + $0x130] sm:$0xff] %v203_v38  ;;  %v209_v41 = vld [vmem:[%s1453_s24 + $0x288] sm:$0xff]  ;;  %206 = vst [vmem:[%s1458_s25 + $0x138] sm:$0xff] %v205_v39  ;;  %v211_v42 = vld [vmem:[%s1453_s24 + $0x290] sm:$0xff] }
  0x29   : > { %208 = vst [vmem:[%s1458_s25 + $0x140] sm:$0xff] %v207_v40  ;;  %210 = vst [vmem:[%s1458_s25 + $0x148] sm:$0xff] %v209_v41  ;;  %v213_v43 = vld [vmem:[%s1453_s24 + $0x298] sm:$0xff]  ;;  %v215_v44 = vld [vmem:[%s1453_s24 + $0x2c0] sm:$0xff] }
  0x2a   : > { %212 = vst [vmem:[%s1458_s25 + $0x150] sm:$0xff] %v211_v42  ;;  %214 = vst [vmem:[%s1458_s25 + $0x158] sm:$0xff] %v213_v43  ;;  %v217_v45 = vld [vmem:[%s1453_s24 + $0x2c8] sm:$0xff]  ;;  %v219_v46 = vld [vmem:[%s1453_s24 + $0x2d0] sm:$0xff] }
  0x2b   : > { %216 = vst [vmem:[%s1458_s25 + $0x160] sm:$0xff] %v215_v44  ;;  %v221_v47 = vld [vmem:[%s1453_s24 + $0x2d8] sm:$0xff]  ;;  %218 = vst [vmem:[%s1458_s25 + $0x168] sm:$0xff] %v217_v45  ;;  %v223_v48 = vld [vmem:[%s1453_s24 + $0x300] sm:$0xff] }
  0x2c   : > { %220 = vst [vmem:[%s1458_s25 + $0x170] sm:$0xff] %v219_v46  ;;  %222 = vst [vmem:[%s1458_s25 + $0x178] sm:$0xff] %v221_v47  ;;  %v225_v49 = vld [vmem:[%s1453_s24 + $0x308] sm:$0xff]  ;;  %v227_v50 = vld [vmem:[%s1453_s24 + $0x310] sm:$0xff] }
  0x2d   : > { %224 = vst [vmem:[%s1458_s25 + $0x180] sm:$0xff] %v223_v48  ;;  %226 = vst [vmem:[%s1458_s25 + $0x188] sm:$0xff] %v225_v49  ;;  %v229_v51 = vld [vmem:[%s1453_s24 + $0x318] sm:$0xff]  ;;  %v231_v52 = vld [vmem:[%s1453_s24 + $0x340] sm:$0xff] }
  0x2e   : > { %228 = vst [vmem:[%s1458_s25 + $0x190] sm:$0xff] %v227_v50  ;;  %v233_v53 = vld [vmem:[%s1453_s24 + $0x348] sm:$0xff]  ;;  %230 = vst [vmem:[%s1458_s25 + $0x198] sm:$0xff] %v229_v51  ;;  %v235_v54 = vld [vmem:[%s1453_s24 + $0x350] sm:$0xff] }
  0x2f   : > { %232 = vst [vmem:[%s1458_s25 + $0x1a0] sm:$0xff] %v231_v52  ;;  %234 = vst [vmem:[%s1458_s25 + $0x1a8] sm:$0xff] %v233_v53  ;;  %v237_v55 = vld [vmem:[%s1453_s24 + $0x358] sm:$0xff]  ;;  %v239_v56 = vld [vmem:[%s1453_s24 + $0x380] sm:$0xff] }
  0x30   : > { %236 = vst [vmem:[%s1458_s25 + $0x1b0] sm:$0xff] %v235_v54  ;;  %238 = vst [vmem:[%s1458_s25 + $0x1b8] sm:$0xff] %v237_v55  ;;  %v241_v57 = vld [vmem:[%s1453_s24 + $0x388] sm:$0xff]  ;;  %v243_v58 = vld [vmem:[%s1453_s24 + $0x390] sm:$0xff] }
  0x31   : > { %240 = vst [vmem:[%s1458_s25 + $0x1c0] sm:$0xff] %v239_v56  ;;  %v245_v59 = vld [vmem:[%s1453_s24 + $0x398] sm:$0xff]  ;;  %242 = vst [vmem:[%s1458_s25 + $0x1c8] sm:$0xff] %v241_v57  ;;  %v247_v60 = vld [vmem:[%s1453_s24 + $0x3c0] sm:$0xff] }
  0x32   : > { %244 = vst [vmem:[%s1458_s25 + $0x1d0] sm:$0xff] %v243_v58  ;;  %246 = vst [vmem:[%s1458_s25 + $0x1d8] sm:$0xff] %v245_v59  ;;  %v249_v61 = vld [vmem:[%s1453_s24 + $0x3c8] sm:$0xff]  ;;  %v251_v62 = vld [vmem:[%s1453_s24 + $0x3d0] sm:$0xff] }
  0x33   : > { %248 = vst [vmem:[%s1458_s25 + $0x1e0] sm:$0xff] %v247_v60  ;;  %250 = vst [vmem:[%s1458_s25 + $0x1e8] sm:$0xff] %v249_v61  ;;  %v253_v63 = vld [vmem:[%s1453_s24 + $0x3d8] sm:$0xff]  ;;  %v255_v0 = vld [vmem:[%s1453_s24 + $0x400] sm:$0xff] }
  0x34   : > { %252 = vst [vmem:[%s1458_s25 + $0x1f0] sm:$0xff] %v251_v62  ;;  %v257_v1 = vld [vmem:[%s1453_s24 + $0x408] sm:$0xff]  ;;  %254 = vst [vmem:[%s1458_s25 + $0x1f8] sm:$0xff] %v253_v63  ;;  %v259_v2 = vld [vmem:[%s1453_s24 + $0x410] sm:$0xff] }
  0x35   : > { %256 = vst [vmem:[%s1458_s25 + $0x200] sm:$0xff] %v255_v0  ;;  %258 = vst [vmem:[%s1458_s25 + $0x208] sm:$0xff] %v257_v1  ;;  %v261_v3 = vld [vmem:[%s1453_s24 + $0x418] sm:$0xff]  ;;  %v263_v4 = vld [vmem:[%s1453_s24 + $0x440] sm:$0xff] }
  0x36   : > { %260 = vst [vmem:[%s1458_s25 + $0x210] sm:$0xff] %v259_v2  ;;  %262 = vst [vmem:[%s1458_s25 + $0x218] sm:$0xff] %v261_v3  ;;  %v265_v5 = vld [vmem:[%s1453_s24 + $0x448] sm:$0xff]  ;;  %v267_v6 = vld [vmem:[%s1453_s24 + $0x450] sm:$0xff] }
  0x37   : > { %264 = vst [vmem:[%s1458_s25 + $0x220] sm:$0xff] %v263_v4  ;;  %v269_v7 = vld [vmem:[%s1453_s24 + $0x458] sm:$0xff]  ;;  %266 = vst [vmem:[%s1458_s25 + $0x228] sm:$0xff] %v265_v5  ;;  %v271_v8 = vld [vmem:[%s1453_s24 + $0x480] sm:$0xff] }
  0x38   : > { %268 = vst [vmem:[%s1458_s25 + $0x230] sm:$0xff] %v267_v6  ;;  %270 = vst [vmem:[%s1458_s25 + $0x238] sm:$0xff] %v269_v7  ;;  %v273_v9 = vld [vmem:[%s1453_s24 + $0x488] sm:$0xff]  ;;  %v275_v10 = vld [vmem:[%s1453_s24 + $0x490] sm:$0xff] }
  0x39   : > { %272 = vst [vmem:[%s1458_s25 + $0x240] sm:$0xff] %v271_v8  ;;  %274 = vst [vmem:[%s1458_s25 + $0x248] sm:$0xff] %v273_v9  ;;  %v277_v11 = vld [vmem:[%s1453_s24 + $0x498] sm:$0xff]  ;;  %v279_v12 = vld [vmem:[%s1453_s24 + $0x4c0] sm:$0xff] }
  0x3a   : > { %276 = vst [vmem:[%s1458_s25 + $0x250] sm:$0xff] %v275_v10  ;;  %v281_v13 = vld [vmem:[%s1453_s24 + $0x4c8] sm:$0xff]  ;;  %278 = vst [vmem:[%s1458_s25 + $0x258] sm:$0xff] %v277_v11  ;;  %v283_v14 = vld [vmem:[%s1453_s24 + $0x4d0] sm:$0xff] }
  0x3b   : > { %280 = vst [vmem:[%s1458_s25 + $0x260] sm:$0xff] %v279_v12  ;;  %282 = vst [vmem:[%s1458_s25 + $0x268] sm:$0xff] %v281_v13  ;;  %v285_v15 = vld [vmem:[%s1453_s24 + $0x4d8] sm:$0xff]  ;;  %v287_v16 = vld [vmem:[%s1453_s24 + $0x500] sm:$0xff] }
  0x3c   : > { %284 = vst [vmem:[%s1458_s25 + $0x270] sm:$0xff] %v283_v14  ;;  %286 = vst [vmem:[%s1458_s25 + $0x278] sm:$0xff] %v285_v15  ;;  %v289_v17 = vld [vmem:[%s1453_s24 + $0x508] sm:$0xff]  ;;  %v291_v18 = vld [vmem:[%s1453_s24 + $0x510] sm:$0xff] }
  0x3d   : > { %288 = vst [vmem:[%s1458_s25 + $0x280] sm:$0xff] %v287_v16  ;;  %v293_v19 = vld [vmem:[%s1453_s24 + $0x518] sm:$0xff]  ;;  %290 = vst [vmem:[%s1458_s25 + $0x288] sm:$0xff] %v289_v17  ;;  %v295_v20 = vld [vmem:[%s1453_s24 + $0x540] sm:$0xff] }
  0x3e   : > { %292 = vst [vmem:[%s1458_s25 + $0x290] sm:$0xff] %v291_v18  ;;  %294 = vst [vmem:[%s1458_s25 + $0x298] sm:$0xff] %v293_v19  ;;  %v297_v21 = vld [vmem:[%s1453_s24 + $0x548] sm:$0xff]  ;;  %v299_v22 = vld [vmem:[%s1453_s24 + $0x550] sm:$0xff] }
  0x3f   : > { %296 = vst [vmem:[%s1458_s25 + $0x2a0] sm:$0xff] %v295_v20  ;;  %298 = vst [vmem:[%s1458_s25 + $0x2a8] sm:$0xff] %v297_v21  ;;  %v301_v23 = vld [vmem:[%s1453_s24 + $0x558] sm:$0xff]  ;;  %v303_v24 = vld [vmem:[%s1453_s24 + $0x580] sm:$0xff] }
  0x40   : > { %300 = vst [vmem:[%s1458_s25 + $0x2b0] sm:$0xff] %v299_v22  ;;  %v305_v25 = vld [vmem:[%s1453_s24 + $0x588] sm:$0xff]  ;;  %302 = vst [vmem:[%s1458_s25 + $0x2b8] sm:$0xff] %v301_v23  ;;  %v307_v26 = vld [vmem:[%s1453_s24 + $0x590] sm:$0xff] }
  0x41   : > { %304 = vst [vmem:[%s1458_s25 + $0x2c0] sm:$0xff] %v303_v24  ;;  %306 = vst [vmem:[%s1458_s25 + $0x2c8] sm:$0xff] %v305_v25  ;;  %v309_v27 = vld [vmem:[%s1453_s24 + $0x598] sm:$0xff]  ;;  %v311_v28 = vld [vmem:[%s1453_s24 + $0x5c0] sm:$0xff] }
  0x42   : > { %308 = vst [vmem:[%s1458_s25 + $0x2d0] sm:$0xff] %v307_v26  ;;  %310 = vst [vmem:[%s1458_s25 + $0x2d8] sm:$0xff] %v309_v27  ;;  %v313_v29 = vld [vmem:[%s1453_s24 + $0x5c8] sm:$0xff]  ;;  %v315_v30 = vld [vmem:[%s1453_s24 + $0x5d0] sm:$0xff] }
  0x43   : > { %312 = vst [vmem:[%s1458_s25 + $0x2e0] sm:$0xff] %v311_v28  ;;  %v317_v31 = vld [vmem:[%s1453_s24 + $0x5d8] sm:$0xff]  ;;  %314 = vst [vmem:[%s1458_s25 + $0x2e8] sm:$0xff] %v313_v29  ;;  %v319_v32 = vld [vmem:[%s1453_s24 + $0x600] sm:$0xff] }
  0x44   : > { %316 = vst [vmem:[%s1458_s25 + $0x2f0] sm:$0xff] %v315_v30  ;;  %318 = vst [vmem:[%s1458_s25 + $0x2f8] sm:$0xff] %v317_v31  ;;  %v321_v33 = vld [vmem:[%s1453_s24 + $0x608] sm:$0xff]  ;;  %v323_v34 = vld [vmem:[%s1453_s24 + $0x610] sm:$0xff] }
  0x45   : > { %320 = vst [vmem:[%s1458_s25 + $0x300] sm:$0xff] %v319_v32  ;;  %322 = vst [vmem:[%s1458_s25 + $0x308] sm:$0xff] %v321_v33  ;;  %v325_v35 = vld [vmem:[%s1453_s24 + $0x618] sm:$0xff]  ;;  %v327_v36 = vld [vmem:[%s1453_s24 + $0x640] sm:$0xff] }
  0x46   : > { %324 = vst [vmem:[%s1458_s25 + $0x310] sm:$0xff] %v323_v34  ;;  %v329_v37 = vld [vmem:[%s1453_s24 + $0x648] sm:$0xff]  ;;  %326 = vst [vmem:[%s1458_s25 + $0x318] sm:$0xff] %v325_v35  ;;  %v331_v38 = vld [vmem:[%s1453_s24 + $0x650] sm:$0xff] }
  0x47   : > { %328 = vst [vmem:[%s1458_s25 + $0x320] sm:$0xff] %v327_v36  ;;  %330 = vst [vmem:[%s1458_s25 + $0x328] sm:$0xff] %v329_v37  ;;  %v333_v39 = vld [vmem:[%s1453_s24 + $0x658] sm:$0xff]  ;;  %v335_v40 = vld [vmem:[%s1453_s24 + $0x680] sm:$0xff] }
  0x48   : > { %332 = vst [vmem:[%s1458_s25 + $0x330] sm:$0xff] %v331_v38  ;;  %334 = vst [vmem:[%s1458_s25 + $0x338] sm:$0xff] %v333_v39  ;;  %v337_v41 = vld [vmem:[%s1453_s24 + $0x688] sm:$0xff]  ;;  %v339_v42 = vld [vmem:[%s1453_s24 + $0x690] sm:$0xff] }
  0x49   : > { %336 = vst [vmem:[%s1458_s25 + $0x340] sm:$0xff] %v335_v40  ;;  %v341_v43 = vld [vmem:[%s1453_s24 + $0x698] sm:$0xff]  ;;  %338 = vst [vmem:[%s1458_s25 + $0x348] sm:$0xff] %v337_v41  ;;  %v343_v44 = vld [vmem:[%s1453_s24 + $0x6c0] sm:$0xff] }
  0x4a   : > { %340 = vst [vmem:[%s1458_s25 + $0x350] sm:$0xff] %v339_v42  ;;  %342 = vst [vmem:[%s1458_s25 + $0x358] sm:$0xff] %v341_v43  ;;  %v345_v45 = vld [vmem:[%s1453_s24 + $0x6c8] sm:$0xff]  ;;  %v347_v46 = vld [vmem:[%s1453_s24 + $0x6d0] sm:$0xff] }
  0x4b   : > { %344 = vst [vmem:[%s1458_s25 + $0x360] sm:$0xff] %v343_v44  ;;  %346 = vst [vmem:[%s1458_s25 + $0x368] sm:$0xff] %v345_v45  ;;  %v349_v47 = vld [vmem:[%s1453_s24 + $0x6d8] sm:$0xff]  ;;  %v351_v48 = vld [vmem:[%s1453_s24 + $0x700] sm:$0xff] }
  0x4c   : > { %348 = vst [vmem:[%s1458_s25 + $0x370] sm:$0xff] %v347_v46  ;;  %v353_v49 = vld [vmem:[%s1453_s24 + $0x708] sm:$0xff]  ;;  %350 = vst [vmem:[%s1458_s25 + $0x378] sm:$0xff] %v349_v47  ;;  %v355_v50 = vld [vmem:[%s1453_s24 + $0x710] sm:$0xff] }
  0x4d   : > { %352 = vst [vmem:[%s1458_s25 + $0x380] sm:$0xff] %v351_v48  ;;  %354 = vst [vmem:[%s1458_s25 + $0x388] sm:$0xff] %v353_v49  ;;  %v357_v51 = vld [vmem:[%s1453_s24 + $0x718] sm:$0xff]  ;;  %v359_v52 = vld [vmem:[%s1453_s24 + $0x740] sm:$0xff] }
  0x4e   : > { %356 = vst [vmem:[%s1458_s25 + $0x390] sm:$0xff] %v355_v50  ;;  %358 = vst [vmem:[%s1458_s25 + $0x398] sm:$0xff] %v357_v51  ;;  %v361_v53 = vld [vmem:[%s1453_s24 + $0x748] sm:$0xff]  ;;  %v363_v54 = vld [vmem:[%s1453_s24 + $0x750] sm:$0xff] }
  0x4f   : > { %360 = vst [vmem:[%s1458_s25 + $0x3a0] sm:$0xff] %v359_v52  ;;  %v365_v55 = vld [vmem:[%s1453_s24 + $0x758] sm:$0xff]  ;;  %362 = vst [vmem:[%s1458_s25 + $0x3a8] sm:$0xff] %v361_v53  ;;  %v367_v56 = vld [vmem:[%s1453_s24 + $0x780] sm:$0xff] }
  0x50   : > { %364 = vst [vmem:[%s1458_s25 + $0x3b0] sm:$0xff] %v363_v54  ;;  %366 = vst [vmem:[%s1458_s25 + $0x3b8] sm:$0xff] %v365_v55  ;;  %v369_v57 = vld [vmem:[%s1453_s24 + $0x788] sm:$0xff]  ;;  %v371_v58 = vld [vmem:[%s1453_s24 + $0x790] sm:$0xff] }
  0x51   : > { %368 = vst [vmem:[%s1458_s25 + $0x3c0] sm:$0xff] %v367_v56  ;;  %370 = vst [vmem:[%s1458_s25 + $0x3c8] sm:$0xff] %v369_v57  ;;  %v373_v59 = vld [vmem:[%s1453_s24 + $0x798] sm:$0xff]  ;;  %v375_v60 = vld [vmem:[%s1453_s24 + $0x7c0] sm:$0xff] }
  0x52   : > { %372 = vst [vmem:[%s1458_s25 + $0x3d0] sm:$0xff] %v371_v58  ;;  %v377_v61 = vld [vmem:[%s1453_s24 + $0x7c8] sm:$0xff]  ;;  %374 = vst [vmem:[%s1458_s25 + $0x3d8] sm:$0xff] %v373_v59  ;;  %v379_v62 = vld [vmem:[%s1453_s24 + $0x7d0] sm:$0xff] }
  0x53   : > { %376 = vst [vmem:[%s1458_s25 + $0x3e0] sm:$0xff] %v375_v60  ;;  %378 = vst [vmem:[%s1458_s25 + $0x3e8] sm:$0xff] %v377_v61  ;;  %v381_v63 = vld [vmem:[%s1453_s24 + $0x7d8] sm:$0xff] }
  0x54   : > { %380 = vst [vmem:[%s1458_s25 + $0x3f0] sm:$0xff] %v379_v62  ;;  %382 = vst [vmem:[%s1458_s25 + $0x3f8] sm:$0xff] %v381_v63 }
  0x55 PF: > { %388 = sbr.rel (!%p1437_p4) target bundleno = 102 (0x66), region = 43  ;;  %s390_s26 = sand.u32 (%p1437_p4), 1, %s1386_s10  }
  0x56   : > { %s1340_s27 = sshll.u32 (%p1437_p4), %s1390_s11, 5  ;;  %s1342_s28 = smul.u32 (%p1437_p4), 192, %s390_s26 }
  0x57   : > { %s1720_s3 = scalar_lea.vmem (%p1437_p4), %s2334_s1, %s1340_s27 }
  0x58   : > { %v408_v0 = vld [vmem:[%s1720_s3] sm:$0xff] (%p1437_p4)  ;;  %v410_v1 = vld [vmem:[%s1720_s3 + $0x8] sm:$0xff] (%p1437_p4)  ;;  %v412_v2 = vld [vmem:[%s1720_s3 + $0x10] sm:$0xff] (%p1437_p4)  ;;  %s1728_s4 = scalar_lea.vmem (%p1437_p4), [#allocation3], %s1342_s28 }
  0x59   : > { %v414_v3 = vld [vmem:[%s1720_s3 + $0x18] sm:$0xff] (%p1437_p4)  ;;  %v416_v4 = vld [vmem:[%s1720_s3 + $0x40] sm:$0xff] (%p1437_p4)  ;;  %v418_v5 = vld [vmem:[%s1720_s3 + $0x48] sm:$0xff] (%p1437_p4)  ;;  %409 = vst [vmem:[%s1728_s4] sm:$0xff] (%p1437_p4), %v408_v0 }
  0x5a   : > { %411 = vst [vmem:[%s1728_s4 + $0x8] sm:$0xff] (%p1437_p4), %v410_v1  ;;  %413 = vst [vmem:[%s1728_s4 + $0x10] sm:$0xff] (%p1437_p4), %v412_v2  ;;  %v420_v6 = vld [vmem:[%s1720_s3 + $0x50] sm:$0xff] (%p1437_p4)  ;;  %v422_v7 = vld [vmem:[%s1720_s3 + $0x58] sm:$0xff] (%p1437_p4) }
  0x5b   : > { %415 = vst [vmem:[%s1728_s4 + $0x18] sm:$0xff] (%p1437_p4), %v414_v3  ;;  %417 = vst [vmem:[%s1728_s4 + $0x20] sm:$0xff] (%p1437_p4), %v416_v4  ;;  %v424_v8 = vld [vmem:[%s1720_s3 + $0x80] sm:$0xff] (%p1437_p4)  ;;  %v426_v9 = vld [vmem:[%s1720_s3 + $0x88] sm:$0xff] (%p1437_p4) }
  0x5c   : > { %419 = vst [vmem:[%s1728_s4 + $0x28] sm:$0xff] %v418_v5  ;;  %421 = vst [vmem:[%s1728_s4 + $0x30] sm:$0xff] %v420_v6  ;;  %v428_v10 = vld [vmem:[%s1720_s3 + $0x90] sm:$0xff]  ;;  %v430_v11 = vld [vmem:[%s1720_s3 + $0x98] sm:$0xff] }
  0x5d   : > { %423 = vst [vmem:[%s1728_s4 + $0x38] sm:$0xff] %v422_v7  ;;  %425 = vst [vmem:[%s1728_s4 + $0x40] sm:$0xff] %v424_v8  ;;  %v432_v12 = vld [vmem:[%s1720_s3 + $0xc0] sm:$0xff]  ;;  %v434_v13 = vld [vmem:[%s1720_s3 + $0xc8] sm:$0xff] }
  0x5e   : > { %427 = vst [vmem:[%s1728_s4 + $0x48] sm:$0xff] %v426_v9  ;;  %429 = vst [vmem:[%s1728_s4 + $0x50] sm:$0xff] %v428_v10  ;;  %v436_v14 = vld [vmem:[%s1720_s3 + $0xd0] sm:$0xff]  ;;  %v438_v15 = vld [vmem:[%s1720_s3 + $0xd8] sm:$0xff] }
  0x5f   : > { %431 = vst [vmem:[%s1728_s4 + $0x58] sm:$0xff] %v430_v11  ;;  %433 = vst [vmem:[%s1728_s4 + $0x60] sm:$0xff] %v432_v12  ;;  %v440_v16 = vld [vmem:[%s1720_s3 + $0x100] sm:$0xff]  ;;  %v442_v17 = vld [vmem:[%s1720_s3 + $0x108] sm:$0xff] }
  0x60   : > { %435 = vst [vmem:[%s1728_s4 + $0x68] sm:$0xff] %v434_v13  ;;  %437 = vst [vmem:[%s1728_s4 + $0x70] sm:$0xff] %v436_v14  ;;  %v444_v18 = vld [vmem:[%s1720_s3 + $0x110] sm:$0xff]  ;;  %v446_v19 = vld [vmem:[%s1720_s3 + $0x118] sm:$0xff] }
  0x61   : > { %439 = vst [vmem:[%s1728_s4 + $0x78] sm:$0xff] %v438_v15  ;;  %441 = vst [vmem:[%s1728_s4 + $0x80] sm:$0xff] %v440_v16  ;;  %v448_v20 = vld [vmem:[%s1720_s3 + $0x140] sm:$0xff]  ;;  %v450_v21 = vld [vmem:[%s1720_s3 + $0x148] sm:$0xff] }
  0x62   : > { %443 = vst [vmem:[%s1728_s4 + $0x88] sm:$0xff] %v442_v17  ;;  %445 = vst [vmem:[%s1728_s4 + $0x90] sm:$0xff] %v444_v18  ;;  %v452_v22 = vld [vmem:[%s1720_s3 + $0x150] sm:$0xff]  ;;  %v454_v23 = vld [vmem:[%s1720_s3 + $0x158] sm:$0xff] }
  0x63   : > { %447 = vst [vmem:[%s1728_s4 + $0x98] sm:$0xff] %v446_v19  ;;  %449 = vst [vmem:[%s1728_s4 + $0xa0] sm:$0xff] %v448_v20 }
  0x64   : > { %451 = vst [vmem:[%s1728_s4 + $0xa8] sm:$0xff] %v450_v21  ;;  %453 = vst [vmem:[%s1728_s4 + $0xb0] sm:$0xff] %v452_v22 }
  0x65   : > { %455 = vst [vmem:[%s1728_s4 + $0xb8] sm:$0xff] %v454_v23 }
  0x66 PF: > { %p1187_p7 = scmp.ge.s32.totalorder %s1390_s11, 1  ;;  %p460_p8 = scmp.lt.s32.totalorder %s1390_s11, 3 }
  0x68   : > { %p461_p9 = pnand %p1187_p7, %p460_p8 }
  0x69   : > { %s1775_s5 = sand.u32 (!%p461_p9), 1, %s1382_s9  }
  0x6a   : > { %464 = sbr.rel (%p461_p9) target bundleno = 219 (0xdb), region = 66  ;;  %s1188_s6 = sshll.u32 (!%p461_p9), %s1775_s5, 10 }
  0x6b   : > { %s1343_s7 = smul.u32 (!%p461_p9), 192, %s1775_s5  ;;  %s1779_s8 = scalar_lea.vmem (!%p461_p9), [#allocation2], %s1188_s6 }
  0x6c   : > { %v527_v24 = vld [vmem:[%s1779_s8] sm:$0xff] (!%p461_p9)  ;;  %v528_v48 = vld [vmem:[%s1779_s8 + $0x8] sm:$0xff] (!%p461_p9)  ;;  %v529_v19 = vld [vmem:[%s1779_s8 + $0x10] sm:$0xff] (!%p461_p9)  ;;  %s1189_s9 = sshll.u32 (!%p461_p9), %s1775_s5, 7 }
  0x6d   : > { %v1198_v25 = vld [vmem:[%s1779_s8 + $0x100] sm:$0xff] (!%p461_p9)  ;;  %s1784_s14 = scalar_lea.vmem (!%p461_p9), [#allocation3], %s1343_s7  ;;  %v1199_v53 = vld [vmem:[%s1779_s8 + $0x108] sm:$0xff] (!%p461_p9)  ;;  %v1200_v20 = vld [vmem:[%s1779_s8 + $0x110] sm:$0xff] (!%p461_p9)  ;;  %s1904_s15 = scalar_lea.vmem (!%p461_p9), [#allocation4], %s1189_s9 }
  0x6e   : > { %v1202_v26 = vld [vmem:[%s1779_s8 + $0x40] sm:$0xff] (!%p461_p9)  ;;  %v1811_v41 = vld [vmem:[%s1784_s14 + $0x8] sm:$0xff] (!%p461_p9)  ;;  %v1844_v4 = vld [vmem:[%s1784_s14 + $0x10] sm:$0xff] (!%p461_p9) }
  0x6f   : > { %v1787_v27 = vld [vmem:[%s1784_s14] sm:$0xff] (!%p461_p9)  ;;  %v1818_v46 = vld [vmem:[%s1784_s14 + $0x48] sm:$0xff] (!%p461_p9)  ;;  %v1826_v50 = vsub.f32 (!%p461_p9), 1.0, %v1811_v41  ;;  %v541_v59 = vmul.f32 (!%p461_p9), %v1199_v53, %v1811_v41  ;;  %v1853_v13 = vld [vmem:[%s1784_s14 + $0x50] sm:$0xff] (!%p461_p9)  ;;  %v1861_v18 = vsub.f32 (!%p461_p9), 1.0, %v1844_v4 }
  0x70   : > { %v1790_v28 = vld [vmem:[%s1784_s14 + $0x40] sm:$0xff] (!%p461_p9)  ;;  %v1796_v30 = vsub.f32 (!%p461_p9), 1.0, %v1787_v27  ;;  %v540_v31 = vmul.f32 (!%p461_p9), %v1198_v25, %v1787_v27  ;;  %v1821_v47 = vld [vmem:[%s1784_s14 + $0x88] sm:$0xff] (!%p461_p9)  ;;  %v1829_v51 = vsub.f32 (!%p461_p9), 1.0, %v1818_v46  ;;  %v1856_v14 = vld [vmem:[%s1784_s14 + $0x90] sm:$0xff] (!%p461_p9) }
  0x71   : > { %v1793_v29 = vld [vmem:[%s1784_s14 + $0x80] sm:$0xff]  ;;  %v1803_v35 = vsub.f32 1.0, %v1790_v28  ;;  %v524_v52 = vsub.f32 1.0, %v1821_v47  ;;  %v1203_v54 = vld [vmem:[%s1779_s8 + $0x48] sm:$0xff]  ;;  %v532_v63 = vmul.f32 %v528_v48, %v1826_v50  ;;  %v1204_v25 = vld [vmem:[%s1779_s8 + $0x50] sm:$0xff]  ;;  %s1341_s17 = sshll.u32 (%p1441_p5), %s1178_s12, 5 }
  0x72   : > { %v1206_v32 = vld [vmem:[%s1779_s8 + $0x140] sm:$0xff]  ;;  %v523_v36 = vsub.f32 1.0, %v1793_v29  ;;  %v531_v42 = vmul.f32 %v527_v24, %v1796_v30  ;;  %v553_v43 = vmul.f32 %v1202_v26, %v1796_v30  ;;  %v1207_v55 = vld [vmem:[%s1779_s8 + $0x148] sm:$0xff]  ;;  %v554_v0 = vmul.f32 %v1203_v54, %v1826_v50  ;;  %v1208_v26 = vld [vmem:[%s1779_s8 + $0x150] sm:$0xff]  ;;  %s1056_s18 = scalar_lea.vmem (%p1441_p5), %s2335_s2, %s1341_s17 }
  0x73   : > { %v1210_v33 = vld [vmem:[%s1779_s8 + $0x80] sm:$0xff]  ;;  %v562_v37 = vmul.f32 %v1206_v32, %v1787_v27  ;;  %v1211_v60 = vld [vmem:[%s1779_s8 + $0x88] sm:$0xff]  ;;  %v563_v1 = vmul.f32 %v1207_v55, %v1811_v41  ;;  %v545_v10 = vadd.f32 %v541_v59, %v532_v63  ;;  %v564_v53 = vmul.f32 %v1208_v26, %v1844_v4  ;;  %v1889_v55 = vld [vmem:[%s1784_s14 + $0x18] sm:$0xff] }
  0x74   : > { %v1214_v34 = vld [vmem:[%s1779_s8 + $0x180] sm:$0xff]  ;;  %v575_v44 = vmul.f32 %v1210_v33, %v1796_v30  ;;  %v544_v56 = vadd.f32 %v540_v31, %v531_v42  ;;  %v1215_v61 = vld [vmem:[%s1779_s8 + $0x188] sm:$0xff]  ;;  %v576_v8 = vmul.f32 %v1211_v60, %v1826_v50  ;;  %v1212_v31 = vld [vmem:[%s1779_s8 + $0x90] sm:$0xff]  ;;  %v533_v42 = vmul.f32 %v529_v19, %v1861_v18 }
  0x75   : > { %v584_v38 = vmul.f32 %v1214_v34, %v1787_v27  ;;  %v1218_v39 = vld [vmem:[%s1779_s8 + $0xc0] sm:$0xff]  ;;  %v566_v57 = vadd.f32 %v562_v37, %v553_v43  ;;  %v1219_v2 = vld [vmem:[%s1779_s8 + $0xc8] sm:$0xff]  ;;  %v567_v11 = vadd.f32 %v563_v1, %v554_v0  ;;  %v585_v12 = vmul.f32 %v1215_v61, %v1811_v41  ;;  %v1893_v60 = vld [vmem:[%s1784_s14 + $0x58] sm:$0xff] }
  0x76   : > { %v1222_v40 = vld [vmem:[%s1779_s8 + $0x1c0] sm:$0xff]  ;;  %v597_v45 = vmul.f32 %v1218_v39, %v1796_v30  ;;  %v1223_v3 = vld [vmem:[%s1779_s8 + $0x1c8] sm:$0xff]  ;;  %v614_v5 = vmul.f32 %v544_v56, %v1803_v35  ;;  %v598_v16 = vmul.f32 %v1219_v2, %v1826_v50  ;;  %v615_v23 = vmul.f32 %v545_v10, %v1829_v51  ;;  %v1898_v1 = vld [vmem:[%s1784_s14 + $0x98] sm:$0xff] }
  0x77   : > { %v606_v49 = vmul.f32 %v1222_v40, %v1787_v27  ;;  %v588_v58 = vadd.f32 %v584_v38, %v575_v44  ;;  %v626_v7 = vmul.f32 %v566_v57, %v1803_v35  ;;  %v607_v17 = vmul.f32 %v1223_v3, %v1811_v41  ;;  %v1216_v38 = vld [vmem:[%s1779_s8 + $0x190] sm:$0xff]  ;;  %v530_v2 = vld [vmem:[%s1779_s8 + $0x18] sm:$0xff] }
  0x78   : > { %v589_v22 = vadd.f32 %v585_v12, %v576_v8  ;;  %v627_v24 = vmul.f32 %v567_v11, %v1829_v51  ;;  %v1874_v34 = vsub.f32 1.0, %v1853_v13  ;;  %v525_v37 = vsub.f32 1.0, %v1856_v14  ;;  %v1220_v44 = vld [vmem:[%s1779_s8 + $0xd0] sm:$0xff]  ;;  %v1201_v3 = vld [vmem:[%s1779_s8 + $0x118] sm:$0xff] }
  0x79   : > { %v610_v62 = vadd.f32 %v606_v49, %v597_v45  ;;  %v618_v6 = vmul.f32 %v1790_v28, %v588_v58  ;;  %v611_v33 = vadd.f32 %v607_v17, %v598_v16  ;;  %v542_v43 = vmul.f32 %v1200_v20, %v1844_v4  ;;  %v1224_v45 = vld [vmem:[%s1779_s8 + $0x1d0] sm:$0xff]  ;;  %v1209_v10 = vld [vmem:[%s1779_s8 + $0x158] sm:$0xff] }
  0x7a   : > { %v619_v40 = vmul.f32 %v1818_v46, %v589_v22  ;;  %v555_v49 = vmul.f32 %v1204_v25, %v1861_v18  ;;  %v577_v54 = vmul.f32 %v1212_v31, %v1861_v18  ;;  %v586_v59 = vmul.f32 %v1216_v38, %v1844_v4  ;;  %v1213_v17 = vld [vmem:[%s1779_s8 + $0x98] sm:$0xff]  ;;  %v1226_v38 = vld [vmem:[%s1779_s8 + $0x200] sm:$0xff] }
  0x7b   : > { %v630_v9 = vmul.f32 %v1790_v28, %v610_v62  ;;  %v622_v15 = vadd.f32 %v618_v6, %v614_v5  ;;  %v631_v48 = vmul.f32 %v1818_v46, %v611_v33  ;;  %v546_v58 = vadd.f32 %v542_v43, %v533_v42  ;;  %v1217_v19 = vld [vmem:[%s1779_s8 + $0x198] sm:$0xff] }
  0x7c   : > { %v623_v57 = vadd.f32 %v619_v40, %v615_v23  ;;  %v568_v62 = vadd.f32 %v564_v53, %v555_v49  ;;  %v599_v63 = vmul.f32 %v1220_v44, %v1861_v18  ;;  %v608_v0 = vmul.f32 %v1224_v45, %v1844_v4  ;;  %v1225_v25 = vld [vmem:[%s1779_s8 + $0x1d8] sm:$0xff]  ;;  %v1230_v44 = vld [vmem:[%s1779_s8 + $0x300] sm:$0xff] }
  0x7d   : > { %v634_v21 = vadd.f32 %v630_v9, %v626_v7  ;;  %v638_v32 = vmul.f32 %v622_v15, %v523_v36  ;;  %v635_v61 = vadd.f32 %v631_v48, %v627_v24  ;;  %v590_v6 = vadd.f32 %v586_v59, %v577_v54  ;;  %v1205_v9 = vld [vmem:[%s1779_s8 + $0x58] sm:$0xff]  ;;  %v1234_v54 = vld [vmem:[%s1779_s8 + $0x240] sm:$0xff] }
  0x7e   : > { %v639_v5 = vmul.f32 %v623_v57, %v524_v52  ;;  %v616_v7 = vmul.f32 %v546_v58, %v1874_v34  ;;  %v1911_v8 = vsub.f32 1.0, %v1889_v55  ;;  %v612_v12 = vadd.f32 %v608_v0, %v599_v63  ;;  %v1221_v24 = vld [vmem:[%s1779_s8 + $0xd8] sm:$0xff]  ;;  %v1242_v57 = vld [vmem:[%s1779_s8 + $0x280] sm:$0xff] }
  0x7f   : > { %v642_v39 = vmul.f32 %v1793_v29, %v634_v21  ;;  %v643_v11 = vmul.f32 %v1821_v47, %v635_v61  ;;  %v628_v15 = vmul.f32 %v568_v62, %v1874_v34  ;;  %v1918_v16 = vsub.f32 1.0, %v1893_v60  ;;  %v1246_v63 = vld [vmem:[%s1779_s8 + $0x380] sm:$0xff] }
  0x80   : > { %v620_v20 = vmul.f32 %v1853_v13, %v590_v6  ;;  %v526_v21 = vsub.f32 1.0, %v1898_v1  ;;  %v534_v22 = vmul.f32 %v530_v2, %v1911_v8  ;;  %v543_v23 = vmul.f32 %v1201_v3, %v1889_v55  ;;  %v1250_v6 = vld [vmem:[%s1779_s8 + $0x2c0] sm:$0xff] }
  0x81   : > { %v646_v56 = vadd.f32 %v642_v39, %v638_v32  ;;  %v647_v26 = vadd.f32 %v643_v11, %v639_v5  ;;  %v632_v31 = vmul.f32 %v1853_v13, %v612_v12  ;;  %v556_v32 = vmul.f32 %v1205_v9, %v1911_v8 }
  0x82   : > { %v565_v33 = vmul.f32 %v1209_v10, %v1889_v55  ;;  %v624_v39 = vadd.f32 %v620_v20, %v616_v7  ;;  %v547_v40 = vadd.f32 %v543_v23, %v534_v22  ;;  %v578_v42 = vmul.f32 %v1213_v17, %v1911_v8  ;;  %v1254_v7 = vld [vmem:[%s1779_s8 + $0x3c0] sm:$0xff]  ;;  %v1231_v23 = vld [vmem:[%s1779_s8 + $0x308] sm:$0xff] }
  0x83   : > { %650 = vst [vmem:[%s1904_s15] sm:$0xff] %v646_v56  ;;  %v587_v43 = vmul.f32 %v1217_v19, %v1889_v55  ;;  %651 = vst [vmem:[%s1904_s15 + $0x8] sm:$0xff] %v647_v26  ;;  %v636_v45 = vadd.f32 %v632_v31, %v628_v15  ;;  %v600_v49 = vmul.f32 %v1221_v24, %v1911_v8  ;;  %v1238_v56 = vld [vmem:[%s1779_s8 + $0x340] sm:$0xff]  ;;  %v1227_v15 = vld [vmem:[%s1779_s8 + $0x208] sm:$0xff] }
  0x84   : > { %v569_v48 = vadd.f32 %v565_v33, %v556_v32  ;;  %v609_v53 = vmul.f32 %v1225_v25, %v1889_v55  ;;  %v640_v58 = vmul.f32 %v624_v39, %v525_v37  ;;  %v617_v61 = vmul.f32 %v547_v40, %v1918_v16  ;;  %v1235_v32 = vld [vmem:[%s1779_s8 + $0x248] sm:$0xff] }
  0x85   : > { %v591_v59 = vadd.f32 %v587_v43, %v578_v42  ;;  %v659_v62 = vmul.f32 %v1226_v38, %v1796_v30  ;;  %v644_v0 = vmul.f32 %v1856_v14, %v636_v45  ;;  %v668_v5 = vmul.f32 %v1230_v44, %v1787_v27  ;;  %v1239_v33 = vld [vmem:[%s1779_s8 + $0x348] sm:$0xff] }
  0x86   : > { %v613_v2 = vadd.f32 %v609_v53, %v600_v49  ;;  %v629_v3 = vmul.f32 %v569_v48, %v1918_v16  ;;  %v681_v10 = vmul.f32 %v1234_v54, %v1796_v30  ;;  %v690_v11 = vmul.f32 %v1238_v56, %v1787_v27  ;;  %v1243_v43 = vld [vmem:[%s1779_s8 + $0x288] sm:$0xff] }
  0x87   : > { %v621_v9 = vmul.f32 %v1893_v60, %v591_v59  ;;  %v703_v12 = vmul.f32 %v1242_v57, %v1796_v30  ;;  %v648_v17 = vadd.f32 %v644_v0, %v640_v58  ;;  %v672_v20 = vadd.f32 %v668_v5, %v659_v62  ;;  %v1247_v44 = vld [vmem:[%s1779_s8 + $0x388] sm:$0xff]  ;;  %v1232_v0 = vld [vmem:[%s1779_s8 + $0x310] sm:$0xff] }
  0x88   : > { %v633_v19 = vmul.f32 %v1893_v60, %v613_v2  ;;  %v712_v22 = vmul.f32 %v1246_v63, %v1787_v27  ;;  %v694_v25 = vadd.f32 %v690_v11, %v681_v10  ;;  %v725_v26 = vmul.f32 %v1250_v6, %v1796_v30  ;;  %v1251_v49 = vld [vmem:[%s1779_s8 + $0x2c8] sm:$0xff]  ;;  %v1228_v63 = vld [vmem:[%s1779_s8 + $0x210] sm:$0xff] }
  0x89   : > { %v625_v24 = vadd.f32 %v621_v9, %v617_v61  ;;  %v734_v31 = vmul.f32 %v1254_v7, %v1787_v27  ;;  %652 = vst [vmem:[%s1904_s15 + $0x10] sm:$0xff] %v648_v17  ;;  %v742_v40 = vmul.f32 %v672_v20, %v1803_v35  ;;  %v660_v42 = vmul.f32 %v1227_v15, %v1826_v50  ;;  %v1255_v58 = vld [vmem:[%s1779_s8 + $0x3c8] sm:$0xff]  ;;  %v1236_v7 = vld [vmem:[%s1779_s8 + $0x250] sm:$0xff] }
  0x8a   : > { %v637_v38 = vadd.f32 %v633_v19, %v629_v3  ;;  %v716_v39 = vadd.f32 %v712_v22, %v703_v12  ;;  %v754_v27 = vmul.f32 %v694_v25, %v1803_v35  ;;  %v669_v48 = vmul.f32 %v1231_v23, %v1811_v41  ;;  %v1240_v12 = vld [vmem:[%s1779_s8 + $0x350] sm:$0xff] }
  0x8b   : > { %v641_v45 = vmul.f32 %v625_v24, %v526_v21  ;;  %v738_v30 = vadd.f32 %v734_v31, %v725_v26  ;;  %v682_v56 = vmul.f32 %v1235_v32, %v1826_v50  ;;  %v691_v57 = vmul.f32 %v1239_v33, %v1811_v41  ;;  %v1244_v15 = vld [vmem:[%s1779_s8 + $0x290] sm:$0xff] }
  0x8c   : > { %v645_v53 = vmul.f32 %v1898_v1, %v637_v38  ;;  %v746_v54 = vmul.f32 %v1790_v28, %v716_v39  ;;  %v673_v61 = vadd.f32 %v669_v48, %v660_v42  ;;  %v704_v35 = vmul.f32 %v1243_v43, %v1826_v50  ;;  %v1248_v17 = vld [vmem:[%s1779_s8 + $0x390] sm:$0xff]  ;;  %v1229_v38 = vld [vmem:[%s1779_s8 + $0x218] sm:$0xff] }
  0x8d   : > { %v758_v59 = vmul.f32 %v1790_v28, %v738_v30  ;;  %v713_v62 = vmul.f32 %v1247_v44, %v1811_v41  ;;  %v695_v5 = vadd.f32 %v691_v57, %v682_v56  ;;  %v726_v6 = vmul.f32 %v1251_v49, %v1826_v50  ;;  %v1252_v23 = vld [vmem:[%s1779_s8 + $0x2d0] sm:$0xff]  ;;  %v1233_v39 = vld [vmem:[%s1779_s8 + $0x318] sm:$0xff] }
  0x8e   : > { %v649_v2 = vadd.f32 %v645_v53, %v641_v45  ;;  %v750_v3 = vadd.f32 %v746_v54, %v742_v40  ;;  %v735_v28 = vmul.f32 %v1255_v58, %v1811_v41  ;;  %v743_v11 = vmul.f32 %v673_v61, %v1829_v51  ;;  %v1256_v31 = vld [vmem:[%s1779_s8 + $0x3d0] sm:$0xff]  ;;  %v1237_v44 = vld [vmem:[%s1779_s8 + $0x258] sm:$0xff] }
  0x8f   : > { %v762_v9 = vadd.f32 %v758_v59, %v754_v27  ;;  %v717_v10 = vadd.f32 %v713_v62, %v704_v35  ;;  %v755_v20 = vmul.f32 %v695_v5, %v1829_v51  ;;  %v661_v50 = vmul.f32 %v1228_v63, %v1861_v18  ;;  %v1241_v49 = vld [vmem:[%s1779_s8 + $0x358] sm:$0xff] }
  0x90   : > { %653 = vst [vmem:[%s1904_s15 + $0x18] sm:$0xff] %v649_v2  ;;  %v766_v19 = vmul.f32 %v750_v3, %v523_v36  ;;  %v670_v22 = vmul.f32 %v1232_v0, %v1844_v4  ;;  %v739_v24 = vadd.f32 %v735_v28, %v726_v6  ;;  %v683_v26 = vmul.f32 %v1236_v7, %v1861_v18  ;;  %v1245_v53 = vld [vmem:[%s1779_s8 + $0x298] sm:$0xff]  ;;  %v2028_v3 = vld [vmem:[%s1784_s14 + $0x20] sm:$0xff] }
  0x91   : > { %v770_v41 = vmul.f32 %v1793_v29, %v762_v9  ;;  %v747_v25 = vmul.f32 %v1818_v46, %v717_v10  ;;  %v692_v36 = vmul.f32 %v1240_v12, %v1844_v4  ;;  %v705_v51 = vmul.f32 %v1244_v15, %v1861_v18  ;;  %v1249_v57 = vld [vmem:[%s1779_s8 + $0x398] sm:$0xff]  ;;  %v2037_v9 = vld [vmem:[%s1784_s14 + $0xa0] sm:$0xff] }
  0x92   : > { %v674_v32 = vadd.f32 %v670_v22, %v661_v50  ;;  %v714_v33 = vmul.f32 %v1248_v17, %v1844_v4  ;;  %v759_v42 = vmul.f32 %v1818_v46, %v739_v24  ;;  %v727_v43 = vmul.f32 %v1252_v23, %v1861_v18  ;;  %v1253_v58 = vld [vmem:[%s1779_s8 + $0x2d8] sm:$0xff]  ;;  %v807_v15 = vld [vmem:[%s1779_s8 + $0x20] sm:$0xff] }
  0x93   : > { %v774_v40 = vadd.f32 %v770_v41, %v766_v19  ;;  %v751_v29 = vadd.f32 %v747_v25, %v743_v11  ;;  %v696_v45 = vadd.f32 %v692_v36, %v683_v26  ;;  %v736_v27 = vmul.f32 %v1256_v31, %v1844_v4  ;;  %v1257_v62 = vld [vmem:[%s1779_s8 + $0x3d8] sm:$0xff]  ;;  %v1274_v50 = vld [vmem:[%s1779_s8 + $0x60] sm:$0xff] }
  0x94   : > { %v718_v30 = vadd.f32 %v714_v33, %v705_v51  ;;  %v744_v48 = vmul.f32 %v674_v32, %v1874_v34  ;;  %v763_v54 = vadd.f32 %v759_v42, %v755_v20  ;;  %v662_v46 = vmul.f32 %v1229_v38, %v1911_v8  ;;  %v1278_v22 = vld [vmem:[%s1779_s8 + $0x160] sm:$0xff] }
  0x95   : > { %1258 = vst [vmem:[%s1904_s15 + $0x40] sm:$0xff] %v774_v40  ;;  %v767_v56 = vmul.f32 %v751_v29, %v524_v52  ;;  %v671_v18 = vmul.f32 %v1233_v39, %v1889_v55  ;;  %v740_v59 = vadd.f32 %v736_v27, %v727_v43  ;;  %v756_v61 = vmul.f32 %v696_v45, %v1874_v34  ;;  %v1282_v23 = vld [vmem:[%s1779_s8 + $0xa0] sm:$0xff]  ;;  %v2069_v40 = vld [vmem:[%s1784_s14 + $0x28] sm:$0xff] }
  0x96   : > { %v748_v4 = vmul.f32 %v1853_v13, %v718_v30  ;;  %v684_v35 = vmul.f32 %v1237_v44, %v1911_v8  ;;  %v771_v63 = vmul.f32 %v1821_v47, %v763_v54  ;;  %v693_v0 = vmul.f32 %v1241_v49, %v1889_v55  ;;  %v2034_v47 = vld [vmem:[%s1784_s14 + $0x60] sm:$0xff]  ;;  %v2073_v45 = vld [vmem:[%s1784_s14 + $0x68] sm:$0xff] }
  0x97   : > { %v675_v52 = vadd.f32 %v671_v18, %v662_v46  ;;  %v706_v2 = vmul.f32 %v1245_v53, %v1911_v8  ;;  %v760_v6 = vmul.f32 %v1853_v13, %v740_v59  ;;  %v715_v34 = vmul.f32 %v1249_v57, %v1889_v55  ;;  %v1270_v13 = vld [vmem:[%s1779_s8 + $0x120] sm:$0xff]  ;;  %v2078_v49 = vld [vmem:[%s1784_s14 + $0xa8] sm:$0xff] }
  0x98   : > { %v752_v5 = vadd.f32 %v748_v4, %v744_v48  ;;  %v728_v7 = vmul.f32 %v1253_v58, %v1911_v8  ;;  %v775_v10 = vadd.f32 %v771_v63, %v767_v56  ;;  %v697_v28 = vadd.f32 %v693_v0, %v684_v35  ;;  %v1290_v51 = vld [vmem:[%s1779_s8 + $0xe0] sm:$0xff]  ;;  %v808_v53 = vld [vmem:[%s1779_s8 + $0x28] sm:$0xff] }
  0x99   : > { %v737_v11 = vmul.f32 %v1257_v62, %v1889_v55  ;;  %v745_v12 = vmul.f32 %v675_v52, %v1918_v16  ;;  %v764_v17 = vadd.f32 %v760_v6, %v756_v61  ;;  %v719_v8 = vadd.f32 %v715_v34, %v706_v2  ;;  %v1294_v33 = vld [vmem:[%s1779_s8 + $0x1e0] sm:$0xff]  ;;  %v1271_v54 = vld [vmem:[%s1779_s8 + $0x128] sm:$0xff] }
  0x9a   : > { %v768_v19 = vmul.f32 %v752_v5, %v525_v37  ;;  %v2046_v20 = vsub.f32 1.0, %v2028_v3  ;;  %1259 = vst [vmem:[%s1904_s15 + $0x48] sm:$0xff] %v775_v10  ;;  %v757_v41 = vmul.f32 %v697_v28, %v1918_v16  ;;  %v2054_v24 = vsub.f32 1.0, %v2034_v47  ;;  %v1286_v37 = vld [vmem:[%s1779_s8 + $0x1a0] sm:$0xff]  ;;  %v1275_v58 = vld [vmem:[%s1779_s8 + $0x68] sm:$0xff] }
  0x9b   : > { %v741_v55 = vadd.f32 %v737_v11, %v728_v7  ;;  %v803_v25 = vsub.f32 1.0, %v2037_v9  ;;  %v772_v26 = vmul.f32 %v1856_v14, %v764_v17  ;;  %v749_v31 = vmul.f32 %v1893_v60, %v719_v8  ;;  %v1279_v59 = vld [vmem:[%s1779_s8 + $0x168] sm:$0xff]  ;;  %v2108_v11 = vld [vmem:[%s1784_s14 + $0x30] sm:$0xff] }
  0x9c   : > { %v811_v32 = vmul.f32 %v807_v15, %v2046_v20  ;;  %v819_v36 = vmul.f32 %v1270_v13, %v2028_v3  ;;  %v831_v38 = vmul.f32 %v1274_v50, %v2046_v20  ;;  %v839_v39 = vmul.f32 %v1278_v22, %v2028_v3  ;;  %v1287_v63 = vld [vmem:[%s1779_s8 + $0x1a8] sm:$0xff] }
  0x9d   : > { %v761_v16 = vmul.f32 %v1893_v60, %v741_v55  ;;  %v851_v14 = vmul.f32 %v1282_v23, %v2046_v20  ;;  %v776_v29 = vadd.f32 %v772_v26, %v768_v19  ;;  %v753_v42 = vadd.f32 %v749_v31, %v745_v12  ;;  %v1295_v6 = vld [vmem:[%s1779_s8 + $0x1e8] sm:$0xff]  ;;  %v2113_v19 = vld [vmem:[%s1784_s14 + $0x70] sm:$0xff] }
  0x9e   : > { %v823_v43 = vadd.f32 %v819_v36, %v811_v32  ;;  %v859_v44 = vmul.f32 %v1286_v37, %v2028_v3  ;;  %v843_v30 = vadd.f32 %v839_v39, %v831_v38  ;;  %v871_v27 = vmul.f32 %v1290_v51, %v2046_v20  ;;  %v2119_v55 = vld [vmem:[%s1784_s14 + $0xb0] sm:$0xff] }
  0x9f   : > { %v765_v60 = vadd.f32 %v761_v16, %v757_v41  ;;  %v879_v48 = vmul.f32 %v1294_v33, %v2028_v3  ;;  %1260 = vst [vmem:[%s1904_s15 + $0x50] sm:$0xff] %v776_v29  ;;  %v769_v56 = vmul.f32 %v753_v42, %v526_v21  ;;  %v2087_v57 = vsub.f32 1.0, %v2069_v40  ;;  %v1283_v21 = vld [vmem:[%s1779_s8 + $0xa8] sm:$0xff]  ;;  %v809_v41 = vld [vmem:[%s1779_s8 + $0x30] sm:$0xff] }
  0xa0   : > { %v863_v46 = vadd.f32 %v859_v44, %v851_v14  ;;  %v887_v18 = vmul.f32 %v823_v43, %v2054_v24  ;;  %v899_v35 = vmul.f32 %v843_v30, %v2054_v24  ;;  %v2094_v62 = vsub.f32 1.0, %v2073_v45  ;;  %v1272_v37 = vld [vmem:[%s1779_s8 + $0x130] sm:$0xff] }
  0xa1   : > { %v773_v4 = vmul.f32 %v1898_v1, %v765_v60  ;;  %v883_v61 = vadd.f32 %v879_v48, %v871_v27  ;;  %v804_v0 = vsub.f32 1.0, %v2078_v49  ;;  %v812_v2 = vmul.f32 %v808_v53, %v2087_v57  ;;  %v1291_v1 = vld [vmem:[%s1779_s8 + $0xe8] sm:$0xff]  ;;  %v1276_v51 = vld [vmem:[%s1779_s8 + $0x70] sm:$0xff] }
  0xa2   : > { %v891_v52 = vmul.f32 %v2034_v47, %v863_v46  ;;  %v820_v5 = vmul.f32 %v1271_v54, %v2069_v40  ;;  %v832_v10 = vmul.f32 %v1275_v58, %v2087_v57  ;;  %v840_v28 = vmul.f32 %v1279_v59, %v2069_v40  ;;  %v1280_v33 = vld [vmem:[%s1779_s8 + $0x170] sm:$0xff] }
  0xa3   : > { %v777_v34 = vadd.f32 %v773_v4, %v769_v56  ;;  %v903_v7 = vmul.f32 %v2034_v47, %v883_v61  ;;  %v852_v13 = vmul.f32 %v1283_v21, %v2087_v57  ;;  %v860_v17 = vmul.f32 %v1287_v63, %v2069_v40  ;;  %v1284_v29 = vld [vmem:[%s1779_s8 + $0xb0] sm:$0xff] }
  0xa4   : > { %v895_v12 = vadd.f32 %v891_v52, %v887_v18  ;;  %v824_v15 = vadd.f32 %v820_v5, %v812_v2  ;;  %v844_v50 = vadd.f32 %v840_v28, %v832_v10  ;;  %v872_v22 = vmul.f32 %v1291_v1, %v2087_v57  ;;  %v1288_v42 = vld [vmem:[%s1779_s8 + $0x1b0] sm:$0xff]  ;;  %v2148_v18 = vld [vmem:[%s1784_s14 + $0x38] sm:$0xff] }
  0xa5   : > { %1261 = vst [vmem:[%s1904_s15 + $0x58] sm:$0xff] %v777_v34  ;;  %v907_v8 = vadd.f32 %v903_v7, %v899_v35  ;;  %v880_v23 = vmul.f32 %v1295_v6, %v2069_v40  ;;  %v864_v31 = vadd.f32 %v860_v17, %v852_v13  ;;  %v2127_v36 = vsub.f32 1.0, %v2108_v11  ;;  %v1292_v27 = vld [vmem:[%s1779_s8 + $0xf0] sm:$0xff]  ;;  %v2153_v35 = vld [vmem:[%s1784_s14 + $0x78] sm:$0xff] }
  0xa6   : > { %v911_v26 = vmul.f32 %v895_v12, %v803_v25  ;;  %v888_v32 = vmul.f32 %v824_v15, %v2094_v62  ;;  %v900_v39 = vmul.f32 %v844_v50, %v2094_v62  ;;  %v2134_v14 = vsub.f32 1.0, %v2113_v19  ;;  %v1296_v48 = vld [vmem:[%s1779_s8 + $0x1f0] sm:$0xff]  ;;  %v2159_v5 = vld [vmem:[%s1784_s14 + $0xb8] sm:$0xff] }
  0xa7   : > { %v915_v16 = vmul.f32 %v2037_v9, %v907_v8  ;;  %v884_v38 = vadd.f32 %v880_v23, %v872_v22  ;;  %v892_v43 = vmul.f32 %v2073_v45, %v864_v31  ;;  %v805_v44 = vsub.f32 1.0, %v2119_v55  ;;  %v810_v1 = vld [vmem:[%s1779_s8 + $0x38] sm:$0xff] }
  0xa8   : > { %v813_v60 = vmul.f32 %v809_v41, %v2127_v36  ;;  %v821_v30 = vmul.f32 %v1272_v37, %v2108_v11  ;;  %v833_v56 = vmul.f32 %v1276_v51, %v2127_v36  ;;  %v841_v46 = vmul.f32 %v1280_v33, %v2108_v11  ;;  %v1273_v6 = vld [vmem:[%s1779_s8 + $0x138] sm:$0xff] }
  0xa9   : > { %v919_v53 = vadd.f32 %v915_v16, %v911_v26  ;;  %v904_v54 = vmul.f32 %v2073_v45, %v884_v38  ;;  %v896_v58 = vadd.f32 %v892_v43, %v888_v32  ;;  %v853_v4 = vmul.f32 %v1284_v29, %v2127_v36  ;;  %v1277_v12 = vld [vmem:[%s1779_s8 + $0x78] sm:$0xff]  ;;  %v1298_v29 = vld [vmem:[%s1779_s8 + $0x220] sm:$0xff] }
  0xaa   : > { %v825_v59 = vadd.f32 %v821_v30, %v813_v60  ;;  %v861_v61 = vmul.f32 %v1288_v42, %v2108_v11  ;;  %v845_v63 = vadd.f32 %v841_v46, %v833_v56  ;;  %v873_v52 = vmul.f32 %v1292_v27, %v2127_v36  ;;  %v1281_v15 = vld [vmem:[%s1779_s8 + $0x178] sm:$0xff]  ;;  %v1302_v27 = vld [vmem:[%s1779_s8 + $0x320] sm:$0xff] }
  0xab   : > { %923 = vst [vmem:[%s1904_s15 + $0x20] sm:$0xff] %v919_v53  ;;  %v908_v21 = vadd.f32 %v904_v54, %v900_v39  ;;  %v881_v2 = vmul.f32 %v1296_v48, %v2108_v11  ;;  %v912_v34 = vmul.f32 %v896_v58, %v804_v0  ;;  %v2167_v28 = vsub.f32 1.0, %v2148_v18  ;;  %v1285_v22 = vld [vmem:[%s1779_s8 + $0xb8] sm:$0xff]  ;;  %v1306_v46 = vld [vmem:[%s1779_s8 + $0x260] sm:$0xff] }
  0xac   : > { %v865_v7 = vadd.f32 %v861_v61, %v853_v4  ;;  %v889_v10 = vmul.f32 %v825_v59, %v2134_v14  ;;  %v901_v8 = vmul.f32 %v845_v63, %v2134_v14  ;;  %v2174_v50 = vsub.f32 1.0, %v2153_v35  ;;  %v1289_v23 = vld [vmem:[%s1779_s8 + $0x1b8] sm:$0xff]  ;;  %v1310_v58 = vld [vmem:[%s1779_s8 + $0x360] sm:$0xff] }
  0xad   : > { %v916_v13 = vmul.f32 %v2078_v49, %v908_v21  ;;  %v885_v17 = vadd.f32 %v881_v2, %v873_v52  ;;  %v806_v37 = vsub.f32 1.0, %v2159_v5  ;;  %v814_v26 = vmul.f32 %v810_v1, %v2167_v28  ;;  %v1293_v32 = vld [vmem:[%s1779_s8 + $0xf8] sm:$0xff]  ;;  %v1314_v59 = vld [vmem:[%s1779_s8 + $0x2a0] sm:$0xff] }
  0xae   : > { %v893_v41 = vmul.f32 %v2113_v19, %v865_v7  ;;  %v822_v31 = vmul.f32 %v1273_v6, %v2148_v18  ;;  %v1297_v51 = vld [vmem:[%s1779_s8 + $0x1f8] sm:$0xff]  ;;  %v834_v38 = vmul.f32 %v1277_v12, %v2167_v28  ;;  %v842_v39 = vmul.f32 %v1281_v15, %v2148_v18  ;;  %v1318_v52 = vld [vmem:[%s1779_s8 + $0x3a0] sm:$0xff] }
  0xaf   : > { %v920_v33 = vadd.f32 %v916_v13, %v912_v34  ;;  %v905_v16 = vmul.f32 %v2113_v19, %v885_v17  ;;  %v854_v60 = vmul.f32 %v1285_v22, %v2167_v28  ;;  %v862_v30 = vmul.f32 %v1289_v23, %v2148_v18  ;;  %v1322_v7 = vld [vmem:[%s1779_s8 + $0x2e0] sm:$0xff] }
  0xb0   : > { %v897_v42 = vadd.f32 %v893_v41, %v889_v10  ;;  %v826_v43 = vadd.f32 %v822_v31, %v814_v26  ;;  %v846_v53 = vadd.f32 %v842_v39, %v834_v38  ;;  %v874_v54 = vmul.f32 %v1293_v32, %v2167_v28  ;;  %v1326_v10 = vld [vmem:[%s1779_s8 + $0x3e0] sm:$0xff]  ;;  %v1303_v31 = vld [vmem:[%s1779_s8 + $0x328] sm:$0xff] }
  0xb1   : > { %924 = vst [vmem:[%s1904_s15 + $0x28] sm:$0xff] %v920_v33  ;;  %v909_v48 = vadd.f32 %v905_v16, %v901_v8  ;;  %v882_v56 = vmul.f32 %v1297_v51, %v2148_v18  ;;  %v866_v61 = vadd.f32 %v862_v30, %v854_v60  ;;  %v931_v63 = vmul.f32 %v1298_v29, %v2046_v20  ;;  %v1299_v8 = vld [vmem:[%s1779_s8 + $0x228] sm:$0xff] }
  0xb2   : > { %v913_v4 = vmul.f32 %v897_v42, %v805_v44  ;;  %v890_v21 = vmul.f32 %v826_v43, %v2174_v50  ;;  %v902_v6 = vmul.f32 %v846_v53, %v2174_v50  ;;  %v939_v34 = vmul.f32 %v1302_v27, %v2028_v3  ;;  %v1307_v38 = vld [vmem:[%s1779_s8 + $0x268] sm:$0xff] }
  0xb3   : > { %v917_v2 = vmul.f32 %v2119_v55, %v909_v48  ;;  %v886_v1 = vadd.f32 %v882_v56, %v874_v54  ;;  %v894_v12 = vmul.f32 %v2153_v35, %v866_v61  ;;  %v951_v15 = vmul.f32 %v1306_v46, %v2046_v20  ;;  %v1311_v39 = vld [vmem:[%s1779_s8 + $0x368] sm:$0xff] }
  0xb4   : > { %v959_v13 = vmul.f32 %v1310_v58, %v2028_v3  ;;  %v971_v17 = vmul.f32 %v1314_v59, %v2046_v20  ;;  %v943_v41 = vadd.f32 %v939_v34, %v931_v63  ;;  %v979_v26 = vmul.f32 %v1318_v52, %v2028_v3  ;;  %v1315_v30 = vld [vmem:[%s1779_s8 + $0x2a8] sm:$0xff]  ;;  %v1300_v52 = vld [vmem:[%s1779_s8 + $0x230] sm:$0xff] }
  0xb5   : > { %v921_v22 = vadd.f32 %v917_v2, %v913_v4  ;;  %v906_v23 = vmul.f32 %v2153_v35, %v886_v1  ;;  %v898_v32 = vadd.f32 %v894_v12, %v890_v21  ;;  %v991_v33 = vmul.f32 %v1322_v7, %v2046_v20  ;;  %v1319_v27 = vld [vmem:[%s1779_s8 + $0x3a8] sm:$0xff]  ;;  %v1304_v2 = vld [vmem:[%s1779_s8 + $0x330] sm:$0xff] }
  0xb6   : > { %v963_v51 = vadd.f32 %v959_v13, %v951_v15  ;;  %v999_v16 = vmul.f32 %v1326_v10, %v2028_v3  ;;  %v983_v42 = vadd.f32 %v979_v26, %v971_v17  ;;  %v1007_v43 = vmul.f32 %v943_v41, %v2054_v24  ;;  %v1323_v54 = vld [vmem:[%s1779_s8 + $0x2e8] sm:$0xff]  ;;  %v1308_v10 = vld [vmem:[%s1779_s8 + $0x270] sm:$0xff] }
  0xb7   : > { %925 = vst [vmem:[%s1904_s15 + $0x30] sm:$0xff] %v921_v22  ;;  %v910_v29 = vadd.f32 %v906_v23, %v902_v6  ;;  %v932_v60 = vmul.f32 %v1299_v8, %v2087_v57  ;;  %v914_v48 = vmul.f32 %v898_v32, %v806_v37  ;;  %v940_v53 = vmul.f32 %v1303_v31, %v2069_v40  ;;  %v1327_v4 = vld [vmem:[%s1779_s8 + $0x3e8] sm:$0xff]  ;;  %v1312_v17 = vld [vmem:[%s1779_s8 + $0x370] sm:$0xff] }
  0xb8   : > { %v1003_v20 = vadd.f32 %v999_v16, %v991_v33  ;;  %v1019_v3 = vmul.f32 %v963_v51, %v2054_v24  ;;  %v1011_v46 = vmul.f32 %v2034_v47, %v983_v42  ;;  %v952_v58 = vmul.f32 %v1307_v38, %v2087_v57  ;;  %v1316_v8 = vld [vmem:[%s1779_s8 + $0x2b0] sm:$0xff]  ;;  %v1305_v42 = vld [vmem:[%s1779_s8 + $0x338] sm:$0xff] }
  0xb9   : > { %v918_v56 = vmul.f32 %v2159_v5, %v910_v29  ;;  %v960_v59 = vmul.f32 %v1311_v39, %v2069_v40  ;;  %v944_v21 = vadd.f32 %v940_v53, %v932_v60  ;;  %v972_v24 = vmul.f32 %v1315_v30, %v2087_v57  ;;  %v1320_v22 = vld [vmem:[%s1779_s8 + $0x3b0] sm:$0xff]  ;;  %v1301_v29 = vld [vmem:[%s1779_s8 + $0x238] sm:$0xff] }
  0xba   : > { %v1023_v61 = vmul.f32 %v2034_v47, %v1003_v20  ;;  %v980_v63 = vmul.f32 %v1319_v27, %v2069_v40  ;;  %v1015_v6 = vadd.f32 %v1011_v46, %v1007_v43  ;;  %v992_v7 = vmul.f32 %v1323_v54, %v2087_v57  ;;  %v1324_v31 = vld [vmem:[%s1779_s8 + $0x2f0] sm:$0xff]  ;;  %v1309_v27 = vld [vmem:[%s1779_s8 + $0x278] sm:$0xff] }
  0xbb   : > { %v922_v1 = vadd.f32 %v918_v56, %v914_v48  ;;  %v964_v34 = vadd.f32 %v960_v59, %v952_v58  ;;  %v1000_v47 = vmul.f32 %v1327_v4, %v2069_v40  ;;  %v1008_v13 = vmul.f32 %v944_v21, %v2094_v62  ;;  %v1328_v16 = vld [vmem:[%s1779_s8 + $0x3f0] sm:$0xff]  ;;  %v1313_v54 = vld [vmem:[%s1779_s8 + $0x378] sm:$0xff] }
  0xbc   : > { %v1027_v12 = vadd.f32 %v1023_v61, %v1019_v3  ;;  %v984_v15 = vadd.f32 %v980_v63, %v972_v24  ;;  %v1031_v23 = vmul.f32 %v1015_v6, %v803_v25  ;;  %v933_v57 = vmul.f32 %v1300_v52, %v2127_v36  ;;  %v1317_v56 = vld [vmem:[%s1779_s8 + $0x2b8] sm:$0xff] }
  0xbd   : > { %926 = vst [vmem:[%s1904_s15 + $0x38] sm:$0xff] %v922_v1  ;;  %v1020_v41 = vmul.f32 %v964_v34, %v2094_v62  ;;  %v941_v26 = vmul.f32 %v1304_v2, %v2108_v11  ;;  %v1004_v32 = vadd.f32 %v1000_v47, %v992_v7  ;;  %v953_v33 = vmul.f32 %v1308_v10, %v2127_v36  ;;  %v1325_v4 = vld [vmem:[%s1779_s8 + $0x2f8] sm:$0xff] }
  0xbe   : > { %v1035_v40 = vmul.f32 %v2037_v9, %v1027_v12  ;;  %v1012_v51 = vmul.f32 %v2073_v45, %v984_v15  ;;  %v961_v25 = vmul.f32 %v1312_v17, %v2108_v11  ;;  %v973_v62 = vmul.f32 %v1316_v8, %v2127_v36  ;;  %v1329_v63 = vld [vmem:[%s1779_s8 + $0x3f8] sm:$0xff] }
  0xbf   : > { %v945_v38 = vadd.f32 %v941_v26, %v933_v57  ;;  %v981_v39 = vmul.f32 %v1320_v22, %v2108_v11  ;;  %v1024_v60 = vmul.f32 %v2073_v45, %v1004_v32  ;;  %v993_v30 = vmul.f32 %v1324_v31, %v2127_v36  ;;  %v1321_v36 = vld [vmem:[%s1779_s8 + $0x3b8] sm:$0xff]  ;;  %v1081_v32 = vld [vmem:[%s1904_s15 + $0x30] sm:$0xff] (%p1441_p5) }
  0xc0   : > { %v1039_v43 = vadd.f32 %v1035_v40, %v1031_v23  ;;  %v1016_v9 = vadd.f32 %v1012_v51, %v1008_v13  ;;  %v965_v48 = vadd.f32 %v961_v25, %v953_v33  ;;  %v1001_v3 = vmul.f32 %v1328_v16, %v2108_v11  ;;  %v1079_v40 = vld [vmem:[%s1904_s15 + $0x28] sm:$0xff] (%p1441_p5)  ;;  %v1085_v33 = vld [vmem:[%s1904_s15 + $0x40] sm:$0xff] (%p1441_p5)  ;;  %1082 = vst [vmem:[%s1056_s18 + $0x50] sm:$0xff] (%p1441_p5), %v1081_v32  ;;  %v1091_v25 = vld [vmem:[%s1904_s15 + $0x58] sm:$0xff] (%p1441_p5) }
  0xc1   : > { %v985_v20 = vadd.f32 %v981_v39, %v973_v62  ;;  %v1009_v53 = vmul.f32 %v945_v38, %v2134_v14  ;;  %v1028_v46 = vadd.f32 %v1024_v60, %v1020_v41  ;;  %v934_v59 = vmul.f32 %v1301_v29, %v2167_v28  ;;  %1080 = vst [vmem:[%s1056_s18 + $0x48] sm:$0xff] (%p1441_p5), %v1079_v40  ;;  %v1087_v16 = vld [vmem:[%s1904_s15 + $0x48] sm:$0xff] (%p1441_p5)  ;;  %v1089_v38 = vld [vmem:[%s1904_s15 + $0x50] sm:$0xff] (%p1441_p5) }
  0xc2   : > { %1330 = vst [vmem:[%s1904_s15 + $0x60] sm:$0xff] %v1039_v43  ;;  %v1032_v58 = vmul.f32 %v1016_v9, %v804_v0  ;;  %v942_v45 = vmul.f32 %v1305_v42, %v2148_v18  ;;  %v1005_v61 = vadd.f32 %v1001_v3, %v993_v30  ;;  %v1021_v11 = vmul.f32 %v965_v48, %v2134_v14 }
  0xc3   : > { %v1013_v21 = vmul.f32 %v2113_v19, %v985_v20  ;;  %v954_v24 = vmul.f32 %v1309_v27, %v2167_v28  ;;  %v1036_v52 = vmul.f32 %v2078_v49, %v1028_v46  ;;  %v962_v0 = vmul.f32 %v1313_v54, %v2148_v18  ;;  %1086 = vst [vmem:[%s1056_s18 + $0x80] sm:$0xff] (%p1441_p5), %v1085_v33 }
  0xc4   : > { %v946_v2 = vadd.f32 %v942_v45, %v934_v59  ;;  %v974_v1 = vmul.f32 %v1317_v56, %v2167_v28  ;;  %v1025_v34 = vmul.f32 %v2113_v19, %v1005_v61  ;;  %v982_v7 = vmul.f32 %v1321_v36, %v2148_v18  ;;  %v1083_v51 = vld [vmem:[%s1904_s15 + $0x38] sm:$0xff] (%p1441_p5)  ;;  %1088 = vst [vmem:[%s1056_s18 + $0x88] sm:$0xff] (%p1441_p5), %v1087_v16 }
  0xc5   : > { %v1017_v6 = vadd.f32 %v1013_v21, %v1009_v53  ;;  %v994_v10 = vmul.f32 %v1325_v4, %v2167_v28  ;;  %v1040_v12 = vadd.f32 %v1036_v52, %v1032_v58  ;;  %v966_v14 = vadd.f32 %v962_v0, %v954_v24  ;;  %1084 = vst [vmem:[%s1056_s18 + $0x58] sm:$0xff] (%p1441_p5), %v1083_v51 }
  0xc6   : > { %v1002_v15 = vmul.f32 %v1329_v63, %v2148_v18  ;;  %v1010_v47 = vmul.f32 %v946_v2, %v2174_v50  ;;  %v1029_v49 = vadd.f32 %v1025_v34, %v1021_v11  ;;  %v986_v17 = vadd.f32 %v982_v7, %v974_v1  ;;  %1090 = vst [vmem:[%s1056_s18 + $0x90] sm:$0xff] (%p1441_p5), %v1089_v38 }
  0xc7   : > { %v1033_v13 = vmul.f32 %v1017_v6, %v805_v44  ;;  %1331 = vst [vmem:[%s1904_s15 + $0x68] sm:$0xff] %v1040_v12  ;;  %v1022_v19 = vmul.f32 %v966_v14, %v2174_v50  ;;  %v1075_v50 = vld [vmem:[%s1904_s15 + $0x18] sm:$0xff] (%p1441_p5)  ;;  %1092 = vst [vmem:[%s1056_s18 + $0x98] sm:$0xff] (%p1441_p5), %v1091_v25 }
  0xc8   : > { %v1006_v8 = vadd.f32 %v1002_v15, %v994_v10  ;;  %v1037_v22 = vmul.f32 %v2119_v55, %v1029_v49  ;;  %v1014_v28 = vmul.f32 %v2153_v35, %v986_v17  ;;  %v1069_v55 = vld [vmem:[%s1904_s15] sm:$0xff] (%p1441_p5)  ;;  %1076 = vst [vmem:[%s1056_s18 + $0x18] sm:$0xff] (%p1441_p5), %v1075_v50 }
  0xc9   : > { %1070 = vst [vmem:[%s1056_s18] sm:$0xff] (%p1441_p5), %v1069_v55  ;;  %v1093_v62 = vld [vmem:[%s1904_s15 + $0x60] sm:$0xff] (%p1441_p5) }
  0xca   : > { %v1026_v23 = vmul.f32 %v2153_v35, %v1006_v8  ;;  %v1041_v41 = vadd.f32 %v1037_v22, %v1033_v13  ;;  %v1018_v18 = vadd.f32 %v1014_v28, %v1010_v47  ;;  %v1071_v35 = vld [vmem:[%s1904_s15 + $0x8] sm:$0xff] (%p1441_p5)  ;;  %1094 = vst [vmem:[%s1056_s18 + $0xc0] sm:$0xff] (%p1441_p5), %v1093_v62 }
  0xcb   : > { %1072 = vst [vmem:[%s1056_s18 + $0x8] sm:$0xff] (%p1441_p5), %v1071_v35 }
  0xcc   : > { %v1030_v57 = vadd.f32 %v1026_v23, %v1022_v19  ;;  %1332 = vst [vmem:[%s1904_s15 + $0x70] sm:$0xff] %v1041_v41  ;;  %v1034_v26 = vmul.f32 %v1018_v18, %v806_v37  ;;  %1053 = sbr.rel (!%p1441_p5) target bundleno = 219 (0xdb), region = 78  ;;  %v1077_v37 = vld [vmem:[%s1904_s15 + $0x20] sm:$0xff] (%p1441_p5) }
  0xcd   : > { %1078 = vst [vmem:[%s1056_s18 + $0x40] sm:$0xff] (%p1441_p5), %v1077_v37 }
  0xce   : > { %v1038_v44 = vmul.f32 %v2159_v5, %v1030_v57  ;;  %v1073_v5 = vld [vmem:[%s1904_s15 + $0x10] sm:$0xff] (%p1441_p5)  ;;  %v1095_v39 = vld [vmem:[%s1904_s15 + $0x68] sm:$0xff] (%p1441_p5) }
  0xcf   : > { %1074 = vst [vmem:[%s1056_s18 + $0x10] sm:$0xff] (%p1441_p5), %v1073_v5  ;;  %1096 = vst [vmem:[%s1056_s18 + $0xc8] sm:$0xff] (%p1441_p5), %v1095_v39 }
  0xd0   : > { %v1042_v31 = vadd.f32 %v1038_v44, %v1034_v26 }
  0xd2   : > { %1333 = vst [vmem:[%s1904_s15 + $0x78] sm:$0xff] %v1042_v31 }
  0xd3   : > { %v1097_v29 = vld [vmem:[%s1904_s15 + $0x70] sm:$0xff] }
  0xd4   : > { %1098 = vst [vmem:[%s1056_s18 + $0xd0] sm:$0xff] %v1097_v29 }
  0xd9   : > { %v1099_v42 = vld [vmem:[%s1904_s15 + $0x78] sm:$0xff] }
  0xda   : > { %1100 = vst [vmem:[%s1056_s18 + $0xd8] sm:$0xff] %v1099_v42 }
  0xdb PF: > { %p9_p10 = scmp.ge.s32.totalorder %s1424_s13, 4   ;;  %s2338_s9 = smov %s1386_s10 }
  0xdc   : > { %s2339_s10 = smov %s1435_s16  ;;  %s2340_s11 = smov %s1424_s13 }
  0xdd   :  { %11 = sbr.rel (!%p9_p10) target bundleno = 2 (0x2), region = 158 }

</bundles_post_ra>
